<compile_context>
chip_gen: v5e
topology: v5e:2x2
jax: 0.10.0
libtpu: 0.0.40
codegen_flags: <defaults>
</compile_context>

<pallas_src>
import math

import jax
import jax.numpy as jnp
from jax import lax
from jax.experimental import pallas as pl
from jax.experimental.pallas import tpu as pltpu


# ----------------------------------------------------------------------------
# Fused conv kernel: 3x3 conv (+ optional bn+relu epilogue, fused 1x1 shortcut
# conv as a second output, fused residual add).
# ----------------------------------------------------------------------------

def _make_conv_kernel(taps, center, R, post_bn_relu, shortcut, residual):
    """taps: 9 (plane, flat_offset) pairs; center: the 1x1-conv (pad-0) tap."""

    def kernel(*args):
        i = 0
        x_ref = args[i]; i += 1                            # (P, Lq, Cin)  bf16
        w_ref = args[i]; i += 1                            # (9, Cin, Cout) bf16
        if post_bn_relu:
            s_ref = args[i]; b_ref = args[i + 1]; i += 2   # (1, Cout) f32
        if shortcut:
            wsc_ref = args[i]; i += 1                      # (1, Cin, Cout) bf16
        if residual:
            res_ref = args[i]; i += 1                      # (R, Cout) f32
        o_ref = args[i]; i += 1                            # (R, Cout)
        if shortcut:
            sc_ref = args[i]; i += 1                       # (R, Cout) f32

        cout = w_ref.shape[-1]
        acc = jnp.zeros((R, cout), jnp.float32)
        # 3x3 taps unrolled: 9 accumulating bf16 MXU dots on shifted VMEM
        # windows (replaces the HBM-materialised im2col of the old version).
        for t, (p, off) in enumerate(taps):
            lhs = x_ref[p, off:off + R, :]                 # contiguous 2-D slice
            acc = acc + jnp.dot(lhs, w_ref[t],
                                preferred_element_type=jnp.float32)

        out = acc
        if post_bn_relu:                                   # fused bn2 + relu2
            out = jnp.maximum(out * s_ref[...] + b_ref[...], 0.0)
        if residual:                                       # fused residual add
            out = out + res_ref[...]
        o_ref[...] = out.astype(o_ref.dtype)

        if shortcut:                                       # fused 1x1 shortcut
            p, off = center
            lhs = x_ref[p, off:off + R, :]
            sc = jnp.dot(lhs, wsc_ref[0], preferred_element_type=jnp.float32)
            sc_ref[...] = sc.astype(sc_ref.dtype)

    return kernel


def _fused_conv(planes, w_taps, *, out_hw, Wq, stride, post_bn=None,
                w_shortcut=None, residual=None, out_dtype=jnp.float32):
    """One fused 3x3 conv of a BasicBlock.

    planes   : (N, stride*stride, Lq, Cin) bf16 -- activated, zero-padded input,
               parity-decomposed and spatially flattened (_prep_conv_input).
    w_taps   : (9, Cin, Cout) bf16 tap-major weights.
    post_bn  : optional (scale, shift), each (1, Cout) f32 -> fused bn+relu.
    w_shortcut: optional (1, Cin, Cout) bf16 -> fused 1x1/stride shortcut conv
               emitted as a second output.
    residual : optional (N, R, Cout) f32 in padded-row layout, added in epilogue.

    Returns output(s) in "padded-row" layout (N, R, Cout), R=(Ho-1)*Wq+Wo.
    """
    N, P, Lq, Cin = planes.shape
    Cout = w_taps.shape[-1]
    Ho, Wo = out_hw
    R = (Ho - 1) * Wq + Wo

    taps = [((ki % stride) * stride + (kj % stride),
             (ki // stride) * Wq + (kj // stride))
            for ki in range(3) for kj in range(3)]
    center = taps[4]                                       # the 1x1 (pad-0) tap

    kernel = _make_conv_kernel(taps, center, R,
                               post_bn is not None,
                               w_shortcut is not None,
                               residual is not None)

    inputs = [planes, w_taps]
    in_specs = [
        pl.BlockSpec((None, P, Lq, Cin), lambda n: (n, 0, 0, 0)),
        pl.BlockSpec((9, Cin, Cout), lambda n: (0, 0, 0)),
    ]
    if post_bn is not None:
        inputs += [post_bn[0], post_bn[1]]
        in_specs += [pl.BlockSpec((1, Cout), lambda n: (0, 0))] * 2
    if w_shortcut is not None:
        inputs.append(w_shortcut)
        in_specs.append(pl.BlockSpec((1, Cin, Cout), lambda n: (0, 0, 0)))
    if residual is not None:
        inputs.append(residual)
        in_specs.append(pl.BlockSpec((None, R, Cout), lambda n: (n, 0, 0)))

    out_shapes = [jax.ShapeDtypeStruct((N, R, Cout), out_dtype)]
    out_specs = [pl.BlockSpec((None, R, Cout), lambda n: (n, 0, 0))]
    if w_shortcut is not None:
        out_shapes.append(jax.ShapeDtypeStruct((N, R, Cout), jnp.float32))
        out_specs.append(pl.BlockSpec((None, R, Cout), lambda n: (n, 0, 0)))

    single = len(out_shapes) == 1
    return pl.pallas_call(
        kernel,
        grid=(N,),
        in_specs=in_specs,
        out_specs=out_specs[0] if single else tuple(out_specs),
        out_shape=out_shapes[0] if single else tuple(out_shapes),
        compiler_params=pltpu.CompilerParams(
            dimension_semantics=("parallel",),
            vmem_limit_bytes=32 * 1024 * 1024),
    )(*inputs)


# ----------------------------------------------------------------------------
# Layout helpers (plain XLA; each one is a single fused pass over a small
# bf16/f32 activation).
# ----------------------------------------------------------------------------

def _prep_conv_input(a, stride):
    """Zero-pad an activated NHWC tensor by 1, split into stride*stride parity
    planes (so every stride-s 3x3 tap becomes a contiguous window) and flatten
    spatial dims.  Returns ((N, s*s, Hq*Wq, C), Wq)."""
    N, H, W, C = a.shape
    Hp, Wp = H + 2, W + 2
    Hq, Wq = -(-Hp // stride), -(-Wp // stride)
    a = jnp.pad(a, ((0, 0), (1, Hq * stride - Hp + 1),
                    (1, Wq * stride - Wp + 1), (0, 0)))
    a = a.reshape(N, Hq, stride, Wq, stride, C)
    a = a.transpose(0, 2, 4, 1, 3, 5).reshape(N, stride * stride, Hq * Wq, C)
    return a, Wq


def _to_rows(t, Wq, R):
    """(N, H, W, C) -> (N, R, C) padded-row layout (row stride Wq)."""
    N, H, W, C = t.shape
    t = jnp.pad(t, ((0, 0), (0, 0), (0, Wq - W), (0, 0)))
    return t.reshape(N, H * Wq, C)[:, :R, :]


def _from_rows(t, Ho, Wo, Wq):
    """(N, R, C) padded-row layout -> (N, Ho, Wo, C)."""
    N, R, C = t.shape
    t = jnp.pad(t, ((0, 0), (0, Ho * Wq - R), (0, 0)))
    return t.reshape(N, Ho, Wq, C)[:, :, :Wo, :]


def _bn_scale_shift(c, eps=1e-5):
    # Eval-mode BatchNorm folded to y = x*scale + shift, matching a freshly
    # initialised nn.BatchNorm2d (gamma=1, beta=0, running_mean=0, running_var=1).
    # TODO(synk): training-mode BatchNorm (batch statistics) is not implemented.
    gamma = jnp.ones((c,), jnp.float32)
    beta = jnp.zeros((c,), jnp.float32)
    mean = jnp.zeros((c,), jnp.float32)
    var = jnp.ones((c,), jnp.float32)
    scale = gamma / jnp.sqrt(var + eps)
    shift = beta - mean * scale
    return scale.reshape(1, c), shift.reshape(1, c)


# ----------------------------------------------------------------------------
# The BasicBlock module.
# ----------------------------------------------------------------------------

class BasicBlockPallas:
    """Pallas-TPU WRN BasicBlock (eval-mode BN, dropRate = 0):

        o = relu(bn1(x))
        h = relu(bn2(conv1(o)))                      # 3x3, stride s, pad 1
        y = conv2(h) + (x if equalInOut else convShortcut(o))
    """

    def __init__(self, key, in_planes, out_planes, stride, dropRate=0.0):
        # TODO(synk): dropout (dropRate > 0) is not implemented (dropRate=0 here).
        assert dropRate == 0.0
        self.in_planes, self.out_planes, self.stride = in_planes, out_planes, stride
        self.equal = in_planes == out_planes

        k1, k2, k3 = jax.random.split(key, 3)
        std = math.sqrt(2.0 / (3 * 3 * out_planes))
        w1 = std * jax.random.normal(k1, (out_planes, in_planes, 3, 3), jnp.float32)
        w2 = std * jax.random.normal(k2, (out_planes, out_planes, 3, 3), jnp.float32)
        # Hoisted weight re-layout: OIHW -> HWIO -> tap-major (9, Cin, Cout) bf16.
        self.w1_hwio = jnp.transpose(w1, (2, 3, 1, 0))
        self.w2_hwio = jnp.transpose(w2, (2, 3, 1, 0))
        self.w1 = self.w1_hwio.reshape(9, in_planes, out_planes).astype(jnp.bfloat16)
        self.w2 = self.w2_hwio.reshape(9, out_planes, out_planes).astype(jnp.bfloat16)
        if not self.equal:
            std_sc = math.sqrt(2.0 / out_planes)
            wsc = std_sc * jax.random.normal(
                k3, (out_planes, in_planes, 1, 1), jnp.float32)
            self.wsc_hwio = jnp.transpose(wsc, (2, 3, 1, 0))
            self.wsc = self.wsc_hwio.reshape(1, in_planes, out_planes).astype(jnp.bfloat16)
        else:
            self.wsc_hwio = None
            self.wsc = None
        self.bn1 = _bn_scale_shift(in_planes)
        self.bn2 = _bn_scale_shift(out_planes)

    def __call__(self, x_nchw):
        x = jnp.transpose(x_nchw, (0, 2, 3, 1)).astype(jnp.float32)   # -> NHWC
        N, H, W, Cin = x.shape
        s = self.stride
        Ho = (H - 1) // s + 1
        Wo = (W - 1) // s + 1

        # bn1 + relu, fused by XLA into the (needed-anyway) pad / parity-split /
        # flatten prep pass; inter-stage activations are bf16 from here on.
        s1, b1 = self.bn1
        a = jnp.maximum(x * s1.reshape(1, 1, 1, Cin) + b1.reshape(1, 1, 1, Cin), 0.0)
        planes1, Wq1 = _prep_conv_input(a.astype(jnp.bfloat16), s)

        if self.equal:
            h_rows = _fused_conv(planes1, self.w1, out_hw=(Ho, Wo), Wq=Wq1,
                                 stride=s, post_bn=self.bn2,
                                 out_dtype=jnp.bfloat16)
            res = x                                     # identity shortcut (f32)
        else:
            h_rows, sc_rows = _fused_conv(planes1, self.w1, out_hw=(Ho, Wo),
                                          Wq=Wq1, stride=s, post_bn=self.bn2,
                                          w_shortcut=self.wsc,
                                          out_dtype=jnp.bfloat16)
            res = _from_rows(sc_rows, Ho, Wo, Wq1)      # 1x1 shortcut output (f32)

        # conv2 (3x3, stride 1, pad 1) with the residual add fused into its epilogue.
        h = _from_rows(h_rows, Ho, Wo, Wq1)
        planes2, Wq2 = _prep_conv_input(h, 1)
        R2 = (Ho - 1) * Wq2 + Wo
        res_rows = _to_rows(res, Wq2, R2)
        y_rows = _fused_conv(planes2, self.w2, out_hw=(Ho, Wo), Wq=Wq2, stride=1,
                             residual=res_rows, out_dtype=jnp.float32)
        y = _from_rows(y_rows, Ho, Wo, Wq2)
        return jnp.transpose(y, (0, 3, 1, 2))           # NHWC -> NCHW


# ----------------------------------------------------------------------------
# Pure-JAX f32 reference (lax.conv) used only for a numerical sanity check.
# ----------------------------------------------------------------------------

def _reference_block(blk, x_nchw):
    dn = ('NHWC', 'HWIO', 'NHWC')
    x = jnp.transpose(x_nchw, (0, 2, 3, 1)).astype(jnp.float32)
    s1, b1 = blk.bn1
    s2, b2 = blk.bn2
    o = jnp.maximum(x * s1.reshape(1, 1, 1, -1) + b1.reshape(1, 1, 1, -1), 0.0)
    c1 = lax.conv_general_dilated(o, blk.w1_hwio, (blk.stride, blk.stride),
                                  ((1, 1), (1, 1)), dimension_numbers=dn)
    h = jnp.maximum(c1 * s2.reshape(1, 1, 1, -1) + b2.reshape(1, 1, 1, -1), 0.0)
    c2 = lax.conv_general_dilated(h, blk.w2_hwio, (1, 1),
                                  ((1, 1), (1, 1)), dimension_numbers=dn)
    if blk.equal:
        sc = x
    else:
        sc = lax.conv_general_dilated(o, blk.wsc_hwio, (blk.stride, blk.stride),
                                      ((0, 0), (0, 0)), dimension_numbers=dn)
    return jnp.transpose(c2 + sc, (0, 3, 1, 2))


# ----------------------------------------------------------------------------
# Demo
# ----------------------------------------------------------------------------

if __name__ == "__main__":
    key = jax.random.PRNGKey(0)
    kb1, kb2, kx = jax.random.split(key, 3)

    # NCHW input, exactly like the PyTorch module.
    x = jax.random.normal(kx, (2, 16, 16, 16), jnp.float32)

    blk1 = BasicBlockPallas(kb1, 16, 32, stride=2)   # in != out -> fused 1x1 shortcut
    blk2 = BasicBlockPallas(kb2, 32, 32, stride=1)   # in == out -> identity shortcut

    @jax.jit
    def forward(t):
        y1 = blk1(t)
        y2 = blk2(y1)
        return y1, y2

    y1, y2 = forward(x)
    jax.block_until_ready((y1, y2))

    assert y1.shape == (2, 32, 8, 8) and y1.dtype == jnp.float32
    assert y2.shape == (2, 32, 8, 8) and y2.dtype == jnp.float32

    # Sanity check against a pure-JAX f32 reference (bf16 MXU path -> loose tol).
    r1 = _reference_block(blk1, x)
    r2 = _reference_block(blk2, r1)
    err1 = float(jnp.max(jnp.abs(y1 - r1)) / (jnp.max(jnp.abs(r1)) + 1e-6))
    err2 = float(jnp.max(jnp.abs(y2 - r2)) / (jnp.max(jnp.abs(r2)) + 1e-6))
    assert err1 < 0.1 and err2 < 0.1, (err1, err2)

    print("KERNEL_OK")
</pallas_src>

<mosaic_0001>
module attributes {stable_mosaic.version = 11 : i64} {
  func.func @kernel(%arg0: i32, %arg1: memref<1x4x81x16xbf16, #tpu.memory_space<vmem>>, %arg2: memref<9x16x32xbf16, #tpu.memory_space<vmem>>, %arg3: memref<1x32xf32, #tpu.memory_space<vmem>>, %arg4: memref<1x32xf32, #tpu.memory_space<vmem>>, %arg5: memref<1x16x32xbf16, #tpu.memory_space<vmem>>, %arg6: memref<1x71x32xbf16, #tpu.memory_space<vmem>>, %arg7: memref<1x71x32xf32, #tpu.memory_space<vmem>>) attributes {dimension_semantics = [#tpu.dimension_semantics<parallel>], iteration_bounds = array<i64: 2>, scalar_prefetch = 0 : i64, scratch_operands = 0 : i64, tpu.core_type = #tpu.core_type<tc>, window_params = [{transform_indices = @transform_0, window_bounds = array<i64: 1, 4, 81, 16>}, {pipeline_mode = #tpu.pipeline_mode<synchronous>, transform_indices = @transform_1, window_bounds = array<i64: 9, 16, 32>}, {pipeline_mode = #tpu.pipeline_mode<synchronous>, transform_indices = @transform_2, window_bounds = array<i64: 1, 32>}, {pipeline_mode = #tpu.pipeline_mode<synchronous>, transform_indices = @transform_3, window_bounds = array<i64: 1, 32>}, {pipeline_mode = #tpu.pipeline_mode<synchronous>, transform_indices = @transform_4, window_bounds = array<i64: 1, 16, 32>}, {transform_indices = @transform_5, window_bounds = array<i64: 1, 71, 32>}, {transform_indices = @transform_6, window_bounds = array<i64: 1, 71, 32>}]} {
    %cst = arith.constant 0.000000e+00 : f32
    %0 = vector.broadcast %cst : f32 to vector<71x32xf32>
    %c0 = arith.constant 0 : index
    %c0_0 = arith.constant 0 : index
    %c0_1 = arith.constant 0 : index
    %c0_2 = arith.constant 0 : index
    %1 = vector.load %arg1[%c0, %c0_0, %c0_1, %c0_2] : memref<1x4x81x16xbf16, #tpu.memory_space<vmem>>, vector<1x1x71x16xbf16>
    %2 = vector.shape_cast %1 : vector<1x1x71x16xbf16> to vector<71x16xbf16>
    %c0_3 = arith.constant 0 : index
    %c0_4 = arith.constant 0 : index
    %c0_5 = arith.constant 0 : index
    %3 = vector.load %arg2[%c0_3, %c0_4, %c0_5] : memref<9x16x32xbf16, #tpu.memory_space<vmem>>, vector<1x16x32xbf16>
    %4 = vector.shape_cast %3 : vector<1x16x32xbf16> to vector<16x32xbf16>
    %cst_6 = arith.constant dense<0.000000e+00> : vector<71x32xf32>
    %5 = tpu.matmul %2, %4, %cst_6 {dimension_numbers = #tpu.dot_dimension_numbers<[1], [0], [0], [1], [0, 0, 1, 1], [], []>} : vector<71x16xbf16>, vector<16x32xbf16>, vector<71x32xf32> -> vector<71x32xf32>
    %6 = arith.addf %0, %5 : vector<71x32xf32>
    %c0_7 = arith.constant 0 : index
    %c1 = arith.constant 1 : index
    %c0_8 = arith.constant 0 : index
    %c0_9 = arith.constant 0 : index
    %7 = vector.load %arg1[%c0_7, %c1, %c0_8, %c0_9] : memref<1x4x81x16xbf16, #tpu.memory_space<vmem>>, vector<1x1x71x16xbf16>
    %8 = vector.shape_cast %7 : vector<1x1x71x16xbf16> to vector<71x16xbf16>
    %c1_10 = arith.constant 1 : index
    %c0_11 = arith.constant 0 : index
    %c0_12 = arith.constant 0 : index
    %9 = vector.load %arg2[%c1_10, %c0_11, %c0_12] : memref<9x16x32xbf16, #tpu.memory_space<vmem>>, vector<1x16x32xbf16>
    %10 = vector.shape_cast %9 : vector<1x16x32xbf16> to vector<16x32xbf16>
    %cst_13 = arith.constant dense<0.000000e+00> : vector<71x32xf32>
    %11 = tpu.matmul %8, %10, %cst_13 {dimension_numbers = #tpu.dot_dimension_numbers<[1], [0], [0], [1], [0, 0, 1, 1], [], []>} : vector<71x16xbf16>, vector<16x32xbf16>, vector<71x32xf32> -> vector<71x32xf32>
    %12 = arith.addf %6, %11 : vector<71x32xf32>
    %c0_14 = arith.constant 0 : index
    %c0_15 = arith.constant 0 : index
    %c1_16 = arith.constant 1 : index
    %c0_17 = arith.constant 0 : index
    %13 = vector.load %arg1[%c0_14, %c0_15, %c1_16, %c0_17] : memref<1x4x81x16xbf16, #tpu.memory_space<vmem>>, vector<1x1x71x16xbf16>
    %14 = vector.shape_cast %13 : vector<1x1x71x16xbf16> to vector<71x16xbf16>
    %c2 = arith.constant 2 : index
    %c0_18 = arith.constant 0 : index
    %c0_19 = arith.constant 0 : index
    %15 = vector.load %arg2[%c2, %c0_18, %c0_19] : memref<9x16x32xbf16, #tpu.memory_space<vmem>>, vector<1x16x32xbf16>
    %16 = vector.shape_cast %15 : vector<1x16x32xbf16> to vector<16x32xbf16>
    %cst_20 = arith.constant dense<0.000000e+00> : vector<71x32xf32>
    %17 = tpu.matmul %14, %16, %cst_20 {dimension_numbers = #tpu.dot_dimension_numbers<[1], [0], [0], [1], [0, 0, 1, 1], [], []>} : vector<71x16xbf16>, vector<16x32xbf16>, vector<71x32xf32> -> vector<71x32xf32>
    %18 = arith.addf %12, %17 : vector<71x32xf32>
    %c0_21 = arith.constant 0 : index
    %c2_22 = arith.constant 2 : index
    %c0_23 = arith.constant 0 : index
    %c0_24 = arith.constant 0 : index
    %19 = vector.load %arg1[%c0_21, %c2_22, %c0_23, %c0_24] : memref<1x4x81x16xbf16, #tpu.memory_space<vmem>>, vector<1x1x71x16xbf16>
    %20 = vector.shape_cast %19 : vector<1x1x71x16xbf16> to vector<71x16xbf16>
    %c3 = arith.constant 3 : index
    %c0_25 = arith.constant 0 : index
    %c0_26 = arith.constant 0 : index
    %21 = vector.load %arg2[%c3, %c0_25, %c0_26] : memref<9x16x32xbf16, #tpu.memory_space<vmem>>, vector<1x16x32xbf16>
    %22 = vector.shape_cast %21 : vector<1x16x32xbf16> to vector<16x32xbf16>
    %cst_27 = arith.constant dense<0.000000e+00> : vector<71x32xf32>
    %23 = tpu.matmul %20, %22, %cst_27 {dimension_numbers = #tpu.dot_dimension_numbers<[1], [0], [0], [1], [0, 0, 1, 1], [], []>} : vector<71x16xbf16>, vector<16x32xbf16>, vector<71x32xf32> -> vector<71x32xf32>
    %24 = arith.addf %18, %23 : vector<71x32xf32>
    %c0_28 = arith.constant 0 : index
    %c3_29 = arith.constant 3 : index
    %c0_30 = arith.constant 0 : index
    %c0_31 = arith.constant 0 : index
    %25 = vector.load %arg1[%c0_28, %c3_29, %c0_30, %c0_31] : memref<1x4x81x16xbf16, #tpu.memory_space<vmem>>, vector<1x1x71x16xbf16>
    %26 = vector.shape_cast %25 : vector<1x1x71x16xbf16> to vector<71x16xbf16>
    %c4 = arith.constant 4 : index
    %c0_32 = arith.constant 0 : index
    %c0_33 = arith.constant 0 : index
    %27 = vector.load %arg2[%c4, %c0_32, %c0_33] : memref<9x16x32xbf16, #tpu.memory_space<vmem>>, vector<1x16x32xbf16>
    %28 = vector.shape_cast %27 : vector<1x16x32xbf16> to vector<16x32xbf16>
    %cst_34 = arith.constant dense<0.000000e+00> : vector<71x32xf32>
    %29 = tpu.matmul %26, %28, %cst_34 {dimension_numbers = #tpu.dot_dimension_numbers<[1], [0], [0], [1], [0, 0, 1, 1], [], []>} : vector<71x16xbf16>, vector<16x32xbf16>, vector<71x32xf32> -> vector<71x32xf32>
    %30 = arith.addf %24, %29 : vector<71x32xf32>
    %c0_35 = arith.constant 0 : index
    %c2_36 = arith.constant 2 : index
    %c1_37 = arith.constant 1 : index
    %c0_38 = arith.constant 0 : index
    %31 = vector.load %arg1[%c0_35, %c2_36, %c1_37, %c0_38] : memref<1x4x81x16xbf16, #tpu.memory_space<vmem>>, vector<1x1x71x16xbf16>
    %32 = vector.shape_cast %31 : vector<1x1x71x16xbf16> to vector<71x16xbf16>
    %c5 = arith.constant 5 : index
    %c0_39 = arith.constant 0 : index
    %c0_40 = arith.constant 0 : index
    %33 = vector.load %arg2[%c5, %c0_39, %c0_40] : memref<9x16x32xbf16, #tpu.memory_space<vmem>>, vector<1x16x32xbf16>
    %34 = vector.shape_cast %33 : vector<1x16x32xbf16> to vector<16x32xbf16>
    %cst_41 = arith.constant dense<0.000000e+00> : vector<71x32xf32>
    %35 = tpu.matmul %32, %34, %cst_41 {dimension_numbers = #tpu.dot_dimension_numbers<[1], [0], [0], [1], [0, 0, 1, 1], [], []>} : vector<71x16xbf16>, vector<16x32xbf16>, vector<71x32xf32> -> vector<71x32xf32>
    %36 = arith.addf %30, %35 : vector<71x32xf32>
    %c0_42 = arith.constant 0 : index
    %c0_43 = arith.constant 0 : index
    %c9 = arith.constant 9 : index
    %c0_44 = arith.constant 0 : index
    %37 = vector.load %arg1[%c0_42, %c0_43, %c9, %c0_44] : memref<1x4x81x16xbf16, #tpu.memory_space<vmem>>, vector<1x1x71x16xbf16>
    %38 = vector.shape_cast %37 : vector<1x1x71x16xbf16> to vector<71x16xbf16>
    %c6 = arith.constant 6 : index
    %c0_45 = arith.constant 0 : index
    %c0_46 = arith.constant 0 : index
    %39 = vector.load %arg2[%c6, %c0_45, %c0_46] : memref<9x16x32xbf16, #tpu.memory_space<vmem>>, vector<1x16x32xbf16>
    %40 = vector.shape_cast %39 : vector<1x16x32xbf16> to vector<16x32xbf16>
    %cst_47 = arith.constant dense<0.000000e+00> : vector<71x32xf32>
    %41 = tpu.matmul %38, %40, %cst_47 {dimension_numbers = #tpu.dot_dimension_numbers<[1], [0], [0], [1], [0, 0, 1, 1], [], []>} : vector<71x16xbf16>, vector<16x32xbf16>, vector<71x32xf32> -> vector<71x32xf32>
    %42 = arith.addf %36, %41 : vector<71x32xf32>
    %c0_48 = arith.constant 0 : index
    %c1_49 = arith.constant 1 : index
    %c9_50 = arith.constant 9 : index
    %c0_51 = arith.constant 0 : index
    %43 = vector.load %arg1[%c0_48, %c1_49, %c9_50, %c0_51] : memref<1x4x81x16xbf16, #tpu.memory_space<vmem>>, vector<1x1x71x16xbf16>
    %44 = vector.shape_cast %43 : vector<1x1x71x16xbf16> to vector<71x16xbf16>
    %c7 = arith.constant 7 : index
    %c0_52 = arith.constant 0 : index
    %c0_53 = arith.constant 0 : index
    %45 = vector.load %arg2[%c7, %c0_52, %c0_53] : memref<9x16x32xbf16, #tpu.memory_space<vmem>>, vector<1x16x32xbf16>
    %46 = vector.shape_cast %45 : vector<1x16x32xbf16> to vector<16x32xbf16>
    %cst_54 = arith.constant dense<0.000000e+00> : vector<71x32xf32>
    %47 = tpu.matmul %44, %46, %cst_54 {dimension_numbers = #tpu.dot_dimension_numbers<[1], [0], [0], [1], [0, 0, 1, 1], [], []>} : vector<71x16xbf16>, vector<16x32xbf16>, vector<71x32xf32> -> vector<71x32xf32>
    %48 = arith.addf %42, %47 : vector<71x32xf32>
    %c0_55 = arith.constant 0 : index
    %c0_56 = arith.constant 0 : index
    %c10 = arith.constant 10 : index
    %c0_57 = arith.constant 0 : index
    %49 = vector.load %arg1[%c0_55, %c0_56, %c10, %c0_57] : memref<1x4x81x16xbf16, #tpu.memory_space<vmem>>, vector<1x1x71x16xbf16>
    %50 = vector.shape_cast %49 : vector<1x1x71x16xbf16> to vector<71x16xbf16>
    %c8 = arith.constant 8 : index
    %c0_58 = arith.constant 0 : index
    %c0_59 = arith.constant 0 : index
    %51 = vector.load %arg2[%c8, %c0_58, %c0_59] : memref<9x16x32xbf16, #tpu.memory_space<vmem>>, vector<1x16x32xbf16>
    %52 = vector.shape_cast %51 : vector<1x16x32xbf16> to vector<16x32xbf16>
    %cst_60 = arith.constant dense<0.000000e+00> : vector<71x32xf32>
    %53 = tpu.matmul %50, %52, %cst_60 {dimension_numbers = #tpu.dot_dimension_numbers<[1], [0], [0], [1], [0, 0, 1, 1], [], []>} : vector<71x16xbf16>, vector<16x32xbf16>, vector<71x32xf32> -> vector<71x32xf32>
    %54 = arith.addf %48, %53 : vector<71x32xf32>
    %c0_61 = arith.constant 0 : index
    %c0_62 = arith.constant 0 : index
    %55 = vector.load %arg3[%c0_61, %c0_62] : memref<1x32xf32, #tpu.memory_space<vmem>>, vector<1x32xf32>
    %56 = vector.broadcast %55 : vector<1x32xf32> to vector<71x32xf32>
    %57 = arith.mulf %54, %56 : vector<71x32xf32>
    %c0_63 = arith.constant 0 : index
    %c0_64 = arith.constant 0 : index
    %58 = vector.load %arg4[%c0_63, %c0_64] : memref<1x32xf32, #tpu.memory_space<vmem>>, vector<1x32xf32>
    %59 = vector.broadcast %58 : vector<1x32xf32> to vector<71x32xf32>
    %60 = arith.addf %57, %59 : vector<71x32xf32>
    %cst_65 = arith.constant 0.000000e+00 : f32
    %61 = vector.broadcast %cst_65 : f32 to vector<71x32xf32>
    %62 = arith.maximumf %60, %61 : vector<71x32xf32>
    %63 = arith.truncf %62 : vector<71x32xf32> to vector<71x32xbf16>
    %c0_66 = arith.constant 0 : index
    %c0_67 = arith.constant 0 : index
    %c0_68 = arith.constant 0 : index
    %64 = vector.load %arg6[%c0_66, %c0_67, %c0_68] : memref<1x71x32xbf16, #tpu.memory_space<vmem>>, vector<1x71x32xbf16>
    %65 = vector.shape_cast %64 : vector<1x71x32xbf16> to vector<71x32xbf16>
    %66 = vector.shape_cast %63 : vector<71x32xbf16> to vector<1x71x32xbf16>
    tpu.vector_store %arg6[%c0_66, %c0_67, %c0_68], %66 {strides = array<i32>} : memref<1x71x32xbf16, #tpu.memory_space<vmem>>, vector<1x71x32xbf16>,
    %c0_69 = arith.constant 0 : index
    %c3_70 = arith.constant 3 : index
    %c0_71 = arith.constant 0 : index
    %c0_72 = arith.constant 0 : index
    %67 = vector.load %arg1[%c0_69, %c3_70, %c0_71, %c0_72] : memref<1x4x81x16xbf16, #tpu.memory_space<vmem>>, vector<1x1x71x16xbf16>
    %68 = vector.shape_cast %67 : vector<1x1x71x16xbf16> to vector<71x16xbf16>
    %c0_73 = arith.constant 0 : index
    %c0_74 = arith.constant 0 : index
    %c0_75 = arith.constant 0 : index
    %69 = vector.load %arg5[%c0_73, %c0_74, %c0_75] : memref<1x16x32xbf16, #tpu.memory_space<vmem>>, vector<1x16x32xbf16>
    %70 = vector.shape_cast %69 : vector<1x16x32xbf16> to vector<16x32xbf16>
    %cst_76 = arith.constant dense<0.000000e+00> : vector<71x32xf32>
    %71 = tpu.matmul %68, %70, %cst_76 {dimension_numbers = #tpu.dot_dimension_numbers<[1], [0], [0], [1], [0, 0, 1, 1], [], []>} : vector<71x16xbf16>, vector<16x32xbf16>, vector<71x32xf32> -> vector<71x32xf32>
    %c0_77 = arith.constant 0 : index
    %c0_78 = arith.constant 0 : index
    %c0_79 = arith.constant 0 : index
    %72 = vector.load %arg7[%c0_77, %c0_78, %c0_79] : memref<1x71x32xf32, #tpu.memory_space<vmem>>, vector<1x71x32xf32>
    %73 = vector.shape_cast %72 : vector<1x71x32xf32> to vector<71x32xf32>
    %74 = vector.shape_cast %71 : vector<71x32xf32> to vector<1x71x32xf32>
    tpu.vector_store %arg7[%c0_77, %c0_78, %c0_79], %74 {strides = array<i32>} : memref<1x71x32xf32, #tpu.memory_space<vmem>>, vector<1x71x32xf32>,
    return
  }
  func.func @transform_0(%arg0: i32) -> (i32, i32, i32, i32) {
    %c0_i32 = arith.constant 0 : i32
    %c0_i32_0 = arith.constant 0 : i32
    %c0_i32_1 = arith.constant 0 : i32
    %c0_i32_2 = arith.constant 0 : i32
    return %arg0, %c0_i32, %c0_i32_0, %c0_i32_1 : i32, i32, i32, i32
  }
  func.func @transform_1(%arg0: i32) -> (i32, i32, i32) {
    %c0_i32 = arith.constant 0 : i32
    %c0_i32_0 = arith.constant 0 : i32
    %c0_i32_1 = arith.constant 0 : i32
    %c0_i32_2 = arith.constant 0 : i32
    return %c0_i32, %c0_i32_0, %c0_i32_1 : i32, i32, i32
  }
  func.func @transform_2(%arg0: i32) -> (i32, i32) {
    %c0_i32 = arith.constant 0 : i32
    %c0_i32_0 = arith.constant 0 : i32
    %c0_i32_1 = arith.constant 0 : i32
    return %c0_i32, %c0_i32_0 : i32, i32
  }
  func.func @transform_3(%arg0: i32) -> (i32, i32) {
    %c0_i32 = arith.constant 0 : i32
    %c0_i32_0 = arith.constant 0 : i32
    %c0_i32_1 = arith.constant 0 : i32
    return %c0_i32, %c0_i32_0 : i32, i32
  }
  func.func @transform_4(%arg0: i32) -> (i32, i32, i32) {
    %c0_i32 = arith.constant 0 : i32
    %c0_i32_0 = arith.constant 0 : i32
    %c0_i32_1 = arith.constant 0 : i32
    %c0_i32_2 = arith.constant 0 : i32
    return %c0_i32, %c0_i32_0, %c0_i32_1 : i32, i32, i32
  }
  func.func @transform_5(%arg0: i32) -> (i32, i32, i32) {
    %c0_i32 = arith.constant 0 : i32
    %c0_i32_0 = arith.constant 0 : i32
    %c0_i32_1 = arith.constant 0 : i32
    return %arg0, %c0_i32, %c0_i32_0 : i32, i32, i32
  }
  func.func @transform_6(%arg0: i32) -> (i32, i32, i32) {
    %c0_i32 = arith.constant 0 : i32
    %c0_i32_0 = arith.constant 0 : i32
    %c0_i32_1 = arith.constant 0 : i32
    return %arg0, %c0_i32, %c0_i32_0 : i32, i32, i32
  }
}

module attributes {stable_mosaic.version = 11 : i64} {
  func.func @kernel(%arg0: i32, %arg1: memref<1x1x100x32xbf16, #tpu.memory_space<vmem>>, %arg2: memref<9x32x32xbf16, #tpu.memory_space<vmem>>, %arg3: memref<1x78x32xf32, #tpu.memory_space<vmem>>, %arg4: memref<1x78x32xf32, #tpu.memory_space<vmem>>) attributes {dimension_semantics = [#tpu.dimension_semantics<parallel>], iteration_bounds = array<i64: 2>, scalar_prefetch = 0 : i64, scratch_operands = 0 : i64, tpu.core_type = #tpu.core_type<tc>, window_params = [{transform_indices = @transform_0, window_bounds = array<i64: 1, 1, 100, 32>}, {pipeline_mode = #tpu.pipeline_mode<synchronous>, transform_indices = @transform_1, window_bounds = array<i64: 9, 32, 32>}, {transform_indices = @transform_2, window_bounds = array<i64: 1, 78, 32>}, {transform_indices = @transform_3, window_bounds = array<i64: 1, 78, 32>}]} {
    %cst = arith.constant 0.000000e+00 : f32
    %0 = vector.broadcast %cst : f32 to vector<78x32xf32>
    %c0 = arith.constant 0 : index
    %c0_0 = arith.constant 0 : index
    %c0_1 = arith.constant 0 : index
    %c0_2 = arith.constant 0 : index
    %1 = vector.load %arg1[%c0, %c0_0, %c0_1, %c0_2] : memref<1x1x100x32xbf16, #tpu.memory_space<vmem>>, vector<1x1x78x32xbf16>
    %2 = vector.shape_cast %1 : vector<1x1x78x32xbf16> to vector<78x32xbf16>
    %c0_3 = arith.constant 0 : index
    %c0_4 = arith.constant 0 : index
    %c0_5 = arith.constant 0 : index
    %3 = vector.load %arg2[%c0_3, %c0_4, %c0_5] : memref<9x32x32xbf16, #tpu.memory_space<vmem>>, vector<1x32x32xbf16>
    %4 = vector.shape_cast %3 : vector<1x32x32xbf16> to vector<32x32xbf16>
    %cst_6 = arith.constant dense<0.000000e+00> : vector<78x32xf32>
    %5 = tpu.matmul %2, %4, %cst_6 {dimension_numbers = #tpu.dot_dimension_numbers<[1], [0], [0], [1], [0, 0, 1, 1], [], []>} : vector<78x32xbf16>, vector<32x32xbf16>, vector<78x32xf32> -> vector<78x32xf32>
    %6 = arith.addf %0, %5 : vector<78x32xf32>
    %c0_7 = arith.constant 0 : index
    %c0_8 = arith.constant 0 : index
    %c1 = arith.constant 1 : index
    %c0_9 = arith.constant 0 : index
    %7 = vector.load %arg1[%c0_7, %c0_8, %c1, %c0_9] : memref<1x1x100x32xbf16, #tpu.memory_space<vmem>>, vector<1x1x78x32xbf16>
    %8 = vector.shape_cast %7 : vector<1x1x78x32xbf16> to vector<78x32xbf16>
    %c1_10 = arith.constant 1 : index
    %c0_11 = arith.constant 0 : index
    %c0_12 = arith.constant 0 : index
    %9 = vector.load %arg2[%c1_10, %c0_11, %c0_12] : memref<9x32x32xbf16, #tpu.memory_space<vmem>>, vector<1x32x32xbf16>
    %10 = vector.shape_cast %9 : vector<1x32x32xbf16> to vector<32x32xbf16>
    %cst_13 = arith.constant dense<0.000000e+00> : vector<78x32xf32>
    %11 = tpu.matmul %8, %10, %cst_13 {dimension_numbers = #tpu.dot_dimension_numbers<[1], [0], [0], [1], [0, 0, 1, 1], [], []>} : vector<78x32xbf16>, vector<32x32xbf16>, vector<78x32xf32> -> vector<78x32xf32>
    %12 = arith.addf %6, %11 : vector<78x32xf32>
    %c0_14 = arith.constant 0 : index
    %c0_15 = arith.constant 0 : index
    %c2 = arith.constant 2 : index
    %c0_16 = arith.constant 0 : index
    %13 = vector.load %arg1[%c0_14, %c0_15, %c2, %c0_16] : memref<1x1x100x32xbf16, #tpu.memory_space<vmem>>, vector<1x1x78x32xbf16>
    %14 = vector.shape_cast %13 : vector<1x1x78x32xbf16> to vector<78x32xbf16>
    %c2_17 = arith.constant 2 : index
    %c0_18 = arith.constant 0 : index
    %c0_19 = arith.constant 0 : index
    %15 = vector.load %arg2[%c2_17, %c0_18, %c0_19] : memref<9x32x32xbf16, #tpu.memory_space<vmem>>, vector<1x32x32xbf16>
    %16 = vector.shape_cast %15 : vector<1x32x32xbf16> to vector<32x32xbf16>
    %cst_20 = arith.constant dense<0.000000e+00> : vector<78x32xf32>
    %17 = tpu.matmul %14, %16, %cst_20 {dimension_numbers = #tpu.dot_dimension_numbers<[1], [0], [0], [1], [0, 0, 1, 1], [], []>} : vector<78x32xbf16>, vector<32x32xbf16>, vector<78x32xf32> -> vector<78x32xf32>
    %18 = arith.addf %12, %17 : vector<78x32xf32>
    %c0_21 = arith.constant 0 : index
    %c0_22 = arith.constant 0 : index
    %c10 = arith.constant 10 : index
    %c0_23 = arith.constant 0 : index
    %19 = vector.load %arg1[%c0_21, %c0_22, %c10, %c0_23] : memref<1x1x100x32xbf16, #tpu.memory_space<vmem>>, vector<1x1x78x32xbf16>
    %20 = vector.shape_cast %19 : vector<1x1x78x32xbf16> to vector<78x32xbf16>
    %c3 = arith.constant 3 : index
    %c0_24 = arith.constant 0 : index
    %c0_25 = arith.constant 0 : index
    %21 = vector.load %arg2[%c3, %c0_24, %c0_25] : memref<9x32x32xbf16, #tpu.memory_space<vmem>>, vector<1x32x32xbf16>
    %22 = vector.shape_cast %21 : vector<1x32x32xbf16> to vector<32x32xbf16>
    %cst_26 = arith.constant dense<0.000000e+00> : vector<78x32xf32>
    %23 = tpu.matmul %20, %22, %cst_26 {dimension_numbers = #tpu.dot_dimension_numbers<[1], [0], [0], [1], [0, 0, 1, 1], [], []>} : vector<78x32xbf16>, vector<32x32xbf16>, vector<78x32xf32> -> vector<78x32xf32>
    %24 = arith.addf %18, %23 : vector<78x32xf32>
    %c0_27 = arith.constant 0 : index
    %c0_28 = arith.constant 0 : index
    %c11 = arith.constant 11 : index
    %c0_29 = arith.constant 0 : index
    %25 = vector.load %arg1[%c0_27, %c0_28, %c11, %c0_29] : memref<1x1x100x32xbf16, #tpu.memory_space<vmem>>, vector<1x1x78x32xbf16>
    %26 = vector.shape_cast %25 : vector<1x1x78x32xbf16> to vector<78x32xbf16>
    %c4 = arith.constant 4 : index
    %c0_30 = arith.constant 0 : index
    %c0_31 = arith.constant 0 : index
    %27 = vector.load %arg2[%c4, %c0_30, %c0_31] : memref<9x32x32xbf16, #tpu.memory_space<vmem>>, vector<1x32x32xbf16>
    %28 = vector.shape_cast %27 : vector<1x32x32xbf16> to vector<32x32xbf16>
    %cst_32 = arith.constant dense<0.000000e+00> : vector<78x32xf32>
    %29 = tpu.matmul %26, %28, %cst_32 {dimension_numbers = #tpu.dot_dimension_numbers<[1], [0], [0], [1], [0, 0, 1, 1], [], []>} : vector<78x32xbf16>, vector<32x32xbf16>, vector<78x32xf32> -> vector<78x32xf32>
    %30 = arith.addf %24, %29 : vector<78x32xf32>
    %c0_33 = arith.constant 0 : index
    %c0_34 = arith.constant 0 : index
    %c12 = arith.constant 12 : index
    %c0_35 = arith.constant 0 : index
    %31 = vector.load %arg1[%c0_33, %c0_34, %c12, %c0_35] : memref<1x1x100x32xbf16, #tpu.memory_space<vmem>>, vector<1x1x78x32xbf16>
    %32 = vector.shape_cast %31 : vector<1x1x78x32xbf16> to vector<78x32xbf16>
    %c5 = arith.constant 5 : index
    %c0_36 = arith.constant 0 : index
    %c0_37 = arith.constant 0 : index
    %33 = vector.load %arg2[%c5, %c0_36, %c0_37] : memref<9x32x32xbf16, #tpu.memory_space<vmem>>, vector<1x32x32xbf16>
    %34 = vector.shape_cast %33 : vector<1x32x32xbf16> to vector<32x32xbf16>
    %cst_38 = arith.constant dense<0.000000e+00> : vector<78x32xf32>
    %35 = tpu.matmul %32, %34, %cst_38 {dimension_numbers = #tpu.dot_dimension_numbers<[1], [0], [0], [1], [0, 0, 1, 1], [], []>} : vector<78x32xbf16>, vector<32x32xbf16>, vector<78x32xf32> -> vector<78x32xf32>
    %36 = arith.addf %30, %35 : vector<78x32xf32>
    %c0_39 = arith.constant 0 : index
    %c0_40 = arith.constant 0 : index
    %c20 = arith.constant 20 : index
    %c0_41 = arith.constant 0 : index
    %37 = vector.load %arg1[%c0_39, %c0_40, %c20, %c0_41] : memref<1x1x100x32xbf16, #tpu.memory_space<vmem>>, vector<1x1x78x32xbf16>
    %38 = vector.shape_cast %37 : vector<1x1x78x32xbf16> to vector<78x32xbf16>
    %c6 = arith.constant 6 : index
    %c0_42 = arith.constant 0 : index
    %c0_43 = arith.constant 0 : index
    %39 = vector.load %arg2[%c6, %c0_42, %c0_43] : memref<9x32x32xbf16, #tpu.memory_space<vmem>>, vector<1x32x32xbf16>
    %40 = vector.shape_cast %39 : vector<1x32x32xbf16> to vector<32x32xbf16>
    %cst_44 = arith.constant dense<0.000000e+00> : vector<78x32xf32>
    %41 = tpu.matmul %38, %40, %cst_44 {dimension_numbers = #tpu.dot_dimension_numbers<[1], [0], [0], [1], [0, 0, 1, 1], [], []>} : vector<78x32xbf16>, vector<32x32xbf16>, vector<78x32xf32> -> vector<78x32xf32>
    %42 = arith.addf %36, %41 : vector<78x32xf32>
    %c0_45 = arith.constant 0 : index
    %c0_46 = arith.constant 0 : index
    %c21 = arith.constant 21 : index
    %c0_47 = arith.constant 0 : index
    %43 = vector.load %arg1[%c0_45, %c0_46, %c21, %c0_47] : memref<1x1x100x32xbf16, #tpu.memory_space<vmem>>, vector<1x1x78x32xbf16>
    %44 = vector.shape_cast %43 : vector<1x1x78x32xbf16> to vector<78x32xbf16>
    %c7 = arith.constant 7 : index
    %c0_48 = arith.constant 0 : index
    %c0_49 = arith.constant 0 : index
    %45 = vector.load %arg2[%c7, %c0_48, %c0_49] : memref<9x32x32xbf16, #tpu.memory_space<vmem>>, vector<1x32x32xbf16>
    %46 = vector.shape_cast %45 : vector<1x32x32xbf16> to vector<32x32xbf16>
    %cst_50 = arith.constant dense<0.000000e+00> : vector<78x32xf32>
    %47 = tpu.matmul %44, %46, %cst_50 {dimension_numbers = #tpu.dot_dimension_numbers<[1], [0], [0], [1], [0, 0, 1, 1], [], []>} : vector<78x32xbf16>, vector<32x32xbf16>, vector<78x32xf32> -> vector<78x32xf32>
    %48 = arith.addf %42, %47 : vector<78x32xf32>
    %c0_51 = arith.constant 0 : index
    %c0_52 = arith.constant 0 : index
    %c22 = arith.constant 22 : index
    %c0_53 = arith.constant 0 : index
    %49 = vector.load %arg1[%c0_51, %c0_52, %c22, %c0_53] : memref<1x1x100x32xbf16, #tpu.memory_space<vmem>>, vector<1x1x78x32xbf16>
    %50 = vector.shape_cast %49 : vector<1x1x78x32xbf16> to vector<78x32xbf16>
    %c8 = arith.constant 8 : index
    %c0_54 = arith.constant 0 : index
    %c0_55 = arith.constant 0 : index
    %51 = vector.load %arg2[%c8, %c0_54, %c0_55] : memref<9x32x32xbf16, #tpu.memory_space<vmem>>, vector<1x32x32xbf16>
    %52 = vector.shape_cast %51 : vector<1x32x32xbf16> to vector<32x32xbf16>
    %cst_56 = arith.constant dense<0.000000e+00> : vector<78x32xf32>
    %53 = tpu.matmul %50, %52, %cst_56 {dimension_numbers = #tpu.dot_dimension_numbers<[1], [0], [0], [1], [0, 0, 1, 1], [], []>} : vector<78x32xbf16>, vector<32x32xbf16>, vector<78x32xf32> -> vector<78x32xf32>
    %54 = arith.addf %48, %53 : vector<78x32xf32>
    %c0_57 = arith.constant 0 : index
    %c0_58 = arith.constant 0 : index
    %c0_59 = arith.constant 0 : index
    %55 = vector.load %arg3[%c0_57, %c0_58, %c0_59] : memref<1x78x32xf32, #tpu.memory_space<vmem>>, vector<1x78x32xf32>
    %56 = vector.shape_cast %55 : vector<1x78x32xf32> to vector<78x32xf32>
    %57 = arith.addf %54, %56 : vector<78x32xf32>
    %c0_60 = arith.constant 0 : index
    %c0_61 = arith.constant 0 : index
    %c0_62 = arith.constant 0 : index
    %58 = vector.load %arg4[%c0_60, %c0_61, %c0_62] : memref<1x78x32xf32, #tpu.memory_space<vmem>>, vector<1x78x32xf32>
    %59 = vector.shape_cast %58 : vector<1x78x32xf32> to vector<78x32xf32>
    %60 = vector.shape_cast %57 : vector<78x32xf32> to vector<1x78x32xf32>
    tpu.vector_store %arg4[%c0_60, %c0_61, %c0_62], %60 {strides = array<i32>} : memref<1x78x32xf32, #tpu.memory_space<vmem>>, vector<1x78x32xf32>,
    return
  }
  func.func @transform_0(%arg0: i32) -> (i32, i32, i32, i32) {
    %c0_i32 = arith.constant 0 : i32
    %c0_i32_0 = arith.constant 0 : i32
    %c0_i32_1 = arith.constant 0 : i32
    %c0_i32_2 = arith.constant 0 : i32
    return %arg0, %c0_i32, %c0_i32_0, %c0_i32_1 : i32, i32, i32, i32
  }
  func.func @transform_1(%arg0: i32) -> (i32, i32, i32) {
    %c0_i32 = arith.constant 0 : i32
    %c0_i32_0 = arith.constant 0 : i32
    %c0_i32_1 = arith.constant 0 : i32
    %c0_i32_2 = arith.constant 0 : i32
    return %c0_i32, %c0_i32_0, %c0_i32_1 : i32, i32, i32
  }
  func.func @transform_2(%arg0: i32) -> (i32, i32, i32) {
    %c0_i32 = arith.constant 0 : i32
    %c0_i32_0 = arith.constant 0 : i32
    %c0_i32_1 = arith.constant 0 : i32
    return %arg0, %c0_i32, %c0_i32_0 : i32, i32, i32
  }
  func.func @transform_3(%arg0: i32) -> (i32, i32, i32) {
    %c0_i32 = arith.constant 0 : i32
    %c0_i32_0 = arith.constant 0 : i32
    %c0_i32_1 = arith.constant 0 : i32
    return %arg0, %c0_i32, %c0_i32_0 : i32, i32, i32
  }
}

module attributes {stable_mosaic.version = 11 : i64} {
  func.func @kernel(%arg0: i32, %arg1: memref<1x1x100x32xbf16, #tpu.memory_space<vmem>>, %arg2: memref<9x32x32xbf16, #tpu.memory_space<vmem>>, %arg3: memref<1x32xf32, #tpu.memory_space<vmem>>, %arg4: memref<1x32xf32, #tpu.memory_space<vmem>>, %arg5: memref<1x78x32xbf16, #tpu.memory_space<vmem>>) attributes {dimension_semantics = [#tpu.dimension_semantics<parallel>], iteration_bounds = array<i64: 2>, scalar_prefetch = 0 : i64, scratch_operands = 0 : i64, tpu.core_type = #tpu.core_type<tc>, window_params = [{transform_indices = @transform_0, window_bounds = array<i64: 1, 1, 100, 32>}, {pipeline_mode = #tpu.pipeline_mode<synchronous>, transform_indices = @transform_1, window_bounds = array<i64: 9, 32, 32>}, {pipeline_mode = #tpu.pipeline_mode<synchronous>, transform_indices = @transform_2, window_bounds = array<i64: 1, 32>}, {pipeline_mode = #tpu.pipeline_mode<synchronous>, transform_indices = @transform_3, window_bounds = array<i64: 1, 32>}, {transform_indices = @transform_4, window_bounds = array<i64: 1, 78, 32>}]} {
    %cst = arith.constant 0.000000e+00 : f32
    %0 = vector.broadcast %cst : f32 to vector<78x32xf32>
    %c0 = arith.constant 0 : index
    %c0_0 = arith.constant 0 : index
    %c0_1 = arith.constant 0 : index
    %c0_2 = arith.constant 0 : index
    %1 = vector.load %arg1[%c0, %c0_0, %c0_1, %c0_2] : memref<1x1x100x32xbf16, #tpu.memory_space<vmem>>, vector<1x1x78x32xbf16>
    %2 = vector.shape_cast %1 : vector<1x1x78x32xbf16> to vector<78x32xbf16>
    %c0_3 = arith.constant 0 : index
    %c0_4 = arith.constant 0 : index
    %c0_5 = arith.constant 0 : index
    %3 = vector.load %arg2[%c0_3, %c0_4, %c0_5] : memref<9x32x32xbf16, #tpu.memory_space<vmem>>, vector<1x32x32xbf16>
    %4 = vector.shape_cast %3 : vector<1x32x32xbf16> to vector<32x32xbf16>
    %cst_6 = arith.constant dense<0.000000e+00> : vector<78x32xf32>
    %5 = tpu.matmul %2, %4, %cst_6 {dimension_numbers = #tpu.dot_dimension_numbers<[1], [0], [0], [1], [0, 0, 1, 1], [], []>} : vector<78x32xbf16>, vector<32x32xbf16>, vector<78x32xf32> -> vector<78x32xf32>
    %6 = arith.addf %0, %5 : vector<78x32xf32>
    %c0_7 = arith.constant 0 : index
    %c0_8 = arith.constant 0 : index
    %c1 = arith.constant 1 : index
    %c0_9 = arith.constant 0 : index
    %7 = vector.load %arg1[%c0_7, %c0_8, %c1, %c0_9] : memref<1x1x100x32xbf16, #tpu.memory_space<vmem>>, vector<1x1x78x32xbf16>
    %8 = vector.shape_cast %7 : vector<1x1x78x32xbf16> to vector<78x32xbf16>
    %c1_10 = arith.constant 1 : index
    %c0_11 = arith.constant 0 : index
    %c0_12 = arith.constant 0 : index
    %9 = vector.load %arg2[%c1_10, %c0_11, %c0_12] : memref<9x32x32xbf16, #tpu.memory_space<vmem>>, vector<1x32x32xbf16>
    %10 = vector.shape_cast %9 : vector<1x32x32xbf16> to vector<32x32xbf16>
    %cst_13 = arith.constant dense<0.000000e+00> : vector<78x32xf32>
    %11 = tpu.matmul %8, %10, %cst_13 {dimension_numbers = #tpu.dot_dimension_numbers<[1], [0], [0], [1], [0, 0, 1, 1], [], []>} : vector<78x32xbf16>, vector<32x32xbf16>, vector<78x32xf32> -> vector<78x32xf32>
    %12 = arith.addf %6, %11 : vector<78x32xf32>
    %c0_14 = arith.constant 0 : index
    %c0_15 = arith.constant 0 : index
    %c2 = arith.constant 2 : index
    %c0_16 = arith.constant 0 : index
    %13 = vector.load %arg1[%c0_14, %c0_15, %c2, %c0_16] : memref<1x1x100x32xbf16, #tpu.memory_space<vmem>>, vector<1x1x78x32xbf16>
    %14 = vector.shape_cast %13 : vector<1x1x78x32xbf16> to vector<78x32xbf16>
    %c2_17 = arith.constant 2 : index
    %c0_18 = arith.constant 0 : index
    %c0_19 = arith.constant 0 : index
    %15 = vector.load %arg2[%c2_17, %c0_18, %c0_19] : memref<9x32x32xbf16, #tpu.memory_space<vmem>>, vector<1x32x32xbf16>
    %16 = vector.shape_cast %15 : vector<1x32x32xbf16> to vector<32x32xbf16>
    %cst_20 = arith.constant dense<0.000000e+00> : vector<78x32xf32>
    %17 = tpu.matmul %14, %16, %cst_20 {dimension_numbers = #tpu.dot_dimension_numbers<[1], [0], [0], [1], [0, 0, 1, 1], [], []>} : vector<78x32xbf16>, vector<32x32xbf16>, vector<78x32xf32> -> vector<78x32xf32>
    %18 = arith.addf %12, %17 : vector<78x32xf32>
    %c0_21 = arith.constant 0 : index
    %c0_22 = arith.constant 0 : index
    %c10 = arith.constant 10 : index
    %c0_23 = arith.constant 0 : index
    %19 = vector.load %arg1[%c0_21, %c0_22, %c10, %c0_23] : memref<1x1x100x32xbf16, #tpu.memory_space<vmem>>, vector<1x1x78x32xbf16>
    %20 = vector.shape_cast %19 : vector<1x1x78x32xbf16> to vector<78x32xbf16>
    %c3 = arith.constant 3 : index
    %c0_24 = arith.constant 0 : index
    %c0_25 = arith.constant 0 : index
    %21 = vector.load %arg2[%c3, %c0_24, %c0_25] : memref<9x32x32xbf16, #tpu.memory_space<vmem>>, vector<1x32x32xbf16>
    %22 = vector.shape_cast %21 : vector<1x32x32xbf16> to vector<32x32xbf16>
    %cst_26 = arith.constant dense<0.000000e+00> : vector<78x32xf32>
    %23 = tpu.matmul %20, %22, %cst_26 {dimension_numbers = #tpu.dot_dimension_numbers<[1], [0], [0], [1], [0, 0, 1, 1], [], []>} : vector<78x32xbf16>, vector<32x32xbf16>, vector<78x32xf32> -> vector<78x32xf32>
    %24 = arith.addf %18, %23 : vector<78x32xf32>
    %c0_27 = arith.constant 0 : index
    %c0_28 = arith.constant 0 : index
    %c11 = arith.constant 11 : index
    %c0_29 = arith.constant 0 : index
    %25 = vector.load %arg1[%c0_27, %c0_28, %c11, %c0_29] : memref<1x1x100x32xbf16, #tpu.memory_space<vmem>>, vector<1x1x78x32xbf16>
    %26 = vector.shape_cast %25 : vector<1x1x78x32xbf16> to vector<78x32xbf16>
    %c4 = arith.constant 4 : index
    %c0_30 = arith.constant 0 : index
    %c0_31 = arith.constant 0 : index
    %27 = vector.load %arg2[%c4, %c0_30, %c0_31] : memref<9x32x32xbf16, #tpu.memory_space<vmem>>, vector<1x32x32xbf16>
    %28 = vector.shape_cast %27 : vector<1x32x32xbf16> to vector<32x32xbf16>
    %cst_32 = arith.constant dense<0.000000e+00> : vector<78x32xf32>
    %29 = tpu.matmul %26, %28, %cst_32 {dimension_numbers = #tpu.dot_dimension_numbers<[1], [0], [0], [1], [0, 0, 1, 1], [], []>} : vector<78x32xbf16>, vector<32x32xbf16>, vector<78x32xf32> -> vector<78x32xf32>
    %30 = arith.addf %24, %29 : vector<78x32xf32>
    %c0_33 = arith.constant 0 : index
    %c0_34 = arith.constant 0 : index
    %c12 = arith.constant 12 : index
    %c0_35 = arith.constant 0 : index
    %31 = vector.load %arg1[%c0_33, %c0_34, %c12, %c0_35] : memref<1x1x100x32xbf16, #tpu.memory_space<vmem>>, vector<1x1x78x32xbf16>
    %32 = vector.shape_cast %31 : vector<1x1x78x32xbf16> to vector<78x32xbf16>
    %c5 = arith.constant 5 : index
    %c0_36 = arith.constant 0 : index
    %c0_37 = arith.constant 0 : index
    %33 = vector.load %arg2[%c5, %c0_36, %c0_37] : memref<9x32x32xbf16, #tpu.memory_space<vmem>>, vector<1x32x32xbf16>
    %34 = vector.shape_cast %33 : vector<1x32x32xbf16> to vector<32x32xbf16>
    %cst_38 = arith.constant dense<0.000000e+00> : vector<78x32xf32>
    %35 = tpu.matmul %32, %34, %cst_38 {dimension_numbers = #tpu.dot_dimension_numbers<[1], [0], [0], [1], [0, 0, 1, 1], [], []>} : vector<78x32xbf16>, vector<32x32xbf16>, vector<78x32xf32> -> vector<78x32xf32>
    %36 = arith.addf %30, %35 : vector<78x32xf32>
    %c0_39 = arith.constant 0 : index
    %c0_40 = arith.constant 0 : index
    %c20 = arith.constant 20 : index
    %c0_41 = arith.constant 0 : index
    %37 = vector.load %arg1[%c0_39, %c0_40, %c20, %c0_41] : memref<1x1x100x32xbf16, #tpu.memory_space<vmem>>, vector<1x1x78x32xbf16>
    %38 = vector.shape_cast %37 : vector<1x1x78x32xbf16> to vector<78x32xbf16>
    %c6 = arith.constant 6 : index
    %c0_42 = arith.constant 0 : index
    %c0_43 = arith.constant 0 : index
    %39 = vector.load %arg2[%c6, %c0_42, %c0_43] : memref<9x32x32xbf16, #tpu.memory_space<vmem>>, vector<1x32x32xbf16>
    %40 = vector.shape_cast %39 : vector<1x32x32xbf16> to vector<32x32xbf16>
    %cst_44 = arith.constant dense<0.000000e+00> : vector<78x32xf32>
    %41 = tpu.matmul %38, %40, %cst_44 {dimension_numbers = #tpu.dot_dimension_numbers<[1], [0], [0], [1], [0, 0, 1, 1], [], []>} : vector<78x32xbf16>, vector<32x32xbf16>, vector<78x32xf32> -> vector<78x32xf32>
    %42 = arith.addf %36, %41 : vector<78x32xf32>
    %c0_45 = arith.constant 0 : index
    %c0_46 = arith.constant 0 : index
    %c21 = arith.constant 21 : index
    %c0_47 = arith.constant 0 : index
    %43 = vector.load %arg1[%c0_45, %c0_46, %c21, %c0_47] : memref<1x1x100x32xbf16, #tpu.memory_space<vmem>>, vector<1x1x78x32xbf16>
    %44 = vector.shape_cast %43 : vector<1x1x78x32xbf16> to vector<78x32xbf16>
    %c7 = arith.constant 7 : index
    %c0_48 = arith.constant 0 : index
    %c0_49 = arith.constant 0 : index
    %45 = vector.load %arg2[%c7, %c0_48, %c0_49] : memref<9x32x32xbf16, #tpu.memory_space<vmem>>, vector<1x32x32xbf16>
    %46 = vector.shape_cast %45 : vector<1x32x32xbf16> to vector<32x32xbf16>
    %cst_50 = arith.constant dense<0.000000e+00> : vector<78x32xf32>
    %47 = tpu.matmul %44, %46, %cst_50 {dimension_numbers = #tpu.dot_dimension_numbers<[1], [0], [0], [1], [0, 0, 1, 1], [], []>} : vector<78x32xbf16>, vector<32x32xbf16>, vector<78x32xf32> -> vector<78x32xf32>
    %48 = arith.addf %42, %47 : vector<78x32xf32>
    %c0_51 = arith.constant 0 : index
    %c0_52 = arith.constant 0 : index
    %c22 = arith.constant 22 : index
    %c0_53 = arith.constant 0 : index
    %49 = vector.load %arg1[%c0_51, %c0_52, %c22, %c0_53] : memref<1x1x100x32xbf16, #tpu.memory_space<vmem>>, vector<1x1x78x32xbf16>
    %50 = vector.shape_cast %49 : vector<1x1x78x32xbf16> to vector<78x32xbf16>
    %c8 = arith.constant 8 : index
    %c0_54 = arith.constant 0 : index
    %c0_55 = arith.constant 0 : index
    %51 = vector.load %arg2[%c8, %c0_54, %c0_55] : memref<9x32x32xbf16, #tpu.memory_space<vmem>>, vector<1x32x32xbf16>
    %52 = vector.shape_cast %51 : vector<1x32x32xbf16> to vector<32x32xbf16>
    %cst_56 = arith.constant dense<0.000000e+00> : vector<78x32xf32>
    %53 = tpu.matmul %50, %52, %cst_56 {dimension_numbers = #tpu.dot_dimension_numbers<[1], [0], [0], [1], [0, 0, 1, 1], [], []>} : vector<78x32xbf16>, vector<32x32xbf16>, vector<78x32xf32> -> vector<78x32xf32>
    %54 = arith.addf %48, %53 : vector<78x32xf32>
    %c0_57 = arith.constant 0 : index
    %c0_58 = arith.constant 0 : index
    %55 = vector.load %arg3[%c0_57, %c0_58] : memref<1x32xf32, #tpu.memory_space<vmem>>, vector<1x32xf32>
    %56 = vector.broadcast %55 : vector<1x32xf32> to vector<78x32xf32>
    %57 = arith.mulf %54, %56 : vector<78x32xf32>
    %c0_59 = arith.constant 0 : index
    %c0_60 = arith.constant 0 : index
    %58 = vector.load %arg4[%c0_59, %c0_60] : memref<1x32xf32, #tpu.memory_space<vmem>>, vector<1x32xf32>
    %59 = vector.broadcast %58 : vector<1x32xf32> to vector<78x32xf32>
    %60 = arith.addf %57, %59 : vector<78x32xf32>
    %cst_61 = arith.constant 0.000000e+00 : f32
    %61 = vector.broadcast %cst_61 : f32 to vector<78x32xf32>
    %62 = arith.maximumf %60, %61 : vector<78x32xf32>
    %63 = arith.truncf %62 : vector<78x32xf32> to vector<78x32xbf16>
    %c0_62 = arith.constant 0 : index
    %c0_63 = arith.constant 0 : index
    %c0_64 = arith.constant 0 : index
    %64 = vector.load %arg5[%c0_62, %c0_63, %c0_64] : memref<1x78x32xbf16, #tpu.memory_space<vmem>>, vector<1x78x32xbf16>
    %65 = vector.shape_cast %64 : vector<1x78x32xbf16> to vector<78x32xbf16>
    %66 = vector.shape_cast %63 : vector<78x32xbf16> to vector<1x78x32xbf16>
    tpu.vector_store %arg5[%c0_62, %c0_63, %c0_64], %66 {strides = array<i32>} : memref<1x78x32xbf16, #tpu.memory_space<vmem>>, vector<1x78x32xbf16>,
    return
  }
  func.func @transform_0(%arg0: i32) -> (i32, i32, i32, i32) {
    %c0_i32 = arith.constant 0 : i32
    %c0_i32_0 = arith.constant 0 : i32
    %c0_i32_1 = arith.constant 0 : i32
    %c0_i32_2 = arith.constant 0 : i32
    return %arg0, %c0_i32, %c0_i32_0, %c0_i32_1 : i32, i32, i32, i32
  }
  func.func @transform_1(%arg0: i32) -> (i32, i32, i32) {
    %c0_i32 = arith.constant 0 : i32
    %c0_i32_0 = arith.constant 0 : i32
    %c0_i32_1 = arith.constant 0 : i32
    %c0_i32_2 = arith.constant 0 : i32
    return %c0_i32, %c0_i32_0, %c0_i32_1 : i32, i32, i32
  }
  func.func @transform_2(%arg0: i32) -> (i32, i32) {
    %c0_i32 = arith.constant 0 : i32
    %c0_i32_0 = arith.constant 0 : i32
    %c0_i32_1 = arith.constant 0 : i32
    return %c0_i32, %c0_i32_0 : i32, i32
  }
  func.func @transform_3(%arg0: i32) -> (i32, i32) {
    %c0_i32 = arith.constant 0 : i32
    %c0_i32_0 = arith.constant 0 : i32
    %c0_i32_1 = arith.constant 0 : i32
    return %c0_i32, %c0_i32_0 : i32, i32
  }
  func.func @transform_4(%arg0: i32) -> (i32, i32, i32) {
    %c0_i32 = arith.constant 0 : i32
    %c0_i32_0 = arith.constant 0 : i32
    %c0_i32_1 = arith.constant 0 : i32
    return %arg0, %c0_i32, %c0_i32_0 : i32, i32, i32
  }
}

</mosaic_0001>

<bundles_post_ra>
// kernel: forward.4
= control target key start
LH: loop header
LB: loop body
LE: loop exit
PB: predicated region body
PF: predicated region fallthrough
CT: control target
= control target key end

     0   :  { %s1869_s21 = smov 0   ;;  %s2167_s0 = inlined_call_operand.vmem [shape: bf16[2,4,81,16], index: 0, kind: input, shape index: {}]   ;;  %s2168_s1 = inlined_call_operand.vmem [shape: bf16[9,16,32], index: 1, kind: input, shape index: {}]   ;;  %s2169_s2 = inlined_call_operand.vmem [shape: f32[1,32], index: 2, kind: input, shape index: {}]   ;;  %s2170_s3 = inlined_call_operand.vmem [shape: f32[1,32], index: 3, kind: input, shape index: {}]   ;;  %s2171_s4 = inlined_call_operand.vmem [shape: bf16[1,16,32], index: 4, kind: input, shape index: {}]   ;;  %s2172_s5 = inlined_call_operand.vmem [shape: bf16[2,71,32], index: 5, kind: output, shape index: {0}]   ;;  %s2173_s6 = inlined_call_operand.vmem [shape: f32[2,71,32], index: 6, kind: output, shape index: {1}]  }
   0x1 LB: > { %s1475_s22 = sadd.s32 4294967295, %s1832_s21   ;;  %p1479_p0 = scmp.ge.s32.totalorder %s1832_s21, 1  ;;  %s1832_s21 = sphi %s1869_s21, %s17_s21  }
   0x2   : > { %p215_p1 = scmp.lt.s32.totalorder %s1832_s21, 3 }
   0x4   : > { %p216_p2 = pnand %p1479_p0, %p215_p1 }
   0x5   : > { %p250_p3 = scmp.lt.s32.totalorder (!%p216_p2), %s1475_s22, 1 }
   0x6   : > { %219 = sbr.rel (%p216_p2) target bundleno = 348 (0x15c), region = 40 }
   0xb   : > { %v1777_v0 = vld [vmem:[%s2168_s1 + $0x8] sm:$0xff]  ;;  %v1772_v1 = vld [vmem:[%s2168_s1] sm:$0xff]  ;;  %v1778_v4 = vld [vmem:[%s2168_s1 + $0x10] sm:$0xff]  ;;  %s2175_s22 = smov (!%p250_p3, %s1475_s22), 1  ;;  %vm319_vm0 = vcmask 130048   ;;  %vm1156_vm2 = vcmask 1046528  }
   0xc   : > { %v1788_v2 = vld [vmem:[%s2168_s1 + $0x20] sm:$0xff]  ;;  %v1789_v3 = vld [vmem:[%s2168_s1 + $0x28] sm:$0xff]  ;;  %v1783_v5 = vld [vmem:[%s2168_s1 + $0x18] sm:$0xff]  ;;  %342 = vmatpush.bf16.msra.mxu0 %v1777_v0  ;;  %1811 = vmatpush.bf16.msra.mxu2 %v1777_v0  ;;  %s1813_s11 = smul.u32 176, %s2175_s22  ;;  %vm448_vm1 = vsmask.f32 7424 }
   0xd   : > { %419 = vmatpush.bf16.msra.mxu1 %v1772_v1  ;;  %1812 = vmatpush.bf16.msra.mxu3 %v1772_v1  ;;  %v1794_v10 = vld [vmem:[%s2168_s1 + $0x30] sm:$0xff]  ;;  %v1799_v11 = vld [vmem:[%s2168_s1 + $0x38] sm:$0xff]  ;;  %v1805_v21 = vld [vmem:[%s2168_s1 + $0x40] sm:$0xff]  ;;  %s1815_s25 = smul.u32 72, %s2175_s22  ;;  %vm1376_vm3 = vcmask 261120   ;;  %vm1273_vm4 = vcmask 257024  }
   0xe   : > { %s1901_s14 = scalar_lea.vmem %s2167_s0, %s1813_s11  ;;  %v1810_v22 = vld [vmem:[%s2171_s4] sm:$0xff]  ;;  %s1814_s9 = smul.u32 36, %s2175_s22  ;;  %vm1385_vm5 = vcmask 260096   ;;  %vm1283_vm6 = vsmask.f32 3328 }
   0xf   : > { %v1773_v6 = vld [vmem:[%s1901_s14 + $0x2c] sm:$0xff]  ;;  %v1776_v7 = vld [vmem:[%s1901_s14 + $0x44] sm:$0xff]  ;;  %v1907_v9 = vld [vmem:[%s1901_s14 + $0x18] sm:$0xff]  ;;  %s2089_s30 = scalar_lea.vmem %s2173_s6, %s1815_s25 }
  0x10   : > { %709 = vmatpush.bf16.msrb.mxu0 %v1788_v2  ;;  %511 = vmatpush.bf16.msrb.mxu2 %v1778_v4  ;;  %v1768_v8 = vld [vmem:[%s1901_s14] sm:$0xff]  ;;  %v1921_v12 = vld [vmem:[%s1901_s14 + $0x4c] sm:$0xff]   ;;  %v1774_v16 = vld [vmem:[%s1901_s14 + $0x34] sm:$0xff]  ;;  %v469_v48 = vshll.u32 %v1907_v9, 16  ;;  %v473_v59 = vshrl.u32 %v1907_v9, 16  ;;  %s2105_s12 = scalar_lea.vmem %s2172_s5, %s1814_s9 }
  0x11   : > { %809 = vmatpush.bf16.msrb.mxu1 %v1789_v3  ;;  %610 = vmatpush.bf16.msrb.mxu3 %v1783_v5  ;;  %v1924_v13 = vld [vmem:[%s1901_s14 + $0x20] sm:$0xff]   ;;  %v307_v14 = vunpack.c.l.b16 %v1921_v12  ;;  %v1769_v18 = vld [vmem:[%s1901_s14 + $0x8] sm:$0xff]  ;;  %v451_v20 = vshll.u32 %v1768_v8, 16  ;;  %v449_v23 = vshrl.u32 %v1768_v8, 16  ;;  %v1770_v29 = vld [vmem:[%s1901_s14 + $0x10] sm:$0xff] }
  0x12   : > { %1514 = vmatmul.msk.bf16.vlgmr.msra.gmra.mxu0 %vm319_vm0, %v1773_v6  ;;  %1517 = vmatmul.msk.bf16.vlgmr.msra.gmra.mxu2 %vm319_vm0, %v1776_v7  ;;  %v385_v15 = vunpack.c.l.b16 %v1924_v13  ;;  %v455_v25 = vshll.u32 %v1769_v18, 16  ;;  %v1775_v28 = vld [vmem:[%s1901_s14 + $0x3c] sm:$0xff]  ;;  %v459_v34 = vshrl.u32 %v1769_v18, 16  ;;  %v462_v35 = vshll.u32 %v1770_v29, 16  ;;  %v1784_v43 = vld [vmem:[%s1901_s14 + $0x84] sm:$0xff]  ;;  %v1785_v55 = vld [vmem:[%s1901_s14 + $0x8c] sm:$0xff] }
  0x13   : > { %1539 = vmatmul.msk.bf16.vlgmr.msra.gmra.mxu1 %vm319_vm0, %v1768_v8  ;;  %1542 = vmatmul.msk.bf16.vlgmr.msra.gmra.mxu3 %vm319_vm0, %v1907_v9  ;;  %v312_v17 = vpack.c.b16 %v307_v14, %v307_v14  ;;  %v453_v24 = vrot.slane %v451_v20, 1  ;;  %v1779_v31 = vld [vmem:[%s1901_s14 + $0x58] sm:$0xff]  ;;  %v1780_v32 = vld [vmem:[%s1901_s14 + $0x60] sm:$0xff]  ;;  %v1781_v46 = vld [vmem:[%s1901_s14 + $0x68] sm:$0xff]  ;;  %v466_v47 = vshrl.u32 %v1770_v29, 16  ;;  %v471_v52 = vrot.slane %v469_v48, 1 }
  0x14   : > { %946 = vmatpush.bf16.msra.mxu2 %v1794_v10  ;;  %v1930_v19 = vpack.c.b16 %v385_v15, %v385_v15  ;;  %1194 = vmatpush.bf16.msra.mxu0 %v1805_v21  ;;  %v457_v27 = vrot.slane %v455_v25, 1  ;;  %v749_v33 = vshll.u32 %v1779_v31, 16  ;;  %v747_v36 = vshrl.u32 %v1779_v31, 16  ;;  %v1782_v58 = vld [vmem:[%s1901_s14 + $0x70] sm:$0xff]  ;;  %v1563_v3 = vld [vmem:[%s1901_s14 + $0x78] sm:$0xf]  ;;  %vm1284_vm7 = vmand %vm1273_vm4, %vm1283_vm6 }
  0x15   : > { %1083 = vmatpush.bf16.msra.mxu3 %v1799_v11  ;;  %1350 = vmatpush.bf16.msra.mxu1 %v1810_v22  ;;  %v454_v26 = vor.u32 %v453_v24, %v449_v23  ;;  %v753_v38 = vshll.u32 %v1780_v32, 16  ;;  %v464_v40 = vrot.slane %v462_v35, 1  ;;  %v757_v49 = vshrl.u32 %v1780_v32, 16  ;;  %v1786_v4 = vld [vmem:[%s1901_s14 + $0x94] sm:$0xff]  ;;  %v1791_v22 = vld [vmem:[%s1901_s14 + $0xc] sm:$0xff] }
  0x16   : > { %v751_v37 = vrot.slane %v749_v33, 1  ;;  %v461_v39 = vor.u32 %v459_v34, %v457_v27  ;;  %v760_v50 = vshll.u32 %v1781_v46, 16  ;;  %v476_v60 = vshll.u32 %v1930_v19, 16  ;;  %v1795_v21 = vld [vmem:[%s1901_s14 + $0x30] sm:$0xff]  ;;  %v1599_v25 = vld [vmem:[%s1901_s14 + $0xa4] sm:$0xf] }
  0x17   : > { %v458_v30 = vsel %vm448_vm1, %v454_v26, %v457_v27  ;;  %v755_v42 = vrot.slane %v753_v38, 1  ;;  %v468_v51 = vor.u32 %v466_v47, %v464_v40  ;;  %v764_v61 = vshrl.u32 %v1781_v46, 16  ;;  %v1801_v48 = vld [vmem:[%s1901_s14 + $0xc] sm:$0xff] }
  0x18   : > { %v752_v41 = vor.u32 %v751_v37, %v747_v36  ;;  %v465_v44 = vsel %vm448_vm1, %v461_v39, %v464_v40  ;;  %v762_v54 = vrot.slane %v760_v50, 1  ;;  %v767_v62 = vshll.u32 %v1782_v58, 16 }
  0x19   : > { %v759_v53 = vor.u32 %v757_v49, %v755_v42  ;;  %v472_v56 = vsel %vm448_vm1, %v468_v51, %v471_v52  ;;  %v475_v63 = vor.u32 %v473_v59, %v471_v52  ;;  %v478_v0 = vrot.slane %v476_v60, 1 }
  0x1a   : > { %v756_v45 = vsel %vm448_vm1, %v752_v41, %v755_v42  ;;  %v766_v1 = vor.u32 %v764_v61, %v762_v54  ;;  %v769_v2 = vrot.slane %v767_v62, 1  ;;  %v576_v7 = vunpack.c.l.b16 %v1563_v3  ;;  %v1792_v42 = vld [vmem:[%s1901_s14 + $0x14] sm:$0xff]  ;;  %v1806_v61 = vld [vmem:[%s1901_s14 + $0x84] sm:$0xff] }
  0x1b   : > { %v763_v57 = vsel %vm448_vm1, %v759_v53, %v762_v54  ;;  %v479_v5 = vsel %vm448_vm1, %v475_v63, %v478_v0  ;;  %v771_v9 = vshrl.u32 %v1782_v58, 16  ;;  %v480_v11 = vshrl.u32 %v1930_v19, 16 }
  0x1c   : > { %v770_v6 = vsel %vm448_vm1, %v766_v1, %v769_v2  ;;  %v581_v8 = vpack.c.b16 %v576_v7, %v576_v7  ;;  %v1019_v24 = vshll.u32 %v1795_v21, 16  ;;  %v895_v47 = vshll.u32 %v1792_v42, 16  ;;  %v1793_v1 = vld [vmem:[%s1901_s14 + $0x1c] sm:$0xff] }
  0x1d   : > { %v773_v14 = vor.u32 %v771_v9, %v769_v2  ;;  %v1798_v2 = vld [vmem:[%s1901_s14 + $0x48] sm:$0xff]  ;;  %v899_v7 = vshrl.u32 %v1792_v42, 16  ;;  %v1802_v9 = vld [vmem:[%s1901_s14 + $0x14] sm:$0xff] }
  0x1e   : > { %v774_v10 = vshll.u32 %v581_v8, 16  ;;  %v778_v33 = vshrl.u32 %v581_v8, 16  ;;  %v897_v53 = vrot.slane %v895_v47, 1 }
  0x20   : > { %v776_v15 = vrot.slane %v774_v10, 1 }
  0x22   : > { %1515 = vmatmul.msk.bf16.gmra.mxu0 %vm319_vm0, %v1774_v16  ;;  %1518 = vmatmul.msk.bf16.gmra.mxu2 %vm319_vm0, %v312_v17  ;;  %v482_v16 = vor.u32 %v480_v11, %v478_v0  ;;  %v1787_v17 = vld [vmem:[%s1901_s14 + $0x9c] sm:$0xff]  ;;  %v777_v20 = vsel %vm448_vm1, %v773_v14, %v776_v15  ;;  %v780_v39 = vor.u32 %v778_v33, %v776_v15  ;;  %v1040_v14 = vshll.u32 %v1798_v2, 16 }
  0x23   : > { %1540 = vmatmul.msk.bf16.gmra.mxu1 %vm319_vm0, %v1769_v18  ;;  %1543 = vmatmul.msk.bf16.gmra.mxu3 %vm319_vm0, %v1930_v19  ;;  %v1790_v18 = vld [vmem:[%s1901_s14 + $0x4] sm:$0xff]  ;;  %v1796_v19 = vld [vmem:[%s1901_s14 + $0x38] sm:$0xff] }
  0x24   : > { %v882_v23 = vshll.u32 %v1790_v18, 16  ;;  %v880_v26 = vshrl.u32 %v1790_v18, 16  ;;  %v1028_v50 = vshrl.u32 %v1796_v19, 16  ;;  %v1160_v18 = vrot.slane %v1802_v9, 1 }
  0x26   : > { %v884_v27 = vrot.slane %v882_v23, 1 }
  0x28   : > { %v885_v34 = vor.u32 %v884_v27, %v880_v26  ;;  %v1807_v27 = vld [vmem:[%s1901_s14 + $0x8c] sm:$0xff] }
  0x32   : > { %1516 = vmatmul.msk.bf16.gmra.mxu0 %vm319_vm0, %v1775_v28  ;;  %1550 = vmatmul.msk.bf16.vlgmr.msrb.gmra.mxu2 %vm319_vm0, %v458_v30  ;;  %v887_v28 = vshll.u32 %v1791_v22, 16  ;;  %v1021_v30 = vrot.slane %v1019_v24, 1 }
  0x33   : > { %1541 = vmatmul.msk.bf16.gmra.mxu1 %vm319_vm0, %v1770_v29  ;;  %1586 = vmatmul.msk.bf16.vlgmr.msrb.gmra.mxu3 %vm319_vm0, %v1779_v31  ;;  %v1017_v29 = vshrl.u32 %v1795_v21, 16  ;;  %v1024_v31 = vshll.u32 %v1796_v19, 16  ;;  %v1042_v21 = vrot.slane %v1040_v14, 1 }
  0x34   : > { %v889_v35 = vrot.slane %v887_v28, 1  ;;  %v873_v28 = vunpack.c.h.b16 %v1924_v13 }
  0x35   : > { %v1022_v36 = vor.u32 %v1021_v30, %v1017_v29  ;;  %v1026_v37 = vrot.slane %v1024_v31, 1  ;;  %v1010_v31 = vunpack.c.h.b16 %v1921_v12  ;;  %v1803_v12 = vld [vmem:[%s1901_s14 + $0x1c] sm:$0xff] }
  0x36   : > { %v890_v40 = vsel %vm448_vm1, %v885_v34, %v889_v35  ;;  %v878_v33 = vpack.c.b16 %v873_v28, %v873_v28 }
  0x37   : > { %v1027_v41 = vsel %vm448_vm1, %v1022_v36, %v1026_v37  ;;  %v1015_v34 = vpack.c.b16 %v1010_v31, %v1010_v31 }
  0x39   : > { %v1048_v42 = vshll.u32 %v1015_v34, 16 }
  0x42   : > { %1551 = vmatmul.msk.bf16.gmra.mxu2 %vm319_vm0, %v465_v44  ;;  %1622 = vmatmul.msk.bf16.vlgmr.msrb.gmra.mxu0 %vm319_vm0, %v1784_v43  ;;  %v1797_v43 = vld [vmem:[%s1901_s14 + $0x40] sm:$0xff] }
  0x43   : > { %1587 = vmatmul.msk.bf16.gmra.mxu3 %vm319_vm0, %v1780_v32  ;;  %1633 = vmatmul.msk.bf16.vlgmr.msrb.gmra.mxu1 %vm319_vm0, %v756_v45  ;;  %v675_v32 = vunpack.c.l.b16 %v1599_v25  ;;  %v1705_v44 = vld [vmem:[%s1901_s14 + $0x4] sm:$0xe]  ;;  %v1800_v45 = vld [vmem:[%s1901_s14 + $0x4] sm:$0xf0]  ;;  %v1032_v51 = vshll.u32 %v1797_v43, 16  ;;  %v1036_v11 = vshrl.u32 %v1797_v43, 16 }
  0x44   : > { %v1706_v49 = vor.u32 %v1800_v45, %v1705_v44 }
  0x45   : > { %v680_v38 = vpack.c.b16 %v675_v32, %v675_v32 }
  0x46   : > { %v1157_v54 = vrot.slane %v1706_v49, 1 }
  0x52   : > { %1552 = vmatmul.msk.bf16.gmra.mxu2 %vm319_vm0, %v472_v56  ;;  %1623 = vmatmul.msk.bf16.gmra.mxu0 %vm319_vm0, %v1785_v55  ;;  %v1158_v55 = vrot.slane %v1801_v48, 1  ;;  %v1030_v56 = vor.u32 %v1028_v50, %v1026_v37  ;;  %v1050_v48 = vrot.slane %v1048_v42, 1 }
  0x53   : > { %1588 = vmatmul.msk.bf16.gmra.mxu3 %vm319_vm0, %v1781_v46  ;;  %1634 = vmatmul.msk.bf16.gmra.mxu1 %vm319_vm0, %v763_v57  ;;  %v891_v46 = vshrl.u32 %v1791_v22, 16  ;;  %v1034_v57 = vrot.slane %v1032_v51, 1 }
  0x54   : > { %v1159_v60 = vsel %vm1156_vm2, %v1157_v54, %v1158_v55  ;;  %v1161_v26 = vsel %vm1156_vm2, %v1158_v55, %v1160_v18  ;;  %v1808_v54 = vld [vmem:[%s1901_s14 + $0x94] sm:$0xff] }
  0x55   : > { %v893_v52 = vor.u32 %v891_v46, %v889_v35  ;;  %v1035_v63 = vsel %vm448_vm1, %v1030_v56, %v1034_v57  ;;  %v1162_v46 = vrot.slane %v1803_v12, 1 }
  0x57   : > { %v898_v59 = vsel %vm448_vm1, %v893_v52, %v897_v53 }
  0x62   : > { %1553 = vmatmul.msk.bf16.gmra.mxu2 %vm319_vm0, %v479_v5  ;;  %1624 = vmatmul.msk.bf16.gmra.mxu0 %vm319_vm0, %v1786_v4 }
  0x63   : > { %1589 = vmatmul.msk.bf16.gmra.mxu3 %vm319_vm0, %v1782_v58  ;;  %1635 = vmatmul.msk.bf16.gmra.mxu1 %vm319_vm0, %v770_v6 }
  0x72   : > { %1554 = vmatmul.msk.bf16.gmra.mxu2 %vm319_vm0, %v482_v16  ;;  %1625 = vmatmul.msk.bf16.gmra.mxu0 %vm319_vm0, %v1787_v17  ;;  %v901_v16 = vor.u32 %v899_v7, %v897_v53  ;;  %v1163_v53 = vsel %vm1156_vm2, %v1160_v18, %v1162_v46  ;;  %v1052_v7 = vshrl.u32 %v1015_v34, 16 }
  0x73   : > { %1590 = vmatmul.msk.bf16.gmra.mxu3 %vm319_vm0, %v581_v8  ;;  %1636 = vmatmul.msk.bf16.gmra.mxu1 %vm319_vm0, %v777_v20  ;;  %v903_v8 = vshll.u32 %v1793_v1, 16  ;;  %v1038_v20 = vor.u32 %v1036_v11, %v1034_v57 }
  0x75   : > { %v905_v17 = vrot.slane %v903_v8, 1  ;;  %v1043_v30 = vsel %vm448_vm1, %v1038_v20, %v1042_v21 }
  0x77   : > { %v906_v25 = vsel %vm448_vm1, %v901_v16, %v905_v17 }
  0x82   : > { %1626 = vmatmul.msk.bf16.gmra.mxu0 %vm319_vm0, %v680_v38  ;;  %1660 = vmatmul.msk.bf16.vlgmr.msra.gmra.mxu2 %vm319_vm0, %v890_v40  ;;  %v907_v38 = vshrl.u32 %v1793_v1, 16 }
  0x83   : > { %1637 = vmatmul.msk.bf16.gmra.mxu1 %vm319_vm0, %v780_v39  ;;  %1696 = vmatmul.msk.bf16.vlgmr.msra.gmra.mxu3 %vm319_vm0, %v1027_v41  ;;  %v911_v39 = vshll.u32 %v878_v33, 16  ;;  %v1044_v41 = vshrl.u32 %v1798_v2, 16 }
  0x84   : > { %v909_v44 = vor.u32 %v907_v38, %v905_v17  ;;  %v1054_v17 = vor.u32 %v1052_v7, %v1050_v48 }
  0x85   : > { %v913_v45 = vrot.slane %v911_v39, 1  ;;  %v1046_v47 = vor.u32 %v1044_v41, %v1042_v21 }
  0x87   : > { %v914_v52 = vsel %vm448_vm1, %v909_v44, %v913_v45  ;;  %v1051_v56 = vsel %vm448_vm1, %v1046_v47, %v1050_v48 }
  0x8f   : > { %v344_v58 = vpop.f32.mrf.mxu0 }
  0x90   : > { %v421_v62 = vpop.f32.mrf.mxu1 }
  0x91   : > { %v2006_v0 = vadd.f32 %v421_v62, %v344_v58  ;;  %v1721_v58 = vld [vmem:[%s1901_s14 + $0x24] sm:$0xf] }
  0x92   : > { %1661 = vmatmul.msk.bf16.gmra.mxu2 %vm319_vm0, %v898_v59  ;;  %1727 = vmatmul.msk.bf16.vlgmr.msra.gmra.mxu0 %vm319_vm0, %v1159_v60  ;;  %v1804_v59 = vld [vmem:[%s1901_s14 + $0x24] sm:$0x10] }
  0x93   : > { %1697 = vmatmul.msk.bf16.gmra.mxu3 %vm319_vm0, %v1035_v63  ;;  %1761 = vmatmul.msk.bf16.vlgmr.msra.gmra.mxu1 %vm319_vm0, %v1806_v61  ;;  %v1722_v1 = vor.u32 %v1804_v59, %v1721_v58 }
  0x95   : > { %v359_v3 = vpop.f32.mrf.mxu2  ;;  %v1164_v8 = vrot.slane %v1722_v1, 1 }
  0x96   : > { %v436_v4 = vpop.f32.mrf.mxu3 }
  0x97   : > { %v2014_v5 = vadd.f32 %v436_v4, %v359_v3  ;;  %v346_v6 = vpop.f32.mrf.mxu0  ;;  %v1165_v18 = vsel %vm1156_vm2, %v1162_v46, %v1164_v8 }
  0x98   : > { %v423_v10 = vpop.f32.mrf.mxu1 }
  0x99   : > { %v2017_v15 = vadd.f32 %v423_v10, %v346_v6  ;;  %v915_v6 = vshrl.u32 %v878_v33, 16 }
  0x9b   : > { %v917_v14 = vor.u32 %v915_v6, %v913_v45 }
  0x9d   : > { %v361_v22 = vpop.f32.mrf.mxu2 }
  0x9e   : > { %v438_v23 = vpop.f32.mrf.mxu3 }
  0x9f   : > { %v2019_v19 = vadd.f32 %v438_v23, %v361_v22  ;;  %v349_v24 = vpop.f32.mrf.mxu0 }
  0xa0   : > { %v426_v29 = vpop.f32.mrf.mxu1 }
  0xa1   : > { %v2027_v32 = vadd.f32 %v426_v29, %v349_v24 }
  0xa2   : > { %1662 = vmatmul.msk.bf16.gmra.mxu2 %vm319_vm0, %v906_v25  ;;  %1728 = vmatmul.msk.bf16.gmra.mxu0 %vm319_vm0, %v1161_v26 }
  0xa3   : > { %1698 = vmatmul.msk.bf16.gmra.mxu3 %vm319_vm0, %v1043_v30  ;;  %1762 = vmatmul.msk.bf16.gmra.mxu1 %vm319_vm0, %v1807_v27  ;;  %v1740_v30 = vld [vmem:[%s1901_s14 + $0xa4] sm:$0xf] }
  0xa4   : > { %v1316_v33 = vunpack.c.l.b16 %v1740_v30 }
  0xa5   : > { %v364_v35 = vpop.f32.mrf.mxu2 }
  0xa6   : > { %v441_v13 = vpop.f32.mrf.mxu3  ;;  %v1321_v38 = vpack.c.b16 %v1316_v33, %v1316_v33 }
  0xa7   : > { %v2033_v36 = vadd.f32 %v441_v13, %v364_v35  ;;  %v351_v37 = vpop.f32.mrf.mxu0 }
  0xa8   : > { %v428_v40 = vpop.f32.mrf.mxu1 }
  0xa9   : > { %v429_v43 = vadd.f32 %v428_v40, %v351_v37 }
  0xad   : > { %v366_v49 = vpop.f32.mrf.mxu2 }
  0xae   : > { %v443_v50 = vpop.f32.mrf.mxu3 }
  0xaf   : > { %v354_v51 = vpop.f32.mrf.mxu0 }
  0xb0   : > { %v431_v55 = vpop.f32.mrf.mxu1 }
  0xb1   : > { %v432_v57 = vadd.f32 %v431_v55, %v354_v51 }
  0xb2   : > { %1663 = vmatmul.msk.bf16.gmra.mxu2 %vm319_vm0, %v914_v52  ;;  %1729 = vmatmul.msk.bf16.gmra.mxu0 %vm319_vm0, %v1163_v53 }
  0xb3   : > { %1699 = vmatmul.msk.bf16.gmra.mxu3 %vm319_vm0, %v1051_v56  ;;  %1763 = vmatmul.msk.bf16.gmra.mxu1 %vm319_vm0, %v1808_v54 }
  0xb5   : > { %v513_v60 = vpop.f32.mrf.mxu2 }
  0xb6   : > { %v537_v61 = vadd.f32 %v513_v60, %v2006_v0  ;;  %v612_v62 = vpop.f32.mrf.mxu3  ;;  %v1809_v0 = vld [vmem:[%s1901_s14 + $0x9c] sm:$0xff] }
  0xb7   : > { %v356_v63 = vpop.f32.mrf.mxu0 }
  0xb8   : > { %v636_v2 = vadd.f32 %v612_v62, %v537_v61  ;;  %v433_v3 = vpop.f32.mrf.mxu1 }
  0xb9   : > { %v434_v4 = vadd.f32 %v433_v3, %v356_v63 }
  0xbd   : > { %v515_v9 = vpop.f32.mrf.mxu2 }
  0xbe   : > { %v538_v10 = vadd.f32 %v515_v9, %v2017_v15  ;;  %v614_v11 = vpop.f32.mrf.mxu3 }
  0xbf   : > { %v711_v16 = vpop.f32.mrf.mxu0 }
  0xc0   : > { %v637_v20 = vadd.f32 %v614_v11, %v538_v10  ;;  %v735_v21 = vadd.f32 %v711_v16, %v636_v2  ;;  %v811_v22 = vpop.f32.mrf.mxu1 }
  0xc2   : > { %v2050_v23 = vadd.f32 %v811_v22, %v735_v21  ;;  %1664 = vmatmul.msk.bf16.gmra.mxu2 %vm319_vm0, %v917_v14  ;;  %1730 = vmatmul.msk.bf16.gmra.mxu0 %vm319_vm0, %v1165_v18 }
  0xc3   : > { %1700 = vmatmul.msk.bf16.gmra.mxu3 %vm319_vm0, %v1054_v17  ;;  %1764 = vmatmul.msk.bf16.gmra.mxu1 %vm319_vm0, %v1809_v0 }
  0xc5   : > { %v518_v15 = vpop.f32.mrf.mxu2 }
  0xc6   : > { %v539_v24 = vadd.f32 %v518_v15, %v2027_v32  ;;  %v617_v25 = vpop.f32.mrf.mxu3 }
  0xc7   : > { %v713_v26 = vpop.f32.mrf.mxu0 }
  0xc8   : > { %v638_v27 = vadd.f32 %v617_v25, %v539_v24  ;;  %v736_v28 = vadd.f32 %v713_v26, %v637_v20  ;;  %v813_v29 = vpop.f32.mrf.mxu1 }
  0xca   : > { %v2058_v31 = vadd.f32 %v813_v29, %v736_v28 }
  0xcd   : > { %v520_v34 = vpop.f32.mrf.mxu2 }
  0xce   : > { %v540_v35 = vadd.f32 %v520_v34, %v429_v43  ;;  %v619_v13 = vpop.f32.mrf.mxu3 }
  0xcf   : > { %v716_v37 = vpop.f32.mrf.mxu0 }
  0xd0   : > { %v639_v39 = vadd.f32 %v619_v13, %v540_v35  ;;  %v737_v12 = vadd.f32 %v716_v37, %v638_v27  ;;  %v816_v40 = vpop.f32.mrf.mxu1  ;;  %v2084_v35 = vld [vmem:[%s2169_s2] ss:$0 sm:$0xff] }
  0xd2   : > { %v2060_v41 = vadd.f32 %v816_v40, %v737_v12  ;;  %1731 = vmatmul.msk.bf16.gmra.mxu0 %vm319_vm0, %v1164_v8 }
  0xd3   : > { %1765 = vmatmul.msk.bf16.gmra.mxu1 %vm319_vm0, %v1321_v38 }
  0xd5   : > { %v523_v32 = vpop.f32.mrf.mxu2 }
  0xd6   : > { %v541_v42 = vadd.f32 %v523_v32, %v432_v57  ;;  %v622_v44 = vpop.f32.mrf.mxu3 }
  0xd7   : > { %v718_v45 = vpop.f32.mrf.mxu0 }
  0xd8   : > { %v640_v46 = vadd.f32 %v622_v44, %v541_v42  ;;  %v738_v47 = vadd.f32 %v718_v45, %v639_v39  ;;  %v818_v48 = vpop.f32.mrf.mxu1 }
  0xda   : > { %v2064_v43 = vadd.f32 %v818_v48, %v738_v47 }
  0xdd   : > { %v525_v49 = vpop.f32.mrf.mxu2 }
  0xde   : > { %v542_v50 = vadd.f32 %v525_v49, %v434_v4  ;;  %v624_v51 = vpop.f32.mrf.mxu3 }
  0xdf   : > { %v721_v52 = vpop.f32.mrf.mxu0 }
  0xe0   : > { %v641_v53 = vadd.f32 %v624_v51, %v542_v50  ;;  %v739_v54 = vadd.f32 %v721_v52, %v640_v46  ;;  %v821_v55 = vpop.f32.mrf.mxu1 }
  0xe2   : > { %v2066_v56 = vadd.f32 %v821_v55, %v739_v54 }
  0xe5   : > { %v528_v58 = vpop.f32.mrf.mxu2 }
  0xe6   : > { %v543_v59 = vadd.f32 %v528_v58, %v2014_v5  ;;  %v627_v57 = vpop.f32.mrf.mxu3 }
  0xe7   : > { %v723_v60 = vpop.f32.mrf.mxu0 }
  0xe8   : > { %v642_v61 = vadd.f32 %v627_v57, %v543_v59  ;;  %v740_v62 = vadd.f32 %v723_v60, %v641_v53  ;;  %v823_v63 = vpop.f32.mrf.mxu1 }
  0xea   : > { %v2069_v1 = vadd.f32 %v823_v63, %v740_v62 }
  0xed   : > { %v530_v2 = vpop.f32.mrf.mxu2 }
  0xee   : > { %v544_v3 = vadd.f32 %v530_v2, %v2019_v19  ;;  %v629_v4 = vpop.f32.mrf.mxu3 }
  0xef   : > { %v726_v6 = vpop.f32.mrf.mxu0 }
  0xf0   : > { %v643_v7 = vadd.f32 %v629_v4, %v544_v3  ;;  %v741_v8 = vadd.f32 %v726_v6, %v642_v61  ;;  %v826_v9 = vpop.f32.mrf.mxu1 }
  0xf2   : > { %v2072_v10 = vadd.f32 %v826_v9, %v741_v8 }
  0xf5   : > { %v533_v11 = vpop.f32.mrf.mxu2 }
  0xf6   : > { %v545_v5 = vadd.f32 %v533_v11, %v2033_v36  ;;  %v632_v14 = vpop.f32.mrf.mxu3 }
  0xf7   : > { %v728_v16 = vpop.f32.mrf.mxu0 }
  0xf8   : > { %v644_v17 = vadd.f32 %v632_v14, %v545_v5  ;;  %v742_v18 = vadd.f32 %v728_v16, %v643_v7  ;;  %v828_v0 = vpop.f32.mrf.mxu1 }
  0xfa   : > { %v2075_v20 = vadd.f32 %v828_v0, %v742_v18 }
  0xfd   : > { %v535_v21 = vpop.f32.mrf.mxu2 }
  0xfe   : > { %v634_v19 = vpop.f32.mrf.mxu3 }
  0xff   : > { %v731_v22 = vpop.f32.mrf.mxu0 }
 0x100   : > { %v743_v15 = vadd.f32 %v731_v22, %v644_v17  ;;  %v831_v24 = vpop.f32.mrf.mxu1 }
 0x102   : > { %v2077_v25 = vadd.f32 %v831_v24, %v743_v15 }
 0x105   : > { %v948_v26 = vpop.f32.mrf.mxu2 }
 0x106   : > { %v1085_v27 = vpop.f32.mrf.mxu3  ;;  %v972_v36 = vadd.f32 %v948_v26, %v2050_v23  ;;  %v2094_v23 = vld [vmem:[%s2170_s3] ss:$0 sm:$0xff] }
 0x107   : > { %v733_v28 = vpop.f32.mrf.mxu0 }
 0x108   : > { %v833_v29 = vpop.f32.mrf.mxu1  ;;  %v1109_v33 = vadd.f32 %v1085_v27, %v972_v36 }
 0x10d   : > { %v950_v30 = vpop.f32.mrf.mxu2 }
 0x10e   : > { %v1087_v34 = vpop.f32.mrf.mxu3  ;;  %v973_v39 = vadd.f32 %v950_v30, %v2058_v31 }
 0x10f   : > { %v1196_v13 = vpop.f32.mrf.mxu0 }
 0x110   : > { %v1220_v37 = vadd.f32 %v1196_v13, %v1109_v33  ;;  %v1352_v38 = vpop.f32.mrf.mxu1  ;;  %v1110_v42 = vadd.f32 %v1087_v34, %v973_v39 }
 0x111   : > { %1377 = vst.msk [vmem:[%s2089_s30] sm:$0xff] %vm1376_vm3, %v1352_v38 }
 0x112   : > { %v1233_v12 = vmul.f32 %v2084_v35, %v1220_v37 }
 0x114   : > { %v1246_v40 = vadd.f32 %v2094_v23, %v1233_v12 }
 0x115   : > { %v953_v32 = vpop.f32.mrf.mxu2 }
 0x116   : > { %v1255_v44 = vmax.f32 %v1246_v40, 0.0  ;;  %v1090_v45 = vpop.f32.mrf.mxu3  ;;  %v974_v49 = vadd.f32 %v953_v32, %v2060_v41 }
 0x117   : > { %v1198_v46 = vpop.f32.mrf.mxu0 }
 0x118   : > { %v1264_v47 = vpack.c.bf16 %v1255_v44, %v1255_v44  ;;  %v1221_v31 = vadd.f32 %v1198_v46, %v1110_v42  ;;  %v1354_v48 = vpop.f32.mrf.mxu1  ;;  %v1111_v53 = vadd.f32 %v1090_v45, %v974_v49 }
 0x119   : > { %1378 = vst.msk [vmem:[%s2089_s30 + $0x8] sm:$0xff] %vm1376_vm3, %v1354_v48 }
 0x11a   : > { %1274 = vst.msk [vmem:[%s2105_s12] sm:$0xf] %vm1273_vm4, %v1264_v47  ;;  %v1234_v50 = vmul.f32 %v2084_v35, %v1221_v31 }
 0x11c   : > { %v1247_v51 = vadd.f32 %v2094_v23, %v1234_v50 }
 0x11d   : > { %v955_v52 = vpop.f32.mrf.mxu2 }
 0x11e   : > { %v1256_v54 = vmax.f32 %v1247_v51, 0.0  ;;  %v1092_v55 = vpop.f32.mrf.mxu3  ;;  %v975_v41 = vadd.f32 %v955_v52, %v2064_v43 }
 0x11f   : > { %v1201_v58 = vpop.f32.mrf.mxu0 }
 0x120   : > { %v1265_v59 = vpack.c.bf16 %v1256_v54, %v1256_v54  ;;  %v1222_v57 = vadd.f32 %v1201_v58, %v1111_v53  ;;  %v1357_v60 = vpop.f32.mrf.mxu1  ;;  %v1112_v2 = vadd.f32 %v1092_v55, %v975_v41 }
 0x121   : > { %1379 = vst.msk [vmem:[%s2089_s30 + $0x10] sm:$0xff] %vm1376_vm3, %v1357_v60 }
 0x122   : > { %1275 = vst.msk [vmem:[%s2105_s12 + $0x4] sm:$0xf] %vm1273_vm4, %v1265_v59  ;;  %v1235_v61 = vmul.f32 %v2084_v35, %v1222_v57 }
 0x124   : > { %v1248_v62 = vadd.f32 %v2094_v23, %v1235_v61 }
 0x125   : > { %v958_v63 = vpop.f32.mrf.mxu2 }
 0x126   : > { %v1257_v3 = vmax.f32 %v1248_v62, 0.0  ;;  %v1095_v4 = vpop.f32.mrf.mxu3  ;;  %v976_v43 = vadd.f32 %v958_v63, %v2066_v56 }
 0x127   : > { %v1203_v6 = vpop.f32.mrf.mxu0 }
 0x128   : > { %v1266_v7 = vpack.c.bf16 %v1257_v3, %v1257_v3  ;;  %v1223_v8 = vadd.f32 %v1203_v6, %v1112_v2  ;;  %v1359_v9 = vpop.f32.mrf.mxu1  ;;  %v1113_v16 = vadd.f32 %v1095_v4, %v976_v43  ;;  %v1285_v6 = vld [vmem:[%s2105_s12 + $0x20] sm:$0xf] }
 0x129   : > { %1380 = vst.msk [vmem:[%s2089_s30 + $0x18] sm:$0xff] %vm1376_vm3, %v1359_v9 }
 0x12a   : > { %1276 = vst.msk [vmem:[%s2105_s12 + $0x8] sm:$0xf] %vm1273_vm4, %v1266_v7  ;;  %v1236_v11 = vmul.f32 %v2084_v35, %v1223_v8 }
 0x12c   : > { %v1249_v5 = vadd.f32 %v2094_v23, %v1236_v11 }
 0x12d   : > { %v960_v14 = vpop.f32.mrf.mxu2 }
 0x12e   : > { %v1258_v17 = vmax.f32 %v1249_v5, 0.0  ;;  %v1097_v18 = vpop.f32.mrf.mxu3  ;;  %v977_v56 = vadd.f32 %v960_v14, %v2069_v1 }
 0x12f   : > { %v1206_v0 = vpop.f32.mrf.mxu0 }
 0x130   : > { %v1267_v21 = vpack.c.bf16 %v1258_v17, %v1258_v17  ;;  %v1224_v19 = vadd.f32 %v1206_v0, %v1113_v16  ;;  %v1362_v22 = vpop.f32.mrf.mxu1  ;;  %v1114_v27 = vadd.f32 %v1097_v18, %v977_v56 }
 0x131   : > { %1381 = vst.msk [vmem:[%s2089_s30 + $0x20] sm:$0xff] %vm1376_vm3, %v1362_v22 }
 0x132   : > { %1277 = vst.msk [vmem:[%s2105_s12 + $0xc] sm:$0xf] %vm1273_vm4, %v1267_v21  ;;  %v1237_v15 = vmul.f32 %v2084_v35, %v1224_v19 }
 0x134   : > { %v1250_v24 = vadd.f32 %v2094_v23, %v1237_v15 }
 0x135   : > { %v963_v26 = vpop.f32.mrf.mxu2 }
 0x136   : > { %v1259_v28 = vmax.f32 %v1250_v24, 0.0  ;;  %v1100_v29 = vpop.f32.mrf.mxu3  ;;  %v978_v1 = vadd.f32 %v963_v26, %v2072_v10 }
 0x137   : > { %v1208_v36 = vpop.f32.mrf.mxu0 }
 0x138   : > { %v1268_v30 = vpack.c.bf16 %v1259_v28, %v1259_v28  ;;  %v1225_v33 = vadd.f32 %v1208_v36, %v1114_v27  ;;  %v1364_v34 = vpop.f32.mrf.mxu1  ;;  %v1115_v39 = vadd.f32 %v1100_v29, %v978_v1 }
 0x139   : > { %1382 = vst.msk [vmem:[%s2089_s30 + $0x28] sm:$0xff] %vm1376_vm3, %v1364_v34 }
 0x13a   : > { %1278 = vst.msk [vmem:[%s2105_s12 + $0x10] sm:$0xf] %vm1273_vm4, %v1268_v30  ;;  %v1238_v13 = vmul.f32 %v2084_v35, %v1225_v33 }
 0x13c   : > { %v1251_v37 = vadd.f32 %v2094_v23, %v1238_v13 }
 0x13d   : > { %v965_v38 = vpop.f32.mrf.mxu2 }
 0x13e   : > { %v1260_v12 = vmax.f32 %v1251_v37, 0.0  ;;  %v1102_v40 = vpop.f32.mrf.mxu3  ;;  %v979_v10 = vadd.f32 %v965_v38, %v2075_v20 }
 0x13f   : > { %v1211_v32 = vpop.f32.mrf.mxu0 }
 0x140   : > { %v1269_v42 = vpack.c.bf16 %v1260_v12, %v1260_v12  ;;  %v1226_v44 = vadd.f32 %v1211_v32, %v1115_v39  ;;  %v1367_v45 = vpop.f32.mrf.mxu1  ;;  %v1116_v48 = vadd.f32 %v1102_v40, %v979_v10 }
 0x141   : > { %1383 = vst.msk [vmem:[%s2089_s30 + $0x30] sm:$0xff] %vm1376_vm3, %v1367_v45 }
 0x142   : > { %1279 = vst.msk [vmem:[%s2105_s12 + $0x14] sm:$0xf] %vm1273_vm4, %v1269_v42  ;;  %v1239_v46 = vmul.f32 %v2084_v35, %v1226_v44 }
 0x144   : > { %v1252_v47 = vadd.f32 %v2094_v23, %v1239_v46 }
 0x145   : > { %v968_v31 = vpop.f32.mrf.mxu2 }
 0x146   : > { %v1261_v49 = vmax.f32 %v1252_v47, 0.0  ;;  %v1105_v50 = vpop.f32.mrf.mxu3  ;;  %v980_v20 = vadd.f32 %v968_v31, %v2077_v25 }
 0x147   : > { %v1213_v51 = vpop.f32.mrf.mxu0 }
 0x148   : > { %v1270_v52 = vpack.c.bf16 %v1261_v49, %v1261_v49  ;;  %v1227_v53 = vadd.f32 %v1213_v51, %v1116_v48  ;;  %v1369_v54 = vpop.f32.mrf.mxu1  ;;  %v1117_v57 = vadd.f32 %v1105_v50, %v980_v20 }
 0x149   : > { %1384 = vst.msk [vmem:[%s2089_s30 + $0x38] sm:$0xff] %vm1376_vm3, %v1369_v54 }
 0x14a   : > { %1280 = vst.msk [vmem:[%s2105_s12 + $0x18] sm:$0xf] %vm1273_vm4, %v1270_v52  ;;  %v1240_v55 = vmul.f32 %v2084_v35, %v1227_v53 }
 0x14c   : > { %v1253_v58 = vadd.f32 %v2094_v23, %v1240_v55 }
 0x14d   : > { %v970_v59 = vpop.f32.mrf.mxu2 }
 0x14e   : > { %v1262_v60 = vmax.f32 %v1253_v58, 0.0  ;;  %v1107_v41 = vpop.f32.mrf.mxu3 }
 0x14f   : > { %v1216_v61 = vpop.f32.mrf.mxu0 }
 0x150   : > { %v1271_v62 = vpack.c.bf16 %v1262_v60, %v1262_v60  ;;  %v1228_v63 = vadd.f32 %v1216_v61, %v1117_v57  ;;  %v1372_v2 = vpop.f32.mrf.mxu1 }
 0x151   : > { %1386 = vst.msk [vmem:[%s2089_s30 + $0x40] sm:$0x7f] %vm1385_vm5, %v1372_v2 }
 0x152   : > { %1281 = vst.msk [vmem:[%s2105_s12 + $0x1c] sm:$0xf] %vm1273_vm4, %v1271_v62  ;;  %v1241_v25 = vmul.f32 %v2084_v35, %v1228_v63 }
 0x154   : > { %v1254_v3 = vadd.f32 %v2094_v23, %v1241_v25 }
 0x156   : > { %v1263_v4 = vmax.f32 %v1254_v3, 0.0 }
 0x157   : > { %v1218_v7 = vpop.f32.mrf.mxu0 }
 0x158   : > { %v1272_v8 = vpack.c.bf16 %v1263_v4, %v1263_v4  ;;  %v1374_v9 = vpop.f32.mrf.mxu1 }
 0x15a   : > { %v1286_v43 = vsel %vm1284_vm7, %v1272_v8, %v1285_v6 }
 0x15b   : > { %1287 = vst [vmem:[%s2105_s12 + $0x20] sm:$0xf] %v1286_v43 }
 0x15c PF: > { %s17_s21 = sadd.s32 1, %s1832_s21  }
 0x15d   : > { %p14_p4 = scmp.ge.s32.totalorder %s17_s21, 4  }
 0x15f   :  { %16 = sbr.rel (!%p14_p4) target bundleno = 1 (0x1), region = 93 }

// kernel: forward.5
= control target key start
LH: loop header
LB: loop body
LE: loop exit
PB: predicated region body
PF: predicated region fallthrough
CT: control target
= control target key end

     0   :  { %s1629_s12 = smov 0   ;;  %s1976_s0 = inlined_call_operand.vmem [shape: bf16[2,1,100,32], index: 0, kind: input, shape index: {}]   ;;  %s1977_s1 = inlined_call_operand.vmem [shape: bf16[9,32,32], index: 1, kind: input, shape index: {}]   ;;  %s1978_s2 = inlined_call_operand.vmem [shape: f32[2,78,32], index: 2, kind: input, shape index: {}]   ;;  %s1979_s3 = inlined_call_operand.vmem [shape: f32[2,78,32], index: 3, kind: output, shape index: {}]  }
   0x1 LB: > { %s1316_s13 = sadd.s32 4294967295, %s1607_s12   ;;  %p1320_p0 = scmp.ge.s32.totalorder %s1607_s12, 1  ;;  %s1607_s12 = sphi %s1629_s12, %s13_s12  }
   0x2   : > { %p147_p1 = scmp.lt.s32.totalorder %s1607_s12, 3 }
   0x4   : > { %p148_p2 = pnand %p1320_p0, %p147_p1 }
   0x5   : > { %p176_p3 = scmp.lt.s32.totalorder (!%p148_p2), %s1316_s13, 1 }
   0x6   : > { %151 = sbr.rel (%p148_p2) target bundleno = 348 (0x15c), region = 32 }
   0xb   : > { %v1545_v0 = vld [vmem:[%s1977_s1 + $0x18] sm:$0xff]  ;;  %v1544_v1 = vld [vmem:[%s1977_s1 + $0x10] sm:$0xff]  ;;  %s1981_s13 = smov (!%p176_p3, %s1316_s13), 1  ;;  %v1547_v2 = vld [vmem:[%s1977_s1 + $0x28] sm:$0xff]  ;;  %vm237_vm0 = vsmask.f32 7424 }
   0xc   : > { %1580 = vmatpush.bf16.msra.mxu1 %v1545_v0  ;;  %1581 = vmatpush.bf16.msra.mxu2 %v1545_v0  ;;  %s1586_s20 = smul.u32 52, %s1981_s13  ;;  %v1543_v3 = vld [vmem:[%s1977_s1 + $0x8] sm:$0xff]  ;;  %v1554_v4 = vld [vmem:[%s1977_s1 + $0x38] sm:$0xff]  ;;  %v1546_v6 = vld [vmem:[%s1977_s1 + $0x20] sm:$0xff]  ;;  %vm289_vm1 = vcmask 261120   ;;  %vm408_vm3 = vcmask 1046528  }
   0xd   : > { %1582 = vmatpush.bf16.msra.mxu3 %v1545_v0  ;;  %311 = vmatpush.bf16.msra.mxu0 %v1545_v0  ;;  %v1560_v5 = vld [vmem:[%s1977_s1 + $0x48] sm:$0xff]  ;;  %v1542_v12 = vld [vmem:[%s1977_s1] sm:$0xff]  ;;  %v1553_v18 = vld [vmem:[%s1977_s1 + $0x30] sm:$0xff]  ;;  %vm653_vm2 = vsmask.f32 6400  ;;  %vm783_vm4 = vcmask 1045504  }
   0xe   : > { %s1661_s29 = scalar_lea.vmem %s1976_s0, %s1586_s20  ;;  %v1559_v19 = vld [vmem:[%s1977_s1 + $0x40] sm:$0xff]  ;;  %v1568_v38 = vld [vmem:[%s1977_s1 + $0x68] sm:$0xff]  ;;  %v1562_v40 = vld [vmem:[%s1977_s1 + $0x58] sm:$0xff]  ;;  %vm1135_vm5 = vcmask 1044480   ;;  %vm1001_vm6 = vsmask.f32 5376 }
   0xf   : > { %v1667_v7 = vld [vmem:[%s1661_s29 + $0x8] sm:$0xff]  ;;  %v1670_v8 = vld [vmem:[%s1661_s29 + $0x10] sm:$0xff]  ;;  %v1673_v9 = vld [vmem:[%s1661_s29 + $0x18] sm:$0xff]  ;;  %vm1247_vm7 = vcmask 259072  }
  0x10   : > { %1583 = vmatpush.bf16.msra.mxu1 %v1544_v1  ;;  %1584 = vmatpush.bf16.msra.mxu2 %v1544_v1  ;;  %v1676_v10 = vld [vmem:[%s1661_s29 + $0x20] sm:$0xff]   ;;  %v246_v14 = vshll.u32 %v1667_v7, 16  ;;  %v250_v15 = vshrl.u32 %v1667_v7, 16  ;;  %v254_v16 = vshll.u32 %v1670_v8, 16  ;;  %v258_v17 = vshrl.u32 %v1670_v8, 16  ;;  %v1704_v32 = vld [vmem:[%s1661_s29 + $0x8] sm:$0xff]  }
  0x11   : > { %1585 = vmatpush.bf16.msra.mxu3 %v1544_v1  ;;  %v1679_v11 = vld [vmem:[%s1661_s29 + $0x20] sm:$0xf]   ;;  %312 = vmatpush.bf16.msra.mxu0 %v1544_v1  ;;  %v262_v20 = vshll.u32 %v1673_v9, 16  ;;  %v609_v29 = vld [vmem:[%s1661_s29 + $0x4] sm:$0xe]  ;;  %v270_v30 = vshll.u32 %v1676_v10, 16  ;;  %v637_v42 = vunpack.c.l.b16 %v1704_v32 }
  0x12   : > { %v1685_v13 = vld [vmem:[%s1661_s29] sm:$0xff]   ;;  %v248_v21 = vrot.slane %v246_v14, 1  ;;  %v256_v22 = vrot.slane %v254_v16, 1  ;;  %v274_v31 = vshrl.u32 %v1676_v10, 16  ;;  %v1709_v36 = vld [vmem:[%s1661_s29 + $0xc] sm:$0xff]  ;;  %v636_v39 = vunpack.c.l.b16 %v609_v29  ;;  %v1570_v43 = vld [vmem:[%s1977_s1 + $0x78] sm:$0xff] }
  0x13   : > { %v239_v23 = vshrl.u32 %v1685_v13, 16  ;;  %v241_v24 = vshll.u32 %v1685_v13, 16  ;;  %v264_v25 = vrot.slane %v262_v20, 1  ;;  %v272_v37 = vrot.slane %v270_v30, 1  ;;  %v1572_v48 = vld [vmem:[%s1977_s1 + $0x88] sm:$0xff]  ;;  %v1561_v29 = vld [vmem:[%s1977_s1 + $0x50] sm:$0xff] }
  0x14   : > { %451 = vmatpush.bf16.msrb.mxu2 %v1547_v2  ;;  %371 = vmatpush.bf16.msrb.mxu1 %v1543_v3  ;;  %v252_v26 = vor.u32 %v250_v15, %v248_v21  ;;  %v260_v27 = vor.u32 %v258_v17, %v256_v22  ;;  %v647_v45 = vpack.c.b16 %v637_v42, %v636_v39  ;;  %v663_v46 = vshrl.u32 %v1709_v36, 16  ;;  %v1389_v52 = vld [vmem:[%s1661_s29 + $0x4] sm:$0xe]  ;;  %v1548_v53 = vld [vmem:[%s1661_s29 + $0x4] sm:$0xf0]  ;;  %v1549_v59 = vld [vmem:[%s1661_s29 + $0xc] sm:$0xff] }
  0x15   : > { %571 = vmatpush.bf16.msrb.mxu3 %v1554_v4  ;;  %736 = vmatpush.bf16.msrb.mxu0 %v1560_v5  ;;  %v243_v28 = vrot.slane %v241_v24, 1  ;;  %v276_v44 = vor.u32 %v274_v31, %v272_v37  ;;  %v666_v47 = vshll.u32 %v1709_v36, 16  ;;  %v266_v49 = vshrl.u32 %v1673_v9, 16  ;;  %v1740_v3 = vld [vmem:[%s1661_s29 + $0x14] sm:$0xff]  ;;  %v1577_v5 = vld [vmem:[%s1661_s29] sm:$0xf0] }
  0x16   : > { %v257_v33 = vsel %vm237_vm0, %v252_v26, %v256_v22  ;;  %v265_v34 = vsel %vm237_vm0, %v260_v27, %v264_v25  ;;  %v655_v50 = vshrl.u32 %v647_v45, 16  ;;  %v658_v51 = vshll.u32 %v647_v45, 16  ;;  %v1757_v24 = vld [vmem:[%s1661_s29 + $0x1c] sm:$0xff] }
  0x17   : > { %v244_v35 = vor.u32 %v243_v28, %v239_v23  ;;  %1349 = vmatmul.msk.bf16.vlgmr.msra.gmra.mxu1 %vm289_vm1, %v257_v33  ;;  %1350 = vmatmul.msk.bf16.vlgmr.msra.gmra.mxu2 %vm289_vm1, %v265_v34  ;;  %v665_v56 = vrot.slane %v663_v46, 1  ;;  %v668_v57 = vrot.slane %v666_v47, 2  ;;  %v268_v58 = vor.u32 %v266_v49, %v264_v25  ;;  %v1567_v25 = vld [vmem:[%s1977_s1 + $0x60] sm:$0xff] }
  0x18   : > { %452 = vmatpush.bf16.msrb.mxu2 %v1546_v6  ;;  %372 = vmatpush.bf16.msrb.mxu1 %v1542_v12  ;;  %v657_v54 = vrot.slane %v655_v50, 1  ;;  %v660_v55 = vrot.slane %v658_v51, 2  ;;  %v1390_v60 = vor.u32 %v1548_v53, %v1389_v52  ;;  %v530_v1 = vrot.slane %v1549_v59, 1  ;;  %v1578_v6 = vld [vmem:[%s1661_s29] sm:$0xe]  ;;  %v1552_v49 = vld [vmem:[%s1661_s29 + $0x24] sm:$0xff] }
  0x19   : > { %572 = vmatpush.bf16.msrb.mxu3 %v1553_v18  ;;  %737 = vmatpush.bf16.msrb.mxu0 %v1559_v19  ;;  %v249_v41 = vsel %vm237_vm0, %v244_v35, %v248_v21  ;;  %v669_v62 = vor.u32 %v668_v57, %v665_v56  ;;  %v273_v63 = vsel %vm237_vm0, %v268_v58, %v272_v37  ;;  %v672_v12 = vshrl.u32 %v1740_v3, 16  ;;  %v1551_v34 = vld [vmem:[%s1661_s29 + $0x1c] sm:$0xff]  ;;  %v774_v47 = vld [vmem:[%s1661_s29 + $0x4] sm:$0xc]  ;;  %v619_v53 = vld [vmem:[%s1661_s29 + $0x2c] sm:$0x1] }
  0x1a   : > { %1348 = vmatmul.msk.bf16.vlgmr.msra.gmra.mxu0 %vm289_vm1, %v249_v41  ;;  %1352 = vmatmul.msk.bf16.vlgmr.msra.gmra.mxu3 %vm289_vm1, %v276_v44  ;;  %v661_v61 = vor.u32 %v660_v55, %v657_v54  ;;  %v529_v0 = vrot.slane %v1390_v60, 1  ;;  %v675_v14 = vshll.u32 %v1740_v3, 16  ;;  %v1579_v15 = vor.u32 %v1578_v6, %v1577_v5  ;;  %v1571_v41 = vld [vmem:[%s1977_s1 + $0x80] sm:$0xff] }
  0x1b   : > { %v674_v16 = vrot.slane %v672_v12, 1  ;;  %v410_v19 = vrot.slane %v1667_v7, 1  ;;  %v681_v27 = vshrl.u32 %v1757_v24, 16  ;;  %v684_v28 = vshll.u32 %v1757_v24, 16 }
  0x1c   : > { %954 = vmatpush.bf16.msra.mxu2 %v1568_v38  ;;  %828 = vmatpush.bf16.msra.mxu1 %v1562_v40  ;;  %v670_v2 = vsel %vm653_vm2, %v661_v61, %v669_v62  ;;  %v531_v4 = vsel %vm408_vm3, %v529_v0, %v530_v1  ;;  %v677_v17 = vrot.slane %v675_v14, 2  ;;  %v409_v18 = vrot.slane %v1579_v15, 1  ;;  %v1781_v40 = vld [vmem:[%s1661_s29 + $0x24] sm:$0xff] }
  0x1d   : > { %1088 = vmatpush.bf16.msra.mxu3 %v1570_v43  ;;  %1180 = vmatpush.bf16.msra.mxu0 %v1572_v48  ;;  %v683_v30 = vrot.slane %v681_v27, 1  ;;  %v686_v31 = vrot.slane %v684_v28, 2  ;;  %v412_v33 = vrot.slane %v1670_v8, 1  ;;  %v534_v38 = vrot.slane %v1551_v34, 1  ;;  %v1126_v15 = vld [vmem:[%s1661_s29 + $0x8] sm:$0x8] }
  0x1e   : > { %v678_v20 = vor.u32 %v677_v17, %v674_v16  ;;  %v411_v21 = vsel %vm408_vm3, %v409_v18, %v410_v19  ;;  %v690_v44 = vshrl.u32 %v1781_v40, 16  ;;  %v693_v45 = vshll.u32 %v1781_v40, 16  ;;  %v1563_v16 = vld [vmem:[%s1661_s29 + $0x10] sm:$0xff] }
  0x1f   : > { %v687_v35 = vor.u32 %v686_v31, %v683_v30  ;;  %v413_v37 = vsel %vm408_vm3, %v410_v19, %v412_v33  ;;  %v414_v48 = vrot.slane %v1673_v9, 1  ;;  %v781_v50 = vunpack.c.l.b16 %v774_v47  ;;  %v1564_v30 = vld [vmem:[%s1661_s29 + $0x18] sm:$0xff] }
  0x20   : > { %v679_v23 = vsel %vm653_vm2, %v669_v62, %v678_v20  ;;  %955 = vmatpush.bf16.msra.mxu2 %v1567_v25  ;;  %829 = vmatpush.bf16.msra.mxu1 %v1561_v29  ;;  %v692_v46 = vrot.slane %v690_v44, 1  ;;  %v536_v55 = vrot.slane %v1552_v49, 1  ;;  %v785_v57 = vrot.slane %v1709_v36, 2  ;;  %v1604_v62 = vld [vmem:[%s1661_s29 + $0x20] sm:$0x70] }
  0x21   : > { %v688_v39 = vsel %vm653_vm2, %v678_v20, %v687_v35  ;;  %1181 = vmatpush.bf16.msra.mxu0 %v1571_v41  ;;  %v782_v52 = vpack.c.b16 %v637_v42, %v781_v50  ;;  %v415_v54 = vsel %vm408_vm3, %v412_v33, %v414_v48  ;;  %v646_v60 = vunpack.c.l.b16 %v619_v53 }
  0x22   : > { %v537_v42 = vsel %vm408_vm3, %v534_v38, %v536_v55  ;;  %v787_v36 = vrot.slane %v1740_v3, 2  ;;  %v416_v0 = vrot.slane %v1676_v10, 1  ;;  %v894_v12 = vunpack.c.h.b16 %v1704_v32 }
  0x23   : > { %v784_v56 = vrot.slane %v782_v52, 2  ;;  %v1809_v61 = vpack.c.b16 %v646_v60, %v646_v60  ;;  %v1133_v10 = vunpack.c.l.b16 %v1126_v15  ;;  %v1011_v19 = vshrl.u32 %v1563_v16, 16 }
  0x24   : > { %v417_v5 = vsel %vm408_vm3, %v414_v48, %v416_v0  ;;  %v1020_v31 = vshrl.u32 %v1564_v30, 16  ;;  %v1023_v33 = vshll.u32 %v1564_v30, 16  ;;  %v789_v48 = vrot.slane %v1757_v24, 2 }
  0x25   : > { %v786_v59 = vsel %vm783_vm4, %v784_v56, %v785_v57  ;;  %v1134_v32 = vpack.c.b16 %v894_v12, %v1133_v10  ;;  %v913_v49 = vrot.slane %v1564_v30, 2 }
  0x27   : > { %1351 = vmatmul.msk.bf16.gmra.mxu2 %vm289_vm1, %v273_v63  ;;  %1361 = vmatmul.msk.bf16.vlgmr.msrb.gmra.mxu1 %vm289_vm1, %v1685_v13  ;;  %v1550_v13 = vld [vmem:[%s1661_s29 + $0x14] sm:$0xff]  ;;  %v788_v63 = vsel %vm783_vm4, %v785_v57, %v787_v36  ;;  %v1136_v25 = vrot.slane %v1134_v32, 3 }
  0x28   : > { %v532_v22 = vrot.slane %v1550_v13, 1  ;;  %v1014_v13 = vshll.u32 %v1563_v16, 16 }
  0x2a   : > { %1448 = vmatmul.msk.bf16.vlgmr.msrb.gmra.mxu0 %vm289_vm1, %v670_v2  ;;  %1415 = vmatmul.msk.bf16.vlgmr.msrb.gmra.mxu3 %vm289_vm1, %v531_v4  ;;  %v533_v26 = vsel %vm408_vm3, %v530_v1, %v532_v22  ;;  %v535_v43 = vsel %vm408_vm3, %v532_v22, %v534_v38  ;;  %v866_v1 = vld [vmem:[%s1661_s29 + $0x8] sm:$0xc]  ;;  %v1599_v4 = vor.u32 %v1604_v62, %v1679_v11  ;;  %v1013_v22 = vrot.slane %v1011_v19, 2 }
  0x2b   : > { %v893_v6 = vunpack.c.l.b16 %v866_v1  ;;  %v1025_v38 = vrot.slane %v1023_v33, 3 }
  0x2d   : > { %v904_v17 = vpack.c.b16 %v894_v12, %v893_v6 }
  0x2f   : > { %v1003_v11 = vshrl.u32 %v904_v17, 16  ;;  %v1006_v18 = vshll.u32 %v904_v17, 16  ;;  %v910_v34 = vrot.slane %v904_v17, 2 }
  0x31   : > { %v1005_v20 = vrot.slane %v1003_v11, 2 }
  0x37   : > { %1362 = vmatmul.msk.bf16.gmra.mxu1 %vm289_vm1, %v1667_v7  ;;  %1378 = vmatmul.msk.bf16.vlgmr.msrb.gmra.mxu2 %vm289_vm1, %v411_v21  ;;  %v1569_v7 = vld [vmem:[%s1977_s1 + $0x70] sm:$0xff]  ;;  %v1008_v21 = vrot.slane %v1006_v18, 3 }
  0x38   : > { %1089 = vmatpush.bf16.msra.mxu3 %v1569_v7 }
  0x39   : > { %v1009_v27 = vor.u32 %v1008_v21, %v1005_v20 }
  0x3a   : > { %1449 = vmatmul.msk.bf16.gmra.mxu0 %vm289_vm1, %v679_v23  ;;  %1416 = vmatmul.msk.bf16.gmra.mxu3 %vm289_vm1, %v533_v26  ;;  %v1016_v23 = vrot.slane %v1014_v13, 3  ;;  %v1137_v26 = vrot.slane %v1563_v16, 3 }
  0x3c   : > { %v1017_v28 = vor.u32 %v1016_v23, %v1013_v22  ;;  %v1138_v7 = vsel %vm1135_vm5, %v1136_v25, %v1137_v26 }
  0x3e   : > { %v1018_v29 = vsel %vm1001_vm6, %v1009_v27, %v1017_v28  ;;  %v793_v27 = vrot.slane %v1809_v61, 2 }
  0x47   : > { %1363 = vmatmul.msk.bf16.gmra.mxu1 %vm289_vm1, %v1670_v8  ;;  %1379 = vmatmul.msk.bf16.gmra.mxu2 %vm289_vm1, %v413_v37  ;;  %v695_v8 = vrot.slane %v693_v45, 2  ;;  %v1022_v37 = vrot.slane %v1020_v31, 2 }
  0x49   : > { %v696_v51 = vor.u32 %v695_v8, %v692_v46  ;;  %v1843_v46 = vld [vmem:[%s1661_s29 + $0x20] sm:$0xff] }
  0x4a   : > { %1450 = vmatmul.msk.bf16.gmra.mxu0 %vm289_vm1, %v688_v39  ;;  %1417 = vmatmul.msk.bf16.gmra.mxu3 %vm289_vm1, %v535_v43  ;;  %v1139_v39 = vrot.slane %v1564_v30, 3  ;;  %v1026_v43 = vor.u32 %v1025_v38, %v1022_v37  ;;  %v1029_v8 = vshrl.u32 %v1843_v46, 16  ;;  %v1032_v47 = vshll.u32 %v1843_v46, 16 }
  0x4b   : > { %v697_v58 = vsel %vm653_vm2, %v687_v35, %v696_v51  ;;  %v911_v35 = vrot.slane %v1563_v16, 2  ;;  %v1141_v52 = vrot.slane %v1843_v46, 3 }
  0x4c   : > { %v1140_v44 = vsel %vm1135_vm5, %v1137_v26, %v1139_v39  ;;  %v1027_v45 = vsel %vm1001_vm6, %v1017_v28, %v1026_v43  ;;  %v1031_v50 = vrot.slane %v1029_v8, 2 }
  0x4d   : > { %v912_v41 = vsel %vm783_vm4, %v910_v34, %v911_v35 }
  0x57   : > { %1364 = vmatmul.msk.bf16.gmra.mxu1 %vm289_vm1, %v1673_v9  ;;  %1380 = vmatmul.msk.bf16.gmra.mxu2 %vm289_vm1, %v415_v54  ;;  %v699_v9 = vshll.u32 %v1809_v61, 16  ;;  %v790_v54 = vsel %vm783_vm4, %v787_v36, %v789_v48 }
  0x59   : > { %v701_v2 = vrot.slane %v699_v9, 2  ;;  %v791_v9 = vrot.slane %v1781_v40, 2 }
  0x5a   : > { %1451 = vmatmul.msk.bf16.gmra.mxu0 %vm289_vm1, %v697_v58  ;;  %1418 = vmatmul.msk.bf16.gmra.mxu3 %vm289_vm1, %v537_v42  ;;  %v1142_v58 = vsel %vm1135_vm5, %v1139_v39, %v1141_v52  ;;  %v876_v39 = vld [vmem:[%s1661_s29 + $0x30] sm:$0x1] }
  0x5b   : > { %v702_v14 = vsel %vm653_vm2, %v696_v51, %v701_v2  ;;  %v1034_v51 = vrot.slane %v1032_v47, 3  ;;  %v794_v34 = vsel %vm783_vm4, %v791_v9, %v793_v27 }
  0x5d   : > { %v1035_v56 = vor.u32 %v1034_v51, %v1031_v50 }
  0x5f   : > { %v1036_v24 = vsel %vm1001_vm6, %v1026_v43, %v1035_v56 }
  0x67   : > { %1365 = vmatmul.msk.bf16.gmra.mxu1 %vm289_vm1, %v1599_v4  ;;  %1381 = vmatmul.msk.bf16.gmra.mxu2 %vm289_vm1, %v417_v5  ;;  %v992_v4 = vld [vmem:[%s1661_s29 + $0x30] sm:$0x3] }
  0x68   : > { %v999_v17 = vunpack.c.l.b16 %v992_v4 }
  0x6a   : > { %1452 = vmatmul.msk.bf16.gmra.mxu0 %vm289_vm1, %v702_v14  ;;  %1419 = vmatmul.msk.bf16.gmra.mxu3 %vm289_vm1, %v536_v55  ;;  %v914_v55 = vsel %vm783_vm4, %v911_v35, %v913_v49  ;;  %v792_v14 = vsel %vm783_vm4, %v789_v48, %v791_v9  ;;  %v1000_v13 = vpack.c.b16 %v999_v17, %v999_v17 }
  0x6c   : > { %v1047_v21 = vshrl.u32 %v1000_v13, 16  ;;  %v1050_v22 = vshll.u32 %v1000_v13, 16  ;;  %v1145_v31 = vrot.slane %v1000_v13, 3 }
  0x77   : > { %1382 = vmatmul.msk.bf16.gmra.mxu2 %vm289_vm1, %v416_v0  ;;  %1465 = vmatmul.msk.bf16.vlgmr.msra.gmra.mxu1 %vm289_vm1, %v786_v59  ;;  %v1860_v59 = vld [vmem:[%s1661_s29 + $0x28] sm:$0xff]  ;;  %v915_v0 = vrot.slane %v1843_v46, 2  ;;  %s1587_s29 = smul.u32 80, %s1981_s13 }
  0x78   : > { %v1038_v42 = vshrl.u32 %v1860_v59, 16  ;;  %v1041_v36 = vshll.u32 %v1860_v59, 16  ;;  %v1143_v6 = vrot.slane %v1860_v59, 3  ;;  %v917_v28 = vrot.slane %v1860_v59, 2 }
  0x79   : > { %v916_v15 = vsel %vm783_vm4, %v913_v49, %v915_v0  ;;  %s1928_s5 = scalar_lea.vmem %s1978_s2, %s1587_s29  ;;  %s1934_s7 = scalar_lea.vmem %s1979_s3, %s1587_s29 }
  0x7a   : > { %1532 = vmatmul.msk.bf16.vlgmr.msra.gmra.mxu0 %vm289_vm1, %v1138_v7  ;;  %1515 = vmatmul.msk.bf16.vlgmr.msra.gmra.mxu3 %vm289_vm1, %v1018_v29  ;;  %v1040_v1 = vrot.slane %v1038_v42, 2  ;;  %v1043_v2 = vrot.slane %v1041_v36, 3  ;;  %v1144_v18 = vsel %vm1135_vm5, %v1141_v52, %v1143_v6  ;;  %v1049_v7 = vrot.slane %v1047_v21, 2 }
  0x7b   : > { %v1052_v29 = vrot.slane %v1050_v22, 3  ;;  %v918_v35 = vsel %vm783_vm4, %v915_v0, %v917_v28 }
  0x7c   : > { %v1044_v16 = vor.u32 %v1043_v2, %v1040_v1 }
  0x7d   : > { %v1053_v37 = vor.u32 %v1052_v29, %v1049_v7 }
  0x7e   : > { %v1045_v19 = vsel %vm1001_vm6, %v1035_v56, %v1044_v16 }
  0x7f   : > { %v1054_v61 = vsel %vm1001_vm6, %v1044_v16, %v1053_v37 }
  0x87   : > { %1466 = vmatmul.msk.bf16.gmra.mxu1 %vm289_vm1, %v788_v63  ;;  %1498 = vmatmul.msk.bf16.vlgmr.msra.gmra.mxu2 %vm289_vm1, %v912_v41 }
  0x8a   : > { %1533 = vmatmul.msk.bf16.gmra.mxu0 %vm289_vm1, %v1140_v44  ;;  %1516 = vmatmul.msk.bf16.gmra.mxu3 %vm289_vm1, %v1027_v45  ;;  %v1146_v44 = vsel %vm1135_vm5, %v1143_v6, %v1145_v31  ;;  %v903_v45 = vunpack.c.l.b16 %v876_v39 }
  0x8c   : > { %v909_v48 = vpack.c.b16 %v903_v45, %v903_v45 }
  0x94   : > { %v319_v53 = vpop.f32.mrf.mxu1 }
  0x97   : > { %v314_v57 = vpop.f32.mrf.mxu0  ;;  %1467 = vmatmul.msk.bf16.gmra.mxu1 %vm289_vm1, %v790_v54  ;;  %1499 = vmatmul.msk.bf16.gmra.mxu2 %vm289_vm1, %v914_v55  ;;  %v919_v54 = vrot.slane %v909_v48, 2 }
  0x9a   : > { %1534 = vmatmul.msk.bf16.gmra.mxu0 %vm289_vm1, %v1142_v58  ;;  %v1863_v3 = vpop.f32.mrf.mxu2  ;;  %1517 = vmatmul.msk.bf16.gmra.mxu3 %vm289_vm1, %v1036_v24  ;;  %v920_v58 = vsel %vm783_vm4, %v917_v28, %v919_v54 }
  0x9c   : > { %v321_v60 = vpop.f32.mrf.mxu1 }
  0x9d   : > { %v1868_v62 = vpop.f32.mrf.mxu3 }
  0x9f   : > { %v316_v63 = vpop.f32.mrf.mxu0 }
  0xa2   : > { %v1873_v5 = vpop.f32.mrf.mxu2 }
  0xa4   : > { %v374_v12 = vpop.f32.mrf.mxu1 }
  0xa5   : > { %v375_v10 = vadd.f32 %v374_v12, %v314_v57  ;;  %v1878_v11 = vpop.f32.mrf.mxu3 }
  0xa7   : > { %v739_v40 = vpop.f32.mrf.mxu0  ;;  %1468 = vmatmul.msk.bf16.gmra.mxu1 %vm289_vm1, %v792_v14  ;;  %1500 = vmatmul.msk.bf16.gmra.mxu2 %vm289_vm1, %v916_v15 }
  0xaa   : > { %1535 = vmatmul.msk.bf16.gmra.mxu0 %vm289_vm1, %v1144_v18  ;;  %v329_v32 = vpop.f32.mrf.mxu2  ;;  %1518 = vmatmul.msk.bf16.gmra.mxu3 %vm289_vm1, %v1045_v19 }
  0xac   : > { %v376_v20 = vpop.f32.mrf.mxu1 }
  0xad   : > { %v377_v23 = vadd.f32 %v376_v20, %v316_v63  ;;  %v574_v25 = vpop.f32.mrf.mxu3 }
  0xaf   : > { %v741_v26 = vpop.f32.mrf.mxu0 }
  0xb2   : > { %v331_v30 = vpop.f32.mrf.mxu2 }
  0xb4   : > { %v379_v33 = vpop.f32.mrf.mxu1 }
  0xb5   : > { %v380_v38 = vadd.f32 %v379_v33, %v319_v53  ;;  %v576_v41 = vpop.f32.mrf.mxu3 }
  0xb7   : > { %v744_v43 = vpop.f32.mrf.mxu0  ;;  %1469 = vmatmul.msk.bf16.gmra.mxu1 %vm289_vm1, %v794_v34  ;;  %1501 = vmatmul.msk.bf16.gmra.mxu2 %vm289_vm1, %v918_v35 }
  0xba   : > { %1536 = vmatmul.msk.bf16.gmra.mxu0 %vm289_vm1, %v1146_v44  ;;  %v454_v46 = vpop.f32.mrf.mxu2  ;;  %1519 = vmatmul.msk.bf16.gmra.mxu3 %vm289_vm1, %v1054_v61 }
  0xbb   : > { %v479_v8 = vadd.f32 %v454_v46, %v375_v10 }
  0xbc   : > { %v381_v47 = vpop.f32.mrf.mxu1 }
  0xbd   : > { %v599_v49 = vadd.f32 %v574_v25, %v479_v8  ;;  %v382_v50 = vadd.f32 %v381_v47, %v321_v60  ;;  %v579_v51 = vpop.f32.mrf.mxu3 }
  0xbf   : > { %v746_v52 = vpop.f32.mrf.mxu0  ;;  %v1897_v53 = vadd.f32 %v739_v40, %v599_v49 }
  0xc2   : > { %v456_v55 = vpop.f32.mrf.mxu2 }
  0xc3   : > { %v480_v56 = vadd.f32 %v456_v55, %v377_v23 }
  0xc4   : > { %v384_v57 = vpop.f32.mrf.mxu1 }
  0xc5   : > { %v600_v24 = vadd.f32 %v576_v41, %v480_v56  ;;  %v385_v59 = vadd.f32 %v384_v57, %v1863_v3  ;;  %v581_v42 = vpop.f32.mrf.mxu3 }
  0xc7   : > { %v749_v36 = vpop.f32.mrf.mxu0  ;;  %1502 = vmatmul.msk.bf16.gmra.mxu2 %vm289_vm1, %v920_v58  ;;  %v1902_v63 = vadd.f32 %v741_v26, %v600_v24 }
  0xca   : > { %v459_v60 = vpop.f32.mrf.mxu2 }
  0xcb   : > { %v481_v9 = vadd.f32 %v459_v60, %v380_v38 }
  0xcc   : > { %v386_v0 = vpop.f32.mrf.mxu1 }
  0xcd   : > { %v601_v1 = vadd.f32 %v579_v51, %v481_v9  ;;  %v387_v2 = vadd.f32 %v386_v0, %v1873_v5  ;;  %v584_v4 = vpop.f32.mrf.mxu3  ;;  %v1218_v0 = vld [vmem:[%s1928_s5] sm:$0xff] }
  0xcf   : > { %v751_v6 = vpop.f32.mrf.mxu0  ;;  %v1905_v12 = vadd.f32 %v744_v43, %v601_v1 }
  0xd2   : > { %v461_v14 = vpop.f32.mrf.mxu2 }
  0xd3   : > { %v482_v15 = vadd.f32 %v461_v14, %v382_v50 }
  0xd4   : > { %v389_v16 = vpop.f32.mrf.mxu1 }
  0xd5   : > { %v602_v3 = vadd.f32 %v581_v42, %v482_v15  ;;  %v390_v17 = vadd.f32 %v389_v16, %v329_v32  ;;  %v586_v10 = vpop.f32.mrf.mxu3 }
  0xd7   : > { %v754_v40 = vpop.f32.mrf.mxu0  ;;  %v1907_v18 = vadd.f32 %v746_v52, %v602_v3 }
  0xda   : > { %v464_v19 = vpop.f32.mrf.mxu2 }
  0xdb   : > { %v483_v13 = vadd.f32 %v464_v19, %v385_v59 }
  0xdc   : > { %v391_v20 = vpop.f32.mrf.mxu1 }
  0xdd   : > { %v603_v21 = vadd.f32 %v584_v4, %v483_v13  ;;  %v392_v22 = vadd.f32 %v391_v20, %v331_v30  ;;  %v589_v23 = vpop.f32.mrf.mxu3 }
  0xdf   : > { %v756_v5 = vpop.f32.mrf.mxu0  ;;  %v1909_v25 = vadd.f32 %v749_v36, %v603_v21 }
  0xe2   : > { %v466_v26 = vpop.f32.mrf.mxu2 }
  0xe3   : > { %v484_v27 = vadd.f32 %v466_v26, %v387_v2 }
  0xe4   : > { %v394_v28 = vpop.f32.mrf.mxu1 }
  0xe5   : > { %v604_v7 = vadd.f32 %v586_v10, %v484_v27  ;;  %v395_v29 = vadd.f32 %v394_v28, %v1868_v62  ;;  %v591_v32 = vpop.f32.mrf.mxu3 }
  0xe7   : > { %v1912_v31 = vadd.f32 %v751_v6, %v604_v7  ;;  %v759_v33 = vpop.f32.mrf.mxu0 }
  0xea   : > { %v469_v34 = vpop.f32.mrf.mxu2 }
  0xeb   : > { %v485_v35 = vadd.f32 %v469_v34, %v390_v17  ;;  %v1219_v17 = vld [vmem:[%s1928_s5 + $0x8] sm:$0xff] }
  0xec   : > { %v396_v37 = vpop.f32.mrf.mxu1 }
  0xed   : > { %v605_v38 = vadd.f32 %v589_v23, %v485_v35  ;;  %v397_v30 = vadd.f32 %v396_v37, %v1878_v11  ;;  %v594_v39 = vpop.f32.mrf.mxu3  ;;  %v1221_v35 = vld [vmem:[%s1928_s5 + $0x18] sm:$0xff] }
  0xef   : > { %v1915_v41 = vadd.f32 %v754_v40, %v605_v38  ;;  %v761_v44 = vpop.f32.mrf.mxu0 }
  0xf2   : > { %v471_v43 = vpop.f32.mrf.mxu2 }
  0xf3   : > { %v486_v61 = vadd.f32 %v471_v43, %v392_v22 }
  0xf4   : > { %v831_v45 = vpop.f32.mrf.mxu1 }
  0xf5   : > { %v606_v46 = vadd.f32 %v591_v32, %v486_v61  ;;  %v596_v62 = vpop.f32.mrf.mxu3  ;;  %v856_v42 = vadd.f32 %v831_v45, %v1897_v53  ;;  %v1222_v61 = vld [vmem:[%s1928_s5 + $0x20] sm:$0xff] }
  0xf7   : > { %v1917_v8 = vadd.f32 %v756_v5, %v606_v46  ;;  %v1183_v49 = vpop.f32.mrf.mxu0  ;;  %v1220_v5 = vld [vmem:[%s1928_s5 + $0x10] sm:$0xff] }
  0xfa   : > { %v474_v47 = vpop.f32.mrf.mxu2 }
  0xfb   : > { %v487_v48 = vadd.f32 %v474_v47, %v395_v29 }
  0xfc   : > { %v833_v51 = vpop.f32.mrf.mxu1 }
  0xfd   : > { %v607_v50 = vadd.f32 %v594_v39, %v487_v48  ;;  %v1091_v52 = vpop.f32.mrf.mxu3  ;;  %v857_v4 = vadd.f32 %v833_v51, %v1902_v63  ;;  %v1223_v51 = vld [vmem:[%s1928_s5 + $0x28] sm:$0xff] }
  0xff   : > { %v1919_v54 = vadd.f32 %v759_v33, %v607_v50  ;;  %v1185_v58 = vpop.f32.mrf.mxu0 }
 0x102   : > { %v476_v11 = vpop.f32.mrf.mxu2 }
 0x103   : > { %v488_v55 = vadd.f32 %v476_v11, %v397_v30 }
 0x104   : > { %v836_v59 = vpop.f32.mrf.mxu1 }
 0x105   : > { %v608_v56 = vadd.f32 %v596_v62, %v488_v55  ;;  %v1093_v57 = vpop.f32.mrf.mxu3  ;;  %v858_v19 = vadd.f32 %v836_v59, %v1905_v12 }
 0x107   : > { %v1922_v24 = vadd.f32 %v761_v44, %v608_v56  ;;  %v1188_v53 = vpop.f32.mrf.mxu0 }
 0x10a   : > { %v957_v36 = vpop.f32.mrf.mxu2 }
 0x10b   : > { %v982_v60 = vadd.f32 %v957_v36, %v856_v42  ;;  %v1224_v36 = vld [vmem:[%s1928_s5 + $0x30] sm:$0xff] }
 0x10c   : > { %v838_v14 = vpop.f32.mrf.mxu1 }
 0x10d   : > { %v1116_v9 = vadd.f32 %v1091_v52, %v982_v60  ;;  %v1096_v1 = vpop.f32.mrf.mxu3  ;;  %v859_v27 = vadd.f32 %v838_v14, %v1907_v18  ;;  %v1225_v14 = vld [vmem:[%s1928_s5 + $0x38] sm:$0xff] }
 0x10f   : > { %v1208_v2 = vadd.f32 %v1183_v49, %v1116_v9  ;;  %v1190_v21 = vpop.f32.mrf.mxu0 }
 0x111   : > { %v1228_v6 = vadd.f32 %v1218_v0, %v1208_v2 }
 0x112   : > { %v959_v15 = vpop.f32.mrf.mxu2 }
 0x113   : > { %1238 = vst.msk [vmem:[%s1934_s7] sm:$0xff] %vm289_vm1, %v1228_v6  ;;  %v983_v16 = vadd.f32 %v959_v15, %v857_v4 }
 0x114   : > { %v841_v22 = vpop.f32.mrf.mxu1 }
 0x115   : > { %v1117_v3 = vadd.f32 %v1093_v57, %v983_v16  ;;  %v1098_v40 = vpop.f32.mrf.mxu3  ;;  %v860_v38 = vadd.f32 %v841_v22, %v1909_v25 }
 0x117   : > { %v1209_v10 = vadd.f32 %v1185_v58, %v1117_v3  ;;  %v1193_v32 = vpop.f32.mrf.mxu0 }
 0x119   : > { %v1229_v13 = vadd.f32 %v1219_v17, %v1209_v10 }
 0x11a   : > { %v962_v20 = vpop.f32.mrf.mxu2 }
 0x11b   : > { %1239 = vst.msk [vmem:[%s1934_s7 + $0x8] sm:$0xff] %vm289_vm1, %v1229_v13  ;;  %v984_v63 = vadd.f32 %v962_v20, %v858_v19  ;;  %v1226_v20 = vld [vmem:[%s1928_s5 + $0x40] sm:$0xff] }
 0x11c   : > { %v843_v34 = vpop.f32.mrf.mxu1 }
 0x11d   : > { %v1118_v23 = vadd.f32 %v1096_v1, %v984_v63  ;;  %v1101_v29 = vpop.f32.mrf.mxu3  ;;  %v861_v47 = vadd.f32 %v843_v34, %v1912_v31 }
 0x11f   : > { %v1210_v26 = vadd.f32 %v1188_v53, %v1118_v23  ;;  %v1195_v45 = vpop.f32.mrf.mxu0 }
 0x121   : > { %v1230_v28 = vadd.f32 %v1220_v5, %v1210_v26 }
 0x122   : > { %v964_v7 = vpop.f32.mrf.mxu2 }
 0x123   : > { %1240 = vst.msk [vmem:[%s1934_s7 + $0x10] sm:$0xff] %vm289_vm1, %v1230_v28  ;;  %v985_v12 = vadd.f32 %v964_v7, %v859_v27  ;;  %v1227_v28 = vld [vmem:[%s1928_s5 + $0x48] sm:$0x3f] }
 0x124   : > { %v846_v62 = vpop.f32.mrf.mxu1 }
 0x125   : > { %v1119_v33 = vadd.f32 %v1098_v40, %v985_v12  ;;  %v1103_v43 = vpop.f32.mrf.mxu3  ;;  %v862_v56 = vadd.f32 %v846_v62, %v1915_v41 }
 0x127   : > { %v1211_v37 = vadd.f32 %v1190_v21, %v1119_v33  ;;  %v1198_v55 = vpop.f32.mrf.mxu0 }
 0x129   : > { %v1231_v30 = vadd.f32 %v1221_v35, %v1211_v37 }
 0x12a   : > { %v967_v39 = vpop.f32.mrf.mxu2 }
 0x12b   : > { %1241 = vst.msk [vmem:[%s1934_s7 + $0x18] sm:$0xff] %vm289_vm1, %v1231_v30  ;;  %v986_v18 = vadd.f32 %v967_v39, %v860_v38 }
 0x12c   : > { %v848_v58 = vpop.f32.mrf.mxu1 }
 0x12d   : > { %v1120_v44 = vadd.f32 %v1101_v29, %v986_v18  ;;  %v1106_v52 = vpop.f32.mrf.mxu3  ;;  %v863_v0 = vadd.f32 %v848_v58, %v1917_v8 }
 0x12f   : > { %v1212_v46 = vadd.f32 %v1193_v32, %v1120_v44  ;;  %v1200_v2 = vpop.f32.mrf.mxu0 }
 0x131   : > { %v1232_v48 = vadd.f32 %v1222_v61, %v1212_v46 }
 0x132   : > { %v969_v49 = vpop.f32.mrf.mxu2 }
 0x133   : > { %1242 = vst.msk [vmem:[%s1934_s7 + $0x20] sm:$0xff] %vm289_vm1, %v1232_v48  ;;  %v987_v25 = vadd.f32 %v969_v49, %v861_v47 }
 0x134   : > { %v851_v4 = vpop.f32.mrf.mxu1 }
 0x135   : > { %v1121_v50 = vadd.f32 %v1103_v43, %v987_v25  ;;  %v1108_v9 = vpop.f32.mrf.mxu3  ;;  %v864_v16 = vadd.f32 %v851_v4, %v1919_v54 }
 0x137   : > { %v1213_v11 = vadd.f32 %v1195_v45, %v1121_v50  ;;  %v1203_v40 = vpop.f32.mrf.mxu0 }
 0x139   : > { %v1233_v57 = vadd.f32 %v1223_v51, %v1213_v11 }
 0x13a   : > { %v972_v59 = vpop.f32.mrf.mxu2 }
 0x13b   : > { %1243 = vst.msk [vmem:[%s1934_s7 + $0x28] sm:$0xff] %vm289_vm1, %v1233_v57  ;;  %v988_v31 = vadd.f32 %v972_v59, %v862_v56 }
 0x13c   : > { %v853_v13 = vpop.f32.mrf.mxu1 }
 0x13d   : > { %v1122_v42 = vadd.f32 %v1106_v52, %v988_v31  ;;  %v1111_v17 = vpop.f32.mrf.mxu3  ;;  %v865_v63 = vadd.f32 %v853_v13, %v1922_v24 }
 0x13f   : > { %v1214_v60 = vadd.f32 %v1198_v55, %v1122_v42  ;;  %v1205_v27 = vpop.f32.mrf.mxu0 }
 0x141   : > { %v1234_v1 = vadd.f32 %v1224_v36, %v1214_v60 }
 0x142   : > { %v974_v53 = vpop.f32.mrf.mxu2 }
 0x143   : > { %1244 = vst.msk [vmem:[%s1934_s7 + $0x30] sm:$0xff] %vm289_vm1, %v1234_v1  ;;  %v989_v41 = vadd.f32 %v974_v53, %v863_v0 }
 0x145   : > { %v1123_v6 = vadd.f32 %v1108_v9, %v989_v41  ;;  %v1113_v5 = vpop.f32.mrf.mxu3 }
 0x147   : > { %v1215_v15 = vadd.f32 %v1200_v2, %v1123_v6 }
 0x149   : > { %v1235_v3 = vadd.f32 %v1225_v14, %v1215_v15 }
 0x14a   : > { %v977_v10 = vpop.f32.mrf.mxu2 }
 0x14b   : > { %1245 = vst.msk [vmem:[%s1934_s7 + $0x38] sm:$0xff] %vm289_vm1, %v1235_v3  ;;  %v990_v8 = vadd.f32 %v977_v10, %v864_v16 }
 0x14d   : > { %v1124_v19 = vadd.f32 %v1111_v17, %v990_v8 }
 0x14f   : > { %v1216_v21 = vadd.f32 %v1203_v40, %v1124_v19 }
 0x151   : > { %v1236_v22 = vadd.f32 %v1226_v20, %v1216_v21 }
 0x152   : > { %v979_v23 = vpop.f32.mrf.mxu2 }
 0x153   : > { %1246 = vst.msk [vmem:[%s1934_s7 + $0x40] sm:$0xff] %vm289_vm1, %v1236_v22  ;;  %v991_v54 = vadd.f32 %v979_v23, %v865_v63 }
 0x155   : > { %v1125_v26 = vadd.f32 %v1113_v5, %v991_v54 }
 0x157   : > { %v1217_v7 = vadd.f32 %v1205_v27, %v1125_v26 }
 0x159   : > { %v1237_v29 = vadd.f32 %v1227_v28, %v1217_v7 }
 0x15b   : > { %1248 = vst.msk [vmem:[%s1934_s7 + $0x48] sm:$0x3f] %vm1247_vm7, %v1237_v29 }
 0x15c PF: > { %s13_s12 = sadd.s32 1, %s1607_s12  }
 0x15d   : > { %p10_p4 = scmp.ge.s32.totalorder %s13_s12, 4  }
 0x15f   :  { %12 = sbr.rel (!%p10_p4) target bundleno = 1 (0x1), region = 73 }

// kernel: forward.6
= control target key start
LH: loop header
LB: loop body
LE: loop exit
PB: predicated region body
PF: predicated region fallthrough
CT: control target
= control target key end

     0   :  { %s1659_s15 = smov 0   ;;  %s2021_s0 = inlined_call_operand.vmem [shape: bf16[2,1,100,32], index: 0, kind: input, shape index: {}]   ;;  %s2022_s1 = inlined_call_operand.vmem [shape: bf16[9,32,32], index: 1, kind: input, shape index: {}]   ;;  %s2023_s2 = inlined_call_operand.vmem [shape: f32[1,32], index: 2, kind: input, shape index: {}]   ;;  %s2024_s3 = inlined_call_operand.vmem [shape: f32[1,32], index: 3, kind: input, shape index: {}]   ;;  %s2025_s4 = inlined_call_operand.vmem [shape: bf16[2,78,32], index: 4, kind: output, shape index: {}]  }
   0x1 LB: > { %s1340_s16 = sadd.s32 4294967295, %s1632_s15   ;;  %p1344_p0 = scmp.ge.s32.totalorder %s1632_s15, 1  ;;  %s1632_s15 = sphi %s1659_s15, %s14_s15  }
   0x2   : > { %p162_p1 = scmp.lt.s32.totalorder %s1632_s15, 3 }
   0x4   : > { %p163_p2 = pnand %p1344_p0, %p162_p1 }
   0x5   : > { %p188_p3 = scmp.lt.s32.totalorder (!%p163_p2), %s1340_s16, 1 }
   0x6   : > { %166 = sbr.rel (%p163_p2) target bundleno = 354 (0x162), region = 36 }
   0xb   : > { %v1568_v0 = vld [vmem:[%s2022_s1 + $0x18] sm:$0xff]  ;;  %v1567_v1 = vld [vmem:[%s2022_s1 + $0x10] sm:$0xff]  ;;  %s2027_s16 = smov (!%p188_p3, %s1340_s16), 1  ;;  %v1570_v2 = vld [vmem:[%s2022_s1 + $0x28] sm:$0xff]  ;;  %vm244_vm0 = vsmask.f32 7424 }
   0xc   : > { %1603 = vmatpush.bf16.msra.mxu1 %v1568_v0  ;;  %1604 = vmatpush.bf16.msra.mxu2 %v1568_v0  ;;  %s1609_s23 = smul.u32 52, %s2027_s16  ;;  %v1566_v3 = vld [vmem:[%s2022_s1 + $0x8] sm:$0xff]  ;;  %v1577_v4 = vld [vmem:[%s2022_s1 + $0x38] sm:$0xff]  ;;  %v1569_v6 = vld [vmem:[%s2022_s1 + $0x20] sm:$0xff]  ;;  %vm296_vm1 = vcmask 261120   ;;  %vm415_vm3 = vcmask 1046528  }
   0xd   : > { %1605 = vmatpush.bf16.msra.mxu3 %v1568_v0  ;;  %318 = vmatpush.bf16.msra.mxu0 %v1568_v0  ;;  %v1583_v5 = vld [vmem:[%s2022_s1 + $0x48] sm:$0xff]  ;;  %v1565_v12 = vld [vmem:[%s2022_s1] sm:$0xff]  ;;  %v1576_v18 = vld [vmem:[%s2022_s1 + $0x30] sm:$0xff]  ;;  %vm660_vm2 = vsmask.f32 6400  ;;  %vm790_vm4 = vcmask 1045504  }
   0xe   : > { %s1691_s6 = scalar_lea.vmem %s2021_s0, %s1609_s23  ;;  %v1582_v19 = vld [vmem:[%s2022_s1 + $0x40] sm:$0xff]  ;;  %v1591_v38 = vld [vmem:[%s2022_s1 + $0x68] sm:$0xff]  ;;  %v1585_v40 = vld [vmem:[%s2022_s1 + $0x58] sm:$0xff]  ;;  %vm1142_vm5 = vcmask 1044480   ;;  %vm1008_vm6 = vsmask.f32 5376 }
   0xf   : > { %v1697_v7 = vld [vmem:[%s1691_s6 + $0x8] sm:$0xff]  ;;  %v1700_v8 = vld [vmem:[%s1691_s6 + $0x10] sm:$0xff]  ;;  %v1703_v9 = vld [vmem:[%s1691_s6 + $0x18] sm:$0xff]  ;;  %s1610_s11 = smul.u32 40, %s2027_s16  ;;  %vm1273_vm7 = vcmask 257024   ;;  %vm1283_vm8 = vcmask 256000  }
  0x10   : > { %1606 = vmatpush.bf16.msra.mxu1 %v1567_v1  ;;  %1607 = vmatpush.bf16.msra.mxu2 %v1567_v1  ;;  %v1706_v10 = vld [vmem:[%s1691_s6 + $0x20] sm:$0xff]   ;;  %v253_v14 = vshll.u32 %v1697_v7, 16  ;;  %v257_v15 = vshrl.u32 %v1697_v7, 16  ;;  %v261_v16 = vshll.u32 %v1700_v8, 16  ;;  %v265_v17 = vshrl.u32 %v1700_v8, 16  ;;  %v1734_v32 = vld [vmem:[%s1691_s6 + $0x8] sm:$0xff]  }
  0x11   : > { %1608 = vmatpush.bf16.msra.mxu3 %v1567_v1  ;;  %v1709_v11 = vld [vmem:[%s1691_s6 + $0x20] sm:$0xf]   ;;  %319 = vmatpush.bf16.msra.mxu0 %v1567_v1  ;;  %v269_v20 = vshll.u32 %v1703_v9, 16  ;;  %v616_v29 = vld [vmem:[%s1691_s6 + $0x4] sm:$0xe]  ;;  %v277_v30 = vshll.u32 %v1706_v10, 16  ;;  %v644_v42 = vunpack.c.l.b16 %v1734_v32  ;;  %s1971_s14 = scalar_lea.vmem %s2025_s4, %s1610_s11 }
  0x12   : > { %v1715_v13 = vld [vmem:[%s1691_s6] sm:$0xff]   ;;  %v255_v21 = vrot.slane %v253_v14, 1  ;;  %v263_v22 = vrot.slane %v261_v16, 1  ;;  %v281_v31 = vshrl.u32 %v1706_v10, 16  ;;  %v1739_v36 = vld [vmem:[%s1691_s6 + $0xc] sm:$0xff]  ;;  %v643_v39 = vunpack.c.l.b16 %v616_v29  ;;  %v1593_v43 = vld [vmem:[%s2022_s1 + $0x78] sm:$0xff] }
  0x13   : > { %v246_v23 = vshrl.u32 %v1715_v13, 16  ;;  %v248_v24 = vshll.u32 %v1715_v13, 16  ;;  %v271_v25 = vrot.slane %v269_v20, 1  ;;  %v279_v37 = vrot.slane %v277_v30, 1  ;;  %v1595_v48 = vld [vmem:[%s2022_s1 + $0x88] sm:$0xff]  ;;  %v1584_v29 = vld [vmem:[%s2022_s1 + $0x50] sm:$0xff] }
  0x14   : > { %458 = vmatpush.bf16.msrb.mxu2 %v1570_v2  ;;  %378 = vmatpush.bf16.msrb.mxu1 %v1566_v3  ;;  %v259_v26 = vor.u32 %v257_v15, %v255_v21  ;;  %v267_v27 = vor.u32 %v265_v17, %v263_v22  ;;  %v654_v45 = vpack.c.b16 %v644_v42, %v643_v39  ;;  %v670_v46 = vshrl.u32 %v1739_v36, 16  ;;  %v1412_v52 = vld [vmem:[%s1691_s6 + $0x4] sm:$0xe]  ;;  %v1571_v53 = vld [vmem:[%s1691_s6 + $0x4] sm:$0xf0]  ;;  %v1572_v59 = vld [vmem:[%s1691_s6 + $0xc] sm:$0xff] }
  0x15   : > { %578 = vmatpush.bf16.msrb.mxu3 %v1577_v4  ;;  %743 = vmatpush.bf16.msrb.mxu0 %v1583_v5  ;;  %v250_v28 = vrot.slane %v248_v24, 1  ;;  %v283_v44 = vor.u32 %v281_v31, %v279_v37  ;;  %v673_v47 = vshll.u32 %v1739_v36, 16  ;;  %v273_v49 = vshrl.u32 %v1703_v9, 16  ;;  %v1770_v3 = vld [vmem:[%s1691_s6 + $0x14] sm:$0xff]  ;;  %v1600_v5 = vld [vmem:[%s1691_s6] sm:$0xf0] }
  0x16   : > { %v264_v33 = vsel %vm244_vm0, %v259_v26, %v263_v22  ;;  %v272_v34 = vsel %vm244_vm0, %v267_v27, %v271_v25  ;;  %v662_v50 = vshrl.u32 %v654_v45, 16  ;;  %v665_v51 = vshll.u32 %v654_v45, 16  ;;  %v1787_v24 = vld [vmem:[%s1691_s6 + $0x1c] sm:$0xff] }
  0x17   : > { %v251_v35 = vor.u32 %v250_v28, %v246_v23  ;;  %1372 = vmatmul.msk.bf16.vlgmr.msra.gmra.mxu1 %vm296_vm1, %v264_v33  ;;  %1373 = vmatmul.msk.bf16.vlgmr.msra.gmra.mxu2 %vm296_vm1, %v272_v34  ;;  %v672_v56 = vrot.slane %v670_v46, 1  ;;  %v675_v57 = vrot.slane %v673_v47, 2  ;;  %v275_v58 = vor.u32 %v273_v49, %v271_v25  ;;  %v1590_v25 = vld [vmem:[%s2022_s1 + $0x60] sm:$0xff] }
  0x18   : > { %459 = vmatpush.bf16.msrb.mxu2 %v1569_v6  ;;  %379 = vmatpush.bf16.msrb.mxu1 %v1565_v12  ;;  %v664_v54 = vrot.slane %v662_v50, 1  ;;  %v667_v55 = vrot.slane %v665_v51, 2  ;;  %v1413_v60 = vor.u32 %v1571_v53, %v1412_v52  ;;  %v537_v1 = vrot.slane %v1572_v59, 1  ;;  %v1601_v6 = vld [vmem:[%s1691_s6] sm:$0xe]  ;;  %v1575_v49 = vld [vmem:[%s1691_s6 + $0x24] sm:$0xff] }
  0x19   : > { %579 = vmatpush.bf16.msrb.mxu3 %v1576_v18  ;;  %744 = vmatpush.bf16.msrb.mxu0 %v1582_v19  ;;  %v256_v41 = vsel %vm244_vm0, %v251_v35, %v255_v21  ;;  %v676_v62 = vor.u32 %v675_v57, %v672_v56  ;;  %v280_v63 = vsel %vm244_vm0, %v275_v58, %v279_v37  ;;  %v679_v12 = vshrl.u32 %v1770_v3, 16  ;;  %v1574_v34 = vld [vmem:[%s1691_s6 + $0x1c] sm:$0xff]  ;;  %v781_v47 = vld [vmem:[%s1691_s6 + $0x4] sm:$0xc]  ;;  %v626_v53 = vld [vmem:[%s1691_s6 + $0x2c] sm:$0x1] }
  0x1a   : > { %1371 = vmatmul.msk.bf16.vlgmr.msra.gmra.mxu0 %vm296_vm1, %v256_v41  ;;  %1375 = vmatmul.msk.bf16.vlgmr.msra.gmra.mxu3 %vm296_vm1, %v283_v44  ;;  %v668_v61 = vor.u32 %v667_v55, %v664_v54  ;;  %v536_v0 = vrot.slane %v1413_v60, 1  ;;  %v682_v14 = vshll.u32 %v1770_v3, 16  ;;  %v1602_v15 = vor.u32 %v1601_v6, %v1600_v5  ;;  %v1594_v41 = vld [vmem:[%s2022_s1 + $0x80] sm:$0xff] }
  0x1b   : > { %v681_v16 = vrot.slane %v679_v12, 1  ;;  %v417_v19 = vrot.slane %v1697_v7, 1  ;;  %v688_v27 = vshrl.u32 %v1787_v24, 16  ;;  %v691_v28 = vshll.u32 %v1787_v24, 16 }
  0x1c   : > { %961 = vmatpush.bf16.msra.mxu2 %v1591_v38  ;;  %835 = vmatpush.bf16.msra.mxu1 %v1585_v40  ;;  %v677_v2 = vsel %vm660_vm2, %v668_v61, %v676_v62  ;;  %v538_v4 = vsel %vm415_vm3, %v536_v0, %v537_v1  ;;  %v684_v17 = vrot.slane %v682_v14, 2  ;;  %v416_v18 = vrot.slane %v1602_v15, 1  ;;  %v1811_v40 = vld [vmem:[%s1691_s6 + $0x24] sm:$0xff] }
  0x1d   : > { %1095 = vmatpush.bf16.msra.mxu3 %v1593_v43  ;;  %1187 = vmatpush.bf16.msra.mxu0 %v1595_v48  ;;  %v690_v30 = vrot.slane %v688_v27, 1  ;;  %v693_v31 = vrot.slane %v691_v28, 2  ;;  %v419_v33 = vrot.slane %v1700_v8, 1  ;;  %v541_v38 = vrot.slane %v1574_v34, 1  ;;  %v1133_v15 = vld [vmem:[%s1691_s6 + $0x8] sm:$0x8] }
  0x1e   : > { %v685_v20 = vor.u32 %v684_v17, %v681_v16  ;;  %v418_v21 = vsel %vm415_vm3, %v416_v18, %v417_v19  ;;  %v697_v44 = vshrl.u32 %v1811_v40, 16  ;;  %v700_v45 = vshll.u32 %v1811_v40, 16  ;;  %v1586_v16 = vld [vmem:[%s1691_s6 + $0x10] sm:$0xff] }
  0x1f   : > { %v694_v35 = vor.u32 %v693_v31, %v690_v30  ;;  %v420_v37 = vsel %vm415_vm3, %v417_v19, %v419_v33  ;;  %v421_v48 = vrot.slane %v1703_v9, 1  ;;  %v788_v50 = vunpack.c.l.b16 %v781_v47  ;;  %v1587_v30 = vld [vmem:[%s1691_s6 + $0x18] sm:$0xff] }
  0x20   : > { %v686_v23 = vsel %vm660_vm2, %v676_v62, %v685_v20  ;;  %962 = vmatpush.bf16.msra.mxu2 %v1590_v25  ;;  %836 = vmatpush.bf16.msra.mxu1 %v1584_v29  ;;  %v699_v46 = vrot.slane %v697_v44, 1  ;;  %v543_v55 = vrot.slane %v1575_v49, 1  ;;  %v792_v57 = vrot.slane %v1739_v36, 2  ;;  %v1629_v62 = vld [vmem:[%s1691_s6 + $0x20] sm:$0x70] }
  0x21   : > { %v695_v39 = vsel %vm660_vm2, %v685_v20, %v694_v35  ;;  %1188 = vmatpush.bf16.msra.mxu0 %v1594_v41  ;;  %v789_v52 = vpack.c.b16 %v644_v42, %v788_v50  ;;  %v422_v54 = vsel %vm415_vm3, %v419_v33, %v421_v48  ;;  %v653_v60 = vunpack.c.l.b16 %v626_v53 }
  0x22   : > { %v544_v42 = vsel %vm415_vm3, %v541_v38, %v543_v55  ;;  %v794_v36 = vrot.slane %v1770_v3, 2  ;;  %v423_v0 = vrot.slane %v1706_v10, 1  ;;  %v901_v12 = vunpack.c.h.b16 %v1734_v32 }
  0x23   : > { %v791_v56 = vrot.slane %v789_v52, 2  ;;  %v1839_v61 = vpack.c.b16 %v653_v60, %v653_v60  ;;  %v1140_v10 = vunpack.c.l.b16 %v1133_v15  ;;  %v1018_v19 = vshrl.u32 %v1586_v16, 16 }
  0x24   : > { %v424_v5 = vsel %vm415_vm3, %v421_v48, %v423_v0  ;;  %v1027_v31 = vshrl.u32 %v1587_v30, 16  ;;  %v1030_v33 = vshll.u32 %v1587_v30, 16  ;;  %v796_v48 = vrot.slane %v1787_v24, 2 }
  0x25   : > { %v793_v59 = vsel %vm790_vm4, %v791_v56, %v792_v57  ;;  %v1141_v32 = vpack.c.b16 %v901_v12, %v1140_v10  ;;  %v920_v49 = vrot.slane %v1587_v30, 2 }
  0x27   : > { %1374 = vmatmul.msk.bf16.gmra.mxu2 %vm296_vm1, %v280_v63  ;;  %1384 = vmatmul.msk.bf16.vlgmr.msrb.gmra.mxu1 %vm296_vm1, %v1715_v13  ;;  %v1573_v13 = vld [vmem:[%s1691_s6 + $0x14] sm:$0xff]  ;;  %v795_v63 = vsel %vm790_vm4, %v792_v57, %v794_v36  ;;  %v1143_v25 = vrot.slane %v1141_v32, 3 }
  0x28   : > { %v539_v22 = vrot.slane %v1573_v13, 1  ;;  %v1021_v13 = vshll.u32 %v1586_v16, 16 }
  0x2a   : > { %1471 = vmatmul.msk.bf16.vlgmr.msrb.gmra.mxu0 %vm296_vm1, %v677_v2  ;;  %1438 = vmatmul.msk.bf16.vlgmr.msrb.gmra.mxu3 %vm296_vm1, %v538_v4  ;;  %v540_v26 = vsel %vm415_vm3, %v537_v1, %v539_v22  ;;  %v542_v43 = vsel %vm415_vm3, %v539_v22, %v541_v38  ;;  %v873_v1 = vld [vmem:[%s1691_s6 + $0x8] sm:$0xc]  ;;  %v1624_v4 = vor.u32 %v1629_v62, %v1709_v11  ;;  %v1020_v22 = vrot.slane %v1018_v19, 2 }
  0x2b   : > { %v900_v6 = vunpack.c.l.b16 %v873_v1  ;;  %v1032_v38 = vrot.slane %v1030_v33, 3 }
  0x2d   : > { %v911_v17 = vpack.c.b16 %v901_v12, %v900_v6 }
  0x2f   : > { %v1010_v11 = vshrl.u32 %v911_v17, 16  ;;  %v1013_v18 = vshll.u32 %v911_v17, 16  ;;  %v917_v34 = vrot.slane %v911_v17, 2 }
  0x31   : > { %v1012_v20 = vrot.slane %v1010_v11, 2 }
  0x37   : > { %1385 = vmatmul.msk.bf16.gmra.mxu1 %vm296_vm1, %v1697_v7  ;;  %1401 = vmatmul.msk.bf16.vlgmr.msrb.gmra.mxu2 %vm296_vm1, %v418_v21  ;;  %v1592_v7 = vld [vmem:[%s2022_s1 + $0x70] sm:$0xff]  ;;  %v1015_v21 = vrot.slane %v1013_v18, 3 }
  0x38   : > { %1096 = vmatpush.bf16.msra.mxu3 %v1592_v7 }
  0x39   : > { %v1016_v27 = vor.u32 %v1015_v21, %v1012_v20 }
  0x3a   : > { %1472 = vmatmul.msk.bf16.gmra.mxu0 %vm296_vm1, %v686_v23  ;;  %1439 = vmatmul.msk.bf16.gmra.mxu3 %vm296_vm1, %v540_v26  ;;  %v1023_v23 = vrot.slane %v1021_v13, 3  ;;  %v1144_v26 = vrot.slane %v1586_v16, 3 }
  0x3c   : > { %v1024_v28 = vor.u32 %v1023_v23, %v1020_v22  ;;  %v1145_v7 = vsel %vm1142_vm5, %v1143_v25, %v1144_v26 }
  0x3e   : > { %v1025_v29 = vsel %vm1008_vm6, %v1016_v27, %v1024_v28  ;;  %v800_v27 = vrot.slane %v1839_v61, 2 }
  0x47   : > { %1386 = vmatmul.msk.bf16.gmra.mxu1 %vm296_vm1, %v1700_v8  ;;  %1402 = vmatmul.msk.bf16.gmra.mxu2 %vm296_vm1, %v420_v37  ;;  %v702_v8 = vrot.slane %v700_v45, 2  ;;  %v1029_v37 = vrot.slane %v1027_v31, 2 }
  0x49   : > { %v703_v51 = vor.u32 %v702_v8, %v699_v46  ;;  %v1873_v46 = vld [vmem:[%s1691_s6 + $0x20] sm:$0xff] }
  0x4a   : > { %1473 = vmatmul.msk.bf16.gmra.mxu0 %vm296_vm1, %v695_v39  ;;  %1440 = vmatmul.msk.bf16.gmra.mxu3 %vm296_vm1, %v542_v43  ;;  %v1146_v39 = vrot.slane %v1587_v30, 3  ;;  %v1033_v43 = vor.u32 %v1032_v38, %v1029_v37  ;;  %v1036_v8 = vshrl.u32 %v1873_v46, 16  ;;  %v1039_v47 = vshll.u32 %v1873_v46, 16 }
  0x4b   : > { %v704_v58 = vsel %vm660_vm2, %v694_v35, %v703_v51  ;;  %v918_v35 = vrot.slane %v1586_v16, 2  ;;  %v1148_v52 = vrot.slane %v1873_v46, 3 }
  0x4c   : > { %v1147_v44 = vsel %vm1142_vm5, %v1144_v26, %v1146_v39  ;;  %v1034_v45 = vsel %vm1008_vm6, %v1024_v28, %v1033_v43  ;;  %v1038_v50 = vrot.slane %v1036_v8, 2 }
  0x4d   : > { %v919_v41 = vsel %vm790_vm4, %v917_v34, %v918_v35 }
  0x57   : > { %1387 = vmatmul.msk.bf16.gmra.mxu1 %vm296_vm1, %v1703_v9  ;;  %1403 = vmatmul.msk.bf16.gmra.mxu2 %vm296_vm1, %v422_v54  ;;  %v706_v9 = vshll.u32 %v1839_v61, 16  ;;  %v797_v54 = vsel %vm790_vm4, %v794_v36, %v796_v48 }
  0x59   : > { %v708_v2 = vrot.slane %v706_v9, 2  ;;  %v798_v9 = vrot.slane %v1811_v40, 2 }
  0x5a   : > { %1474 = vmatmul.msk.bf16.gmra.mxu0 %vm296_vm1, %v704_v58  ;;  %1441 = vmatmul.msk.bf16.gmra.mxu3 %vm296_vm1, %v544_v42  ;;  %v1149_v58 = vsel %vm1142_vm5, %v1146_v39, %v1148_v52  ;;  %v883_v39 = vld [vmem:[%s1691_s6 + $0x30] sm:$0x1] }
  0x5b   : > { %v709_v14 = vsel %vm660_vm2, %v703_v51, %v708_v2  ;;  %v1041_v51 = vrot.slane %v1039_v47, 3  ;;  %v801_v34 = vsel %vm790_vm4, %v798_v9, %v800_v27 }
  0x5d   : > { %v1042_v56 = vor.u32 %v1041_v51, %v1038_v50 }
  0x5f   : > { %v1043_v24 = vsel %vm1008_vm6, %v1033_v43, %v1042_v56 }
  0x67   : > { %1388 = vmatmul.msk.bf16.gmra.mxu1 %vm296_vm1, %v1624_v4  ;;  %1404 = vmatmul.msk.bf16.gmra.mxu2 %vm296_vm1, %v424_v5  ;;  %v999_v4 = vld [vmem:[%s1691_s6 + $0x30] sm:$0x3] }
  0x68   : > { %v1006_v17 = vunpack.c.l.b16 %v999_v4 }
  0x6a   : > { %1475 = vmatmul.msk.bf16.gmra.mxu0 %vm296_vm1, %v709_v14  ;;  %1442 = vmatmul.msk.bf16.gmra.mxu3 %vm296_vm1, %v543_v55  ;;  %v921_v55 = vsel %vm790_vm4, %v918_v35, %v920_v49  ;;  %v799_v14 = vsel %vm790_vm4, %v796_v48, %v798_v9  ;;  %v1007_v13 = vpack.c.b16 %v1006_v17, %v1006_v17 }
  0x6c   : > { %v1054_v21 = vshrl.u32 %v1007_v13, 16  ;;  %v1057_v22 = vshll.u32 %v1007_v13, 16  ;;  %v1152_v31 = vrot.slane %v1007_v13, 3 }
  0x77   : > { %1405 = vmatmul.msk.bf16.gmra.mxu2 %vm296_vm1, %v423_v0  ;;  %1488 = vmatmul.msk.bf16.vlgmr.msra.gmra.mxu1 %vm296_vm1, %v793_v59  ;;  %v1890_v59 = vld [vmem:[%s1691_s6 + $0x28] sm:$0xff]  ;;  %v922_v0 = vrot.slane %v1873_v46, 2 }
  0x78   : > { %v1045_v42 = vshrl.u32 %v1890_v59, 16  ;;  %v1048_v36 = vshll.u32 %v1890_v59, 16  ;;  %v1150_v6 = vrot.slane %v1890_v59, 3  ;;  %v924_v28 = vrot.slane %v1890_v59, 2 }
  0x79   : > { %v923_v15 = vsel %vm790_vm4, %v920_v49, %v922_v0 }
  0x7a   : > { %1555 = vmatmul.msk.bf16.vlgmr.msra.gmra.mxu0 %vm296_vm1, %v1145_v7  ;;  %1538 = vmatmul.msk.bf16.vlgmr.msra.gmra.mxu3 %vm296_vm1, %v1025_v29  ;;  %v1047_v1 = vrot.slane %v1045_v42, 2  ;;  %v1050_v2 = vrot.slane %v1048_v36, 3  ;;  %v1151_v18 = vsel %vm1142_vm5, %v1148_v52, %v1150_v6  ;;  %v1056_v7 = vrot.slane %v1054_v21, 2 }
  0x7b   : > { %v1059_v29 = vrot.slane %v1057_v22, 3  ;;  %v925_v35 = vsel %vm790_vm4, %v922_v0, %v924_v28 }
  0x7c   : > { %v1051_v16 = vor.u32 %v1050_v2, %v1047_v1 }
  0x7d   : > { %v1060_v37 = vor.u32 %v1059_v29, %v1056_v7 }
  0x7e   : > { %v1052_v19 = vsel %vm1008_vm6, %v1042_v56, %v1051_v16 }
  0x7f   : > { %v1061_v61 = vsel %vm1008_vm6, %v1051_v16, %v1060_v37 }
  0x87   : > { %1489 = vmatmul.msk.bf16.gmra.mxu1 %vm296_vm1, %v795_v63  ;;  %1521 = vmatmul.msk.bf16.vlgmr.msra.gmra.mxu2 %vm296_vm1, %v919_v41 }
  0x8a   : > { %1556 = vmatmul.msk.bf16.gmra.mxu0 %vm296_vm1, %v1147_v44  ;;  %1539 = vmatmul.msk.bf16.gmra.mxu3 %vm296_vm1, %v1034_v45  ;;  %v1153_v44 = vsel %vm1142_vm5, %v1150_v6, %v1152_v31  ;;  %v910_v45 = vunpack.c.l.b16 %v883_v39 }
  0x8c   : > { %v916_v48 = vpack.c.b16 %v910_v45, %v910_v45 }
  0x94   : > { %v326_v53 = vpop.f32.mrf.mxu1 }
  0x97   : > { %v321_v57 = vpop.f32.mrf.mxu0  ;;  %1490 = vmatmul.msk.bf16.gmra.mxu1 %vm296_vm1, %v797_v54  ;;  %1522 = vmatmul.msk.bf16.gmra.mxu2 %vm296_vm1, %v921_v55  ;;  %v926_v54 = vrot.slane %v916_v48, 2 }
  0x9a   : > { %1557 = vmatmul.msk.bf16.gmra.mxu0 %vm296_vm1, %v1149_v58  ;;  %v1893_v3 = vpop.f32.mrf.mxu2  ;;  %1540 = vmatmul.msk.bf16.gmra.mxu3 %vm296_vm1, %v1043_v24  ;;  %v927_v58 = vsel %vm790_vm4, %v924_v28, %v926_v54 }
  0x9c   : > { %v328_v60 = vpop.f32.mrf.mxu1 }
  0x9d   : > { %v1898_v62 = vpop.f32.mrf.mxu3 }
  0x9f   : > { %v323_v63 = vpop.f32.mrf.mxu0 }
  0xa2   : > { %v1903_v5 = vpop.f32.mrf.mxu2 }
  0xa4   : > { %v381_v12 = vpop.f32.mrf.mxu1 }
  0xa5   : > { %v382_v10 = vadd.f32 %v381_v12, %v321_v57  ;;  %v1908_v11 = vpop.f32.mrf.mxu3 }
  0xa7   : > { %v746_v40 = vpop.f32.mrf.mxu0  ;;  %1491 = vmatmul.msk.bf16.gmra.mxu1 %vm296_vm1, %v799_v14  ;;  %1523 = vmatmul.msk.bf16.gmra.mxu2 %vm296_vm1, %v923_v15 }
  0xaa   : > { %1558 = vmatmul.msk.bf16.gmra.mxu0 %vm296_vm1, %v1151_v18  ;;  %v336_v32 = vpop.f32.mrf.mxu2  ;;  %1541 = vmatmul.msk.bf16.gmra.mxu3 %vm296_vm1, %v1052_v19 }
  0xac   : > { %v383_v20 = vpop.f32.mrf.mxu1 }
  0xad   : > { %v384_v23 = vadd.f32 %v383_v20, %v323_v63  ;;  %v581_v25 = vpop.f32.mrf.mxu3 }
  0xaf   : > { %v748_v26 = vpop.f32.mrf.mxu0 }
  0xb2   : > { %v338_v30 = vpop.f32.mrf.mxu2 }
  0xb4   : > { %v386_v33 = vpop.f32.mrf.mxu1 }
  0xb5   : > { %v387_v38 = vadd.f32 %v386_v33, %v326_v53  ;;  %v583_v41 = vpop.f32.mrf.mxu3 }
  0xb7   : > { %v751_v43 = vpop.f32.mrf.mxu0  ;;  %1492 = vmatmul.msk.bf16.gmra.mxu1 %vm296_vm1, %v801_v34  ;;  %1524 = vmatmul.msk.bf16.gmra.mxu2 %vm296_vm1, %v925_v35 }
  0xba   : > { %1559 = vmatmul.msk.bf16.gmra.mxu0 %vm296_vm1, %v1153_v44  ;;  %v461_v46 = vpop.f32.mrf.mxu2  ;;  %1542 = vmatmul.msk.bf16.gmra.mxu3 %vm296_vm1, %v1061_v61 }
  0xbb   : > { %v486_v8 = vadd.f32 %v461_v46, %v382_v10 }
  0xbc   : > { %v388_v47 = vpop.f32.mrf.mxu1 }
  0xbd   : > { %v606_v49 = vadd.f32 %v581_v25, %v486_v8  ;;  %v389_v50 = vadd.f32 %v388_v47, %v328_v60  ;;  %v586_v51 = vpop.f32.mrf.mxu3 }
  0xbf   : > { %v753_v52 = vpop.f32.mrf.mxu0  ;;  %v1927_v53 = vadd.f32 %v746_v40, %v606_v49 }
  0xc2   : > { %v463_v55 = vpop.f32.mrf.mxu2 }
  0xc3   : > { %v487_v56 = vadd.f32 %v463_v55, %v384_v23 }
  0xc4   : > { %v391_v57 = vpop.f32.mrf.mxu1 }
  0xc5   : > { %v607_v24 = vadd.f32 %v583_v41, %v487_v56  ;;  %v392_v59 = vadd.f32 %v391_v57, %v1893_v3  ;;  %v588_v42 = vpop.f32.mrf.mxu3 }
  0xc7   : > { %v756_v36 = vpop.f32.mrf.mxu0  ;;  %1525 = vmatmul.msk.bf16.gmra.mxu2 %vm296_vm1, %v927_v58  ;;  %v1932_v63 = vadd.f32 %v748_v26, %v607_v24 }
  0xca   : > { %v466_v60 = vpop.f32.mrf.mxu2 }
  0xcb   : > { %v488_v9 = vadd.f32 %v466_v60, %v387_v38 }
  0xcc   : > { %v393_v0 = vpop.f32.mrf.mxu1 }
  0xcd   : > { %v608_v1 = vadd.f32 %v586_v51, %v488_v9  ;;  %v394_v2 = vadd.f32 %v393_v0, %v1903_v5  ;;  %v591_v4 = vpop.f32.mrf.mxu3  ;;  %v1957_v0 = vld [vmem:[%s2023_s2] ss:$0 sm:$0xff] }
  0xcf   : > { %v758_v6 = vpop.f32.mrf.mxu0  ;;  %v1935_v12 = vadd.f32 %v751_v43, %v608_v1 }
  0xd2   : > { %v468_v14 = vpop.f32.mrf.mxu2 }
  0xd3   : > { %v489_v15 = vadd.f32 %v468_v14, %v389_v50 }
  0xd4   : > { %v396_v16 = vpop.f32.mrf.mxu1 }
  0xd5   : > { %v609_v3 = vadd.f32 %v588_v42, %v489_v15  ;;  %v397_v17 = vadd.f32 %v396_v16, %v336_v32  ;;  %v593_v10 = vpop.f32.mrf.mxu3 }
  0xd7   : > { %v761_v40 = vpop.f32.mrf.mxu0  ;;  %v1937_v18 = vadd.f32 %v753_v52, %v609_v3 }
  0xda   : > { %v471_v19 = vpop.f32.mrf.mxu2 }
  0xdb   : > { %v490_v13 = vadd.f32 %v471_v19, %v392_v59 }
  0xdc   : > { %v398_v20 = vpop.f32.mrf.mxu1 }
  0xdd   : > { %v610_v21 = vadd.f32 %v591_v4, %v490_v13  ;;  %v399_v22 = vadd.f32 %v398_v20, %v338_v30  ;;  %v596_v23 = vpop.f32.mrf.mxu3  ;;  %v1962_v4 = vld [vmem:[%s2024_s3] ss:$0 sm:$0xff] }
  0xdf   : > { %v763_v5 = vpop.f32.mrf.mxu0  ;;  %v1939_v25 = vadd.f32 %v756_v36, %v610_v21 }
  0xe2   : > { %v473_v26 = vpop.f32.mrf.mxu2 }
  0xe3   : > { %v491_v27 = vadd.f32 %v473_v26, %v394_v2 }
  0xe4   : > { %v401_v28 = vpop.f32.mrf.mxu1 }
  0xe5   : > { %v611_v7 = vadd.f32 %v593_v10, %v491_v27  ;;  %v402_v29 = vadd.f32 %v401_v28, %v1898_v62  ;;  %v598_v32 = vpop.f32.mrf.mxu3 }
  0xe7   : > { %v1942_v31 = vadd.f32 %v758_v6, %v611_v7  ;;  %v766_v33 = vpop.f32.mrf.mxu0 }
  0xea   : > { %v476_v34 = vpop.f32.mrf.mxu2 }
  0xeb   : > { %v492_v35 = vadd.f32 %v476_v34, %v397_v17 }
  0xec   : > { %v403_v37 = vpop.f32.mrf.mxu1 }
  0xed   : > { %v612_v38 = vadd.f32 %v596_v23, %v492_v35  ;;  %v404_v30 = vadd.f32 %v403_v37, %v1908_v11  ;;  %v601_v39 = vpop.f32.mrf.mxu3 }
  0xef   : > { %v1945_v41 = vadd.f32 %v761_v40, %v612_v38  ;;  %v768_v44 = vpop.f32.mrf.mxu0 }
  0xf2   : > { %v478_v43 = vpop.f32.mrf.mxu2 }
  0xf3   : > { %v493_v61 = vadd.f32 %v478_v43, %v399_v22 }
  0xf4   : > { %v838_v45 = vpop.f32.mrf.mxu1 }
  0xf5   : > { %v613_v46 = vadd.f32 %v598_v32, %v493_v61  ;;  %v603_v8 = vpop.f32.mrf.mxu3  ;;  %v863_v42 = vadd.f32 %v838_v45, %v1927_v53 }
  0xf7   : > { %v1947_v62 = vadd.f32 %v763_v5, %v613_v46  ;;  %v1190_v49 = vpop.f32.mrf.mxu0 }
  0xfa   : > { %v481_v47 = vpop.f32.mrf.mxu2 }
  0xfb   : > { %v494_v48 = vadd.f32 %v481_v47, %v402_v29 }
  0xfc   : > { %v840_v51 = vpop.f32.mrf.mxu1 }
  0xfd   : > { %v614_v50 = vadd.f32 %v601_v39, %v494_v48  ;;  %v1098_v52 = vpop.f32.mrf.mxu3  ;;  %v864_v14 = vadd.f32 %v840_v51, %v1932_v63 }
  0xff   : > { %v1949_v54 = vadd.f32 %v766_v33, %v614_v50  ;;  %v1192_v58 = vpop.f32.mrf.mxu0 }
 0x102   : > { %v483_v11 = vpop.f32.mrf.mxu2 }
 0x103   : > { %v495_v55 = vadd.f32 %v483_v11, %v404_v30 }
 0x104   : > { %v843_v59 = vpop.f32.mrf.mxu1 }
 0x105   : > { %v615_v56 = vadd.f32 %v603_v8, %v495_v55  ;;  %v1100_v57 = vpop.f32.mrf.mxu3  ;;  %v865_v20 = vadd.f32 %v843_v59, %v1935_v12 }
 0x107   : > { %v1951_v24 = vadd.f32 %v768_v44, %v615_v56  ;;  %v1195_v6 = vpop.f32.mrf.mxu0 }
 0x10a   : > { %v964_v36 = vpop.f32.mrf.mxu2 }
 0x10b   : > { %v989_v60 = vadd.f32 %v964_v36, %v863_v42 }
 0x10c   : > { %v845_v15 = vpop.f32.mrf.mxu1 }
 0x10d   : > { %v1123_v9 = vadd.f32 %v1098_v52, %v989_v60  ;;  %v1103_v1 = vpop.f32.mrf.mxu3  ;;  %v866_v33 = vadd.f32 %v845_v15, %v1937_v18 }
 0x10f   : > { %v1215_v2 = vadd.f32 %v1190_v49, %v1123_v9  ;;  %v1197_v23 = vpop.f32.mrf.mxu0 }
 0x111   : > { %v1229_v53 = vmul.f32 %v1957_v0, %v1215_v2 }
 0x112   : > { %v966_v16 = vpop.f32.mrf.mxu2 }
 0x113   : > { %v1243_v3 = vadd.f32 %v1962_v4, %v1229_v53  ;;  %v990_v17 = vadd.f32 %v966_v16, %v864_v14 }
 0x114   : > { %v848_v27 = vpop.f32.mrf.mxu1 }
 0x115   : > { %v1253_v10 = vmax.f32 %v1243_v3, 0.0  ;;  %v1124_v40 = vadd.f32 %v1100_v57, %v990_v17  ;;  %v1105_v13 = vpop.f32.mrf.mxu3  ;;  %v867_v46 = vadd.f32 %v848_v27, %v1939_v25 }
 0x117   : > { %v1263_v19 = vpack.c.bf16 %v1253_v10, %v1253_v10  ;;  %v1216_v63 = vadd.f32 %v1192_v58, %v1124_v40  ;;  %v1200_v30 = vpop.f32.mrf.mxu0 }
 0x119   : > { %1274 = vst.msk [vmem:[%s1971_s14] sm:$0xf] %vm1273_vm7, %v1263_v19  ;;  %v1230_v21 = vmul.f32 %v1957_v0, %v1216_v63 }
 0x11a   : > { %v969_v22 = vpop.f32.mrf.mxu2 }
 0x11b   : > { %v1244_v5 = vadd.f32 %v1962_v4, %v1230_v21  ;;  %v991_v26 = vadd.f32 %v969_v22, %v865_v20 }
 0x11c   : > { %v850_v44 = vpop.f32.mrf.mxu1 }
 0x11d   : > { %v1254_v28 = vmax.f32 %v1244_v5, 0.0  ;;  %v1125_v7 = vadd.f32 %v1103_v1, %v991_v26  ;;  %v1108_v35 = vpop.f32.mrf.mxu3  ;;  %v868_v57 = vadd.f32 %v850_v44, %v1942_v31 }
 0x11f   : > { %v1264_v29 = vpack.c.bf16 %v1254_v28, %v1254_v28  ;;  %v1217_v32 = vadd.f32 %v1195_v6, %v1125_v7  ;;  %v1202_v52 = vpop.f32.mrf.mxu0 }
 0x121   : > { %1275 = vst.msk [vmem:[%s1971_s14 + $0x4] sm:$0xf] %vm1273_vm7, %v1264_v29  ;;  %v1231_v12 = vmul.f32 %v1957_v0, %v1217_v32 }
 0x122   : > { %v971_v34 = vpop.f32.mrf.mxu2 }
 0x123   : > { %v1245_v37 = vadd.f32 %v1962_v4, %v1231_v12  ;;  %v992_v38 = vadd.f32 %v971_v34, %v866_v33 }
 0x124   : > { %v853_v56 = vpop.f32.mrf.mxu1 }
 0x125   : > { %v1255_v39 = vmax.f32 %v1245_v37, 0.0  ;;  %v1126_v43 = vadd.f32 %v1105_v13, %v992_v38  ;;  %v1110_v49 = vpop.f32.mrf.mxu3  ;;  %v869_v14 = vadd.f32 %v853_v56, %v1945_v41 }
 0x127   : > { %v1265_v61 = vpack.c.bf16 %v1255_v39, %v1255_v39  ;;  %v1218_v45 = vadd.f32 %v1197_v23, %v1126_v43  ;;  %v1205_v6 = vpop.f32.mrf.mxu0 }
 0x129   : > { %1276 = vst.msk [vmem:[%s1971_s14 + $0x8] sm:$0xf] %vm1273_vm7, %v1265_v61  ;;  %v1232_v18 = vmul.f32 %v1957_v0, %v1218_v45 }
 0x12a   : > { %v974_v8 = vpop.f32.mrf.mxu2 }
 0x12b   : > { %v1246_v47 = vadd.f32 %v1962_v4, %v1232_v18  ;;  %v993_v48 = vadd.f32 %v974_v8, %v867_v46 }
 0x12c   : > { %v855_v53 = vpop.f32.mrf.mxu1 }
 0x12d   : > { %v1256_v50 = vmax.f32 %v1246_v47, 0.0  ;;  %v1127_v51 = vadd.f32 %v1108_v35, %v993_v48  ;;  %v1113_v9 = vpop.f32.mrf.mxu3  ;;  %v870_v13 = vadd.f32 %v855_v53, %v1947_v62 }
 0x12f   : > { %v1266_v11 = vpack.c.bf16 %v1256_v50, %v1256_v50  ;;  %v1219_v55 = vadd.f32 %v1200_v30, %v1127_v51  ;;  %v1207_v20 = vpop.f32.mrf.mxu0 }
 0x131   : > { %1277 = vst.msk [vmem:[%s1971_s14 + $0xc] sm:$0xf] %vm1273_vm7, %v1266_v11  ;;  %v1233_v25 = vmul.f32 %v1957_v0, %v1219_v55 }
 0x132   : > { %v976_v58 = vpop.f32.mrf.mxu2 }
 0x133   : > { %v1247_v59 = vadd.f32 %v1962_v4, %v1233_v25  ;;  %v994_v42 = vadd.f32 %v976_v58, %v868_v57 }
 0x134   : > { %v858_v5 = vpop.f32.mrf.mxu1 }
 0x135   : > { %v1257_v36 = vmax.f32 %v1247_v59, 0.0  ;;  %v1128_v60 = vadd.f32 %v1110_v49, %v994_v42  ;;  %v1115_v63 = vpop.f32.mrf.mxu3  ;;  %v871_v29 = vadd.f32 %v858_v5, %v1949_v54 }
 0x137   : > { %v1267_v1 = vpack.c.bf16 %v1257_v36, %v1257_v36  ;;  %v1220_v2 = vadd.f32 %v1202_v52, %v1128_v60  ;;  %v1210_v35 = vpop.f32.mrf.mxu0 }
 0x139   : > { %1278 = vst.msk [vmem:[%s1971_s14 + $0x10] sm:$0xf] %vm1273_vm7, %v1267_v1  ;;  %v1234_v31 = vmul.f32 %v1957_v0, %v1220_v2 }
 0x13a   : > { %v979_v15 = vpop.f32.mrf.mxu2 }
 0x13b   : > { %v1248_v16 = vadd.f32 %v1962_v4, %v1234_v31  ;;  %v995_v3 = vadd.f32 %v979_v15, %v869_v14 }
 0x13c   : > { %v860_v30 = vpop.f32.mrf.mxu1 }
 0x13d   : > { %v1258_v17 = vmax.f32 %v1248_v16, 0.0  ;;  %v1129_v10 = vadd.f32 %v1113_v9, %v995_v3  ;;  %v1118_v32 = vpop.f32.mrf.mxu3  ;;  %v872_v44 = vadd.f32 %v860_v30, %v1951_v24 }
 0x13f   : > { %v1268_v40 = vpack.c.bf16 %v1258_v17, %v1258_v17  ;;  %v1221_v19 = vadd.f32 %v1205_v6, %v1129_v10  ;;  %v1212_v48 = vpop.f32.mrf.mxu0 }
 0x141   : > { %1279 = vst.msk [vmem:[%s1971_s14 + $0x14] sm:$0xf] %vm1273_vm7, %v1268_v40  ;;  %v1235_v41 = vmul.f32 %v1957_v0, %v1221_v19 }
 0x142   : > { %v981_v21 = vpop.f32.mrf.mxu2 }
 0x143   : > { %v1249_v22 = vadd.f32 %v1962_v4, %v1235_v41  ;;  %v996_v23 = vadd.f32 %v981_v21, %v870_v13 }
 0x145   : > { %v1259_v26 = vmax.f32 %v1249_v22, 0.0  ;;  %v1130_v27 = vadd.f32 %v1115_v63, %v996_v23  ;;  %v1120_v18 = vpop.f32.mrf.mxu3 }
 0x147   : > { %v1269_v28 = vpack.c.bf16 %v1259_v26, %v1259_v26  ;;  %v1222_v7 = vadd.f32 %v1207_v20, %v1130_v27 }
 0x149   : > { %1280 = vst.msk [vmem:[%s1971_s14 + $0x18] sm:$0xf] %vm1273_vm7, %v1269_v28  ;;  %v1236_v62 = vmul.f32 %v1957_v0, %v1222_v7 }
 0x14a   : > { %v984_v33 = vpop.f32.mrf.mxu2 }
 0x14b   : > { %v1250_v12 = vadd.f32 %v1962_v4, %v1236_v62  ;;  %v997_v34 = vadd.f32 %v984_v33, %v871_v29 }
 0x14d   : > { %v1260_v37 = vmax.f32 %v1250_v12, 0.0  ;;  %v1131_v38 = vadd.f32 %v1118_v32, %v997_v34 }
 0x14f   : > { %v1270_v39 = vpack.c.bf16 %v1260_v37, %v1260_v37  ;;  %v1223_v43 = vadd.f32 %v1210_v35, %v1131_v38 }
 0x151   : > { %1281 = vst.msk [vmem:[%s1971_s14 + $0x1c] sm:$0xf] %vm1273_vm7, %v1270_v39  ;;  %v1237_v54 = vmul.f32 %v1957_v0, %v1223_v43 }
 0x152   : > { %v986_v61 = vpop.f32.mrf.mxu2 }
 0x153   : > { %v1251_v45 = vadd.f32 %v1962_v4, %v1237_v54  ;;  %v998_v46 = vadd.f32 %v986_v61, %v872_v44 }
 0x155   : > { %v1261_v8 = vmax.f32 %v1251_v45, 0.0  ;;  %v1132_v47 = vadd.f32 %v1120_v18, %v998_v46 }
 0x157   : > { %v1271_v49 = vpack.c.bf16 %v1261_v8, %v1261_v8  ;;  %v1224_v50 = vadd.f32 %v1212_v48, %v1132_v47 }
 0x159   : > { %1282 = vst.msk [vmem:[%s1971_s14 + $0x20] sm:$0xf] %vm1273_vm7, %v1271_v49  ;;  %v1238_v51 = vmul.f32 %v1957_v0, %v1224_v50 }
 0x15b   : > { %v1252_v24 = vadd.f32 %v1962_v4, %v1238_v51 }
 0x15d   : > { %v1262_v52 = vmax.f32 %v1252_v24, 0.0 }
 0x15f   : > { %v1272_v11 = vpack.c.bf16 %v1262_v52, %v1262_v52 }
 0x161   : > { %1284 = vst.msk [vmem:[%s1971_s14 + $0x24] sm:$0x7] %vm1283_vm8, %v1272_v11 }
 0x162 PF: > { %s14_s15 = sadd.s32 1, %s1632_s15  }
 0x163   : > { %p11_p4 = scmp.ge.s32.totalorder %s14_s15, 4  }
 0x165   :  { %13 = sbr.rel (!%p11_p4) target bundleno = 1 (0x1), region = 74 }

</bundles_post_ra>
